<compile_context>
chip_gen: v7x
topology: tpu7x:2x2x1
jax: 0.10.0
libtpu: 0.0.40
codegen_flags: <defaults>
</compile_context>

<pallas_src>
import numpy as np
import jax
import jax.numpy as jnp
from jax.experimental import pallas as pl
from jax.experimental.pallas import tpu as pltpu


def mlp_kernel(x_ref, w1_ref, w2_ref, w3_ref, b3_ref, out_ref):
    # x_ref:  (bm, Dp)  bf16      w1_ref: (Dp, Np) bf16 (mu1 pre-folded)
    # w2_ref: (Np, Np)  bf16 (mu2 pre-folded)
    # w3_ref: (Np, Cp)  bf16      b3_ref: (1, Cp)  f32
    # out_ref:(bm, Cp)  f32   (lane-dense, Cp multiple of 128)
    x = x_ref[...]

    # layer 1: Linear (mu folded in) -> ReLU; accumulate in f32, re-pack to bf16
    # for the next MXU pass (bf16 is the MXU-native input dtype on v5e/v6e/v7x).
    h1 = jnp.dot(x, w1_ref[...], preferred_element_type=jnp.float32)
    h1 = jnp.maximum(h1, 0.0).astype(jnp.bfloat16)

    # layer 2: Linear (mu folded in) -> ReLU
    h2 = jnp.dot(h1, w2_ref[...], preferred_element_type=jnp.float32)
    h2 = jnp.maximum(h2, 0.0).astype(jnp.bfloat16)

    # task head: Linear with bias (bias kept in f32, broadcasts over rows)
    out = jnp.dot(h2, w3_ref[...], preferred_element_type=jnp.float32) + b3_ref[...]
    out_ref[...] = out.astype(out_ref.dtype)


def _round_up(x, m):
    return ((x + m - 1) // m) * m


def _pad2(a, rows, cols):
    return jnp.pad(a, ((0, rows - a.shape[0]), (0, cols - a.shape[1])))


def mlp_forward(x_nchw, w1, mu1, w2, mu2, w3, b3, *, block_m=128):
    """x_nchw: (B, C, H, W) float32. Returns (B, ncla) float32 (eval-mode MLP)."""
    B = x_nchw.shape[0]
    x_flat = x_nchw.reshape(B, -1).astype(jnp.float32)   # torch.nn.Flatten equivalent
    D = x_flat.shape[1]
    N = w1.shape[1]
    ncla = w3.shape[1]

    # Fold eval-mode VBD scaling into the producing matmul's output columns.
    w1m = w1 * mu1[None, :]
    w2m = w2 * mu2[None, :]

    # Lane-aligned padded sizes (zero padding is numerically exact through ReLU).
    Dp = _round_up(D, 128)
    Np = _round_up(N, 128)           # 1000 -> 1024
    Cp = _round_up(ncla, 128)        # 10   -> 128 (lane-dense output store)
    bm = block_m if B >= block_m else _round_up(B, 8)
    Bp = _round_up(B, bm)

    xb = _pad2(x_flat, Bp, Dp).astype(jnp.bfloat16)
    w1b = _pad2(w1m, Dp, Np).astype(jnp.bfloat16)
    w2b = _pad2(w2m, Np, Np).astype(jnp.bfloat16)
    w3b = _pad2(w3, Np, Cp).astype(jnp.bfloat16)
    b3p = _pad2(b3.reshape(1, -1), 1, Cp).astype(jnp.float32)

    grid = (Bp // bm,)

    flops = 2 * Bp * (Dp * Np + Np * Np + Np * Cp)
    bytes_accessed = (
        xb.size * 2 + w1b.size * 2 + w2b.size * 2 + w3b.size * 2
        + b3p.size * 4 + Bp * Cp * 4
    )

    out = pl.pallas_call(
        mlp_kernel,
        out_shape=jax.ShapeDtypeStruct((Bp, Cp), jnp.float32),
        grid=grid,
        in_specs=[
            pl.BlockSpec((bm, Dp), lambda i: (i, 0)),   # x: tiled over batch
            pl.BlockSpec((Dp, Np), lambda i: (0, 0)),   # w1: constant block -> VMEM-resident
            pl.BlockSpec((Np, Np), lambda i: (0, 0)),   # w2: constant block
            pl.BlockSpec((Np, Cp), lambda i: (0, 0)),   # w3: constant block
            pl.BlockSpec((1, Cp), lambda i: (0, 0)),    # b3
        ],
        out_specs=pl.BlockSpec((bm, Cp), lambda i: (i, 0)),
        compiler_params=pltpu.CompilerParams(
            dimension_semantics=("parallel",),          # megacore split over batch (v7x)
            vmem_limit_bytes=48 * 1024 * 1024,          # fits v7x's 64 MiB VMEM
        ),
        cost_estimate=pl.CostEstimate(
            flops=flops, transcendentals=0, bytes_accessed=bytes_accessed),
    )(xb, w1b, w2b, w3b, b3p)

    return out[:B, :ncla]


def init_params(key, input_size, N, ncla):
    D = int(np.prod(input_size))
    k1, k2, k3, k4 = jax.random.split(key, 4)
    # Linear weights stored as (in, out) = PyTorch weight.T; kaiming-uniform-ish scale.
    w1 = jax.random.uniform(k1, (D, N), jnp.float32, -1.0, 1.0) / np.sqrt(D)
    w2 = jax.random.uniform(k2, (N, N), jnp.float32, -1.0, 1.0) / np.sqrt(N)
    w3 = jax.random.uniform(k3, (N, ncla), jnp.float32, -1.0, 1.0) / np.sqrt(N)
    b3 = jax.random.uniform(k4, (ncla,), jnp.float32, -1.0, 1.0) / np.sqrt(N)
    # VBD_Layer: mu ~ Uniform(1.0, 1.0) == ones (log_sigma2 unused in eval forward)
    mu1 = jnp.ones((N,), jnp.float32)
    mu2 = jnp.ones((N,), jnp.float32)
    return w1, mu1, w2, mu2, w3, b3


if __name__ == "__main__":
    key = jax.random.PRNGKey(0)
    kx, kp = jax.random.split(key)

    # Small shapes consistent with the module: input_size=(4,16,16), N=1000 (module constant)
    B, C, H, W = 2, 4, 16, 16
    input_size = (C, H, W)
    N = 1000
    taskcla = [(0, 10)]     # single task head with 10 classes
    t = 0
    ncla = taskcla[t][1]

    x = jax.random.normal(kx, (B, C, H, W), jnp.float32)
    w1, mu1, w2, mu2, w3, b3 = init_params(kp, input_size, N, ncla)

    out = mlp_forward(x, w1, mu1, w2, mu2, w3, b3)
    out = jax.block_until_ready(out)
    assert out.shape == (B, ncla)

    # Pure-JAX reference with the same bf16-weight / f32-accumulate numerics as the kernel.
    xf = x.reshape(B, -1)
    xb = xf.astype(jnp.bfloat16)
    w1m = (w1 * mu1[None, :]).astype(jnp.bfloat16)
    w2m = (w2 * mu2[None, :]).astype(jnp.bfloat16)
    w3c = w3.astype(jnp.bfloat16)
    h1 = jnp.maximum(jnp.dot(xb, w1m, preferred_element_type=jnp.float32), 0.0).astype(jnp.bfloat16)
    h2 = jnp.maximum(jnp.dot(h1, w2m, preferred_element_type=jnp.float32), 0.0).astype(jnp.bfloat16)
    ref = jnp.dot(h2, w3c, preferred_element_type=jnp.float32) + b3[None, :]
    np.testing.assert_allclose(np.asarray(out), np.asarray(ref), rtol=1e-2, atol=1e-2)

    # Sanity: bf16 path stays close to the original f32 eval-mode forward.
    h1f = jnp.maximum((xf @ w1) * mu1[None, :], 0.0)
    h2f = jnp.maximum((h1f @ w2) * mu2[None, :], 0.0)
    ref_f32 = h2f @ w3 + b3[None, :]
    np.testing.assert_allclose(np.asarray(out), np.asarray(ref_f32), rtol=5e-2, atol=5e-2)

    print("KERNEL_OK")
</pallas_src>

<mosaic_0001>
module attributes {stable_mosaic.version = 11 : i64} {
  func.func @mlp_kernel(%arg0: i32, %arg1: memref<8x1024xbf16, #tpu.memory_space<vmem>>, %arg2: memref<1024x1024xbf16, #tpu.memory_space<vmem>>, %arg3: memref<1024x1024xbf16, #tpu.memory_space<vmem>>, %arg4: memref<1024x128xbf16, #tpu.memory_space<vmem>>, %arg5: memref<1x128xf32, #tpu.memory_space<vmem>>, %arg6: memref<8x128xf32, #tpu.memory_space<vmem>>) attributes {dimension_semantics = [#tpu.dimension_semantics<parallel>], iteration_bounds = array<i64: 1>, scalar_prefetch = 0 : i64, scratch_operands = 0 : i64, tpu.core_type = #tpu.core_type<tc>, window_params = [{transform_indices = @transform_0, window_bounds = array<i64: 8, 1024>}, {pipeline_mode = #tpu.pipeline_mode<synchronous>, transform_indices = @transform_1, window_bounds = array<i64: 1024, 1024>}, {pipeline_mode = #tpu.pipeline_mode<synchronous>, transform_indices = @transform_2, window_bounds = array<i64: 1024, 1024>}, {pipeline_mode = #tpu.pipeline_mode<synchronous>, transform_indices = @transform_3, window_bounds = array<i64: 1024, 128>}, {pipeline_mode = #tpu.pipeline_mode<synchronous>, transform_indices = @transform_4, window_bounds = array<i64: 1, 128>}, {transform_indices = @transform_5, window_bounds = array<i64: 8, 128>}]} {
    %c0 = arith.constant 0 : index
    %c0_0 = arith.constant 0 : index
    %0 = vector.load %arg1[%c0, %c0_0] : memref<8x1024xbf16, #tpu.memory_space<vmem>>, vector<8x1024xbf16>
    %c0_1 = arith.constant 0 : index
    %c0_2 = arith.constant 0 : index
    %1 = vector.load %arg2[%c0_1, %c0_2] : memref<1024x1024xbf16, #tpu.memory_space<vmem>>, vector<1024x1024xbf16>
    %cst = arith.constant dense<0.000000e+00> : vector<8x1024xf32>
    %2 = tpu.matmul %0, %1, %cst {dimension_numbers = #tpu.dot_dimension_numbers<[1], [0], [0], [1], [0, 0, 1, 1], [], []>} : vector<8x1024xbf16>, vector<1024x1024xbf16>, vector<8x1024xf32> -> vector<8x1024xf32>
    %cst_3 = arith.constant 0.000000e+00 : f32
    %3 = vector.broadcast %cst_3 : f32 to vector<8x1024xf32>
    %4 = arith.maximumf %2, %3 : vector<8x1024xf32>
    %5 = arith.truncf %4 : vector<8x1024xf32> to vector<8x1024xbf16>
    %c0_4 = arith.constant 0 : index
    %c0_5 = arith.constant 0 : index
    %6 = vector.load %arg3[%c0_4, %c0_5] : memref<1024x1024xbf16, #tpu.memory_space<vmem>>, vector<1024x1024xbf16>
    %cst_6 = arith.constant dense<0.000000e+00> : vector<8x1024xf32>
    %7 = tpu.matmul %5, %6, %cst_6 {dimension_numbers = #tpu.dot_dimension_numbers<[1], [0], [0], [1], [0, 0, 1, 1], [], []>} : vector<8x1024xbf16>, vector<1024x1024xbf16>, vector<8x1024xf32> -> vector<8x1024xf32>
    %cst_7 = arith.constant 0.000000e+00 : f32
    %8 = vector.broadcast %cst_7 : f32 to vector<8x1024xf32>
    %9 = arith.maximumf %7, %8 : vector<8x1024xf32>
    %10 = arith.truncf %9 : vector<8x1024xf32> to vector<8x1024xbf16>
    %c0_8 = arith.constant 0 : index
    %c0_9 = arith.constant 0 : index
    %11 = vector.load %arg4[%c0_8, %c0_9] : memref<1024x128xbf16, #tpu.memory_space<vmem>>, vector<1024x128xbf16>
    %cst_10 = arith.constant dense<0.000000e+00> : vector<8x128xf32>
    %12 = tpu.matmul %10, %11, %cst_10 {dimension_numbers = #tpu.dot_dimension_numbers<[1], [0], [0], [1], [0, 0, 1, 1], [], []>} : vector<8x1024xbf16>, vector<1024x128xbf16>, vector<8x128xf32> -> vector<8x128xf32>
    %c0_11 = arith.constant 0 : index
    %c0_12 = arith.constant 0 : index
    %13 = vector.load %arg5[%c0_11, %c0_12] : memref<1x128xf32, #tpu.memory_space<vmem>>, vector<1x128xf32>
    %14 = vector.broadcast %13 : vector<1x128xf32> to vector<8x128xf32>
    %15 = arith.addf %12, %14 : vector<8x128xf32>
    %c0_13 = arith.constant 0 : index
    %c0_14 = arith.constant 0 : index
    %16 = vector.load %arg6[%c0_13, %c0_14] : memref<8x128xf32, #tpu.memory_space<vmem>>, vector<8x128xf32>
    tpu.vector_store %arg6[%c0_13, %c0_14], %15 {strides = array<i32>} : memref<8x128xf32, #tpu.memory_space<vmem>>, vector<8x128xf32>,
    return
  }
  func.func @transform_0(%arg0: i32) -> (i32, i32) {
    %c0_i32 = arith.constant 0 : i32
    %c0_i32_0 = arith.constant 0 : i32
    return %arg0, %c0_i32 : i32, i32
  }
  func.func @transform_1(%arg0: i32) -> (i32, i32) {
    %c0_i32 = arith.constant 0 : i32
    %c0_i32_0 = arith.constant 0 : i32
    %c0_i32_1 = arith.constant 0 : i32
    return %c0_i32, %c0_i32_0 : i32, i32
  }
  func.func @transform_2(%arg0: i32) -> (i32, i32) {
    %c0_i32 = arith.constant 0 : i32
    %c0_i32_0 = arith.constant 0 : i32
    %c0_i32_1 = arith.constant 0 : i32
    return %c0_i32, %c0_i32_0 : i32, i32
  }
  func.func @transform_3(%arg0: i32) -> (i32, i32) {
    %c0_i32 = arith.constant 0 : i32
    %c0_i32_0 = arith.constant 0 : i32
    %c0_i32_1 = arith.constant 0 : i32
    return %c0_i32, %c0_i32_0 : i32, i32
  }
  func.func @transform_4(%arg0: i32) -> (i32, i32) {
    %c0_i32 = arith.constant 0 : i32
    %c0_i32_0 = arith.constant 0 : i32
    %c0_i32_1 = arith.constant 0 : i32
    return %c0_i32, %c0_i32_0 : i32, i32
  }
  func.func @transform_5(%arg0: i32) -> (i32, i32) {
    %c0_i32 = arith.constant 0 : i32
    %c0_i32_0 = arith.constant 0 : i32
    return %arg0, %c0_i32 : i32, i32
  }
}

</mosaic_0001>

<bundles_post_ra>
// kernel: tpu_custom_call.1
= control target key start
LH: loop header
LB: loop body
LE: loop exit
PB: predicated region body
PF: predicated region fallthrough
CT: control target
= control target key end

     0   :  { %10 = vsyncpa [#allocation3], 0  ;;  %s10078_s0 = inlined_call_operand.hbm [shape: bf16[8,1024], index: 0, kind: input, shape index: {}]   ;;  %s10079_s1 = inlined_call_operand.hbm [shape: bf16[1024,1024], index: 1, kind: input, shape index: {}]   ;;  %s10080_s2 = inlined_call_operand.hbm [shape: bf16[1024,1024], index: 2, kind: input, shape index: {}]   ;;  %s10081_s3 = inlined_call_operand.hbm [shape: bf16[1024,128], index: 3, kind: input, shape index: {}]   ;;  %s10082_s4 = inlined_call_operand.hbm [shape: f32[1,128], index: 4, kind: input, shape index: {}]   ;;  %s10083_s5 = inlined_call_operand.hbm [shape: f32[8,128], index: 5, kind: output, shape index: {}]  }
   0x1   :  { %11 = vsyncpa [#allocation6], 0 }
   0x2   :  { %12 = vsyncpa [#allocation9], 0 }
   0x3   :  { %13 = vsyncpa [#allocation4], 0  ;;  %s9806_s18 = smov [#allocation5]   ;;  %s9666_s22 = scalar_lea.hbm %s10079_s1, 65536 }
   0x4   :  { %s29_s19 = sshll.u32 %s9806_s18, 4  ;;  %p9667_p0 = scmp.ne.s32.totalorder %s10079_s1, %s9666_s22  ;;  %s30_s19 = int_to_ptr.vmem [resolvable:$true] %s29_s19 }
   0x5   :  { %p9670_p1 = scmp.lt.u32.totalorder %s9666_s22, %s10079_s1 }
   0x7   :  { %p9672_p2 = pnand %p9670_p1, %p9667_p0 }
   0x9   :  { %9675 = shalt.err (!%p9672_p2)
}
   0xa   :  { %s9676_s27 = scalar_lea.vmem %s30_s19, 65536  ;;  %p9681_p4 = scmp.lt.s32.totalorder %s30_s19, %s30_s19 }
   0xb   :  { %p9677_p3 = scmp.ne.s32.totalorder %s30_s19, %s9676_s27  ;;  %p9682_p5 = scmp.lt.s32.totalorder %s9676_s27, %s9676_s27 }
   0xd   :  { %p9683_p6 = por %p9682_p5, %p9681_p4 }
   0xf   :  { %p9684_p7 = pnand %p9683_p6, %p9677_p3 }
  0x11   :  { %9687 = shalt.err (!%p9684_p7)
}
  0x12   :  { %s9807_s28 = smov 512   ;;  %s9808_s29 = smov 32  }
  0x13   :  { %35 = dma.hbm_to_vmem [thread:$0]  %s10079_s1, 65536, %s30_s19, [#allocation6], %s9807_s28, %s9807_s28, %s9808_s29  }
  0x14   :  { %s9809_s7 = smov [#allocation8]   ;;  %s9688_s11 = scalar_lea.hbm %s10081_s3, 8192 }
  0x15   :  { %s53_s8 = sshll.u32 %s9809_s7, 4  ;;  %p9689_p8 = scmp.ne.s32.totalorder %s10081_s3, %s9688_s11  ;;  %s54_s8 = int_to_ptr.vmem [resolvable:$true] %s53_s8 }
  0x16   :  { %p9692_p9 = scmp.lt.u32.totalorder %s9688_s11, %s10081_s3 }
  0x18   :  { %p9694_p10 = pnand %p9692_p9, %p9689_p8 }
  0x1a   :  { %9697 = shalt.err (!%p9694_p10)
}
  0x1b   :  { %s9698_s16 = scalar_lea.vmem %s54_s8, 8192  ;;  %p9703_p12 = scmp.lt.s32.totalorder %s54_s8, %s54_s8 }
  0x1c   :  { %p9699_p11 = scmp.ne.s32.totalorder %s54_s8, %s9698_s16  ;;  %p9704_p13 = scmp.lt.s32.totalorder %s9698_s16, %s9698_s16 }
  0x1e   :  { %p9705_p0 = por %p9704_p13, %p9703_p12 }
  0x20   :  { %p9706_p1 = pnand %p9705_p0, %p9699_p11 }
  0x22   :  { %9709 = shalt.err (!%p9706_p1)
}
  0x23   :  { %s9810_s1 = smov 64   ;;  %s9811_s17 = smov 4  }
  0x24   :  { %59 = dma.hbm_to_vmem [thread:$0]  %s10081_s3, 8192, %s54_s8, [#allocation9], %s9810_s1, %s9810_s1, %s9811_s17  }
  0x25   :  { %s9812_s20 = smov [#allocation2]   ;;  %s9813_s22 = smov [#allocation7]  }
  0x26   :  { %s20_s21 = sshll.u32 %s9812_s20, 4  ;;  %s41_s23 = sshll.u32 %s9813_s22, 4  ;;  %s21_s21 = int_to_ptr.vmem [resolvable:$true] %s20_s21  ;;  %s9873_s23 = int_to_ptr.vmem [resolvable:$true] %s41_s23 }
  0x27   :  { %s9710_s26 = scalar_lea.hbm %s10078_s0, 512 }
  0x28   :  { %p9711_p2 = scmp.ne.s32.totalorder %s10078_s0, %s9710_s26  ;;  %p9714_p3 = scmp.lt.u32.totalorder %s9710_s26, %s10078_s0 }
  0x2a   :  { %p9716_p4 = pnand %p9714_p3, %p9711_p2 }
  0x2c   :  { %9719 = shalt.err (!%p9716_p4)
}
  0x2d   :  { %s9720_s3 = scalar_lea.vmem %s21_s21, 512  ;;  %p9725_p6 = scmp.lt.s32.totalorder %s21_s21, %s21_s21 }
  0x2e   :  { %p9721_p5 = scmp.ne.s32.totalorder %s21_s21, %s9720_s3  ;;  %p9726_p7 = scmp.lt.s32.totalorder %s9720_s3, %s9720_s3 }
  0x30   :  { %p9727_p8 = por %p9726_p7, %p9725_p6 }
  0x32   :  { %p9728_p9 = pnand %p9727_p8, %p9721_p5 }
  0x34   :  { %9731 = shalt.err (!%p9728_p9)
}
  0x35   :  { %23 = dma.hbm_to_vmem [thread:$0]  %s10078_s0, 512, %s21_s21, [#allocation3]  }
  0x36   :  { %s9732_s12 = scalar_lea.hbm %s10080_s2, 65536 }
  0x37   :  { %p9733_p10 = scmp.ne.s32.totalorder %s10080_s2, %s9732_s12  ;;  %p9736_p11 = scmp.lt.u32.totalorder %s9732_s12, %s10080_s2 }
  0x39   :  { %p9738_p12 = pnand %p9736_p11, %p9733_p10 }
  0x3b   :  { %9741 = shalt.err (!%p9738_p12)
}
  0x3c   :  { %s9742_s1 = scalar_lea.vmem %s9873_s23, 65536  ;;  %p9747_p0 = scmp.lt.s32.totalorder %s9873_s23, %s9873_s23 }
  0x3d   :  { %p9743_p13 = scmp.ne.s32.totalorder %s9873_s23, %s9742_s1  ;;  %p9748_p1 = scmp.lt.s32.totalorder %s9742_s1, %s9742_s1 }
  0x3f   :  { %p9749_p2 = por %p9748_p1, %p9747_p0 }
  0x41   :  { %p9750_p3 = pnand %p9749_p2, %p9743_p13 }
  0x43   :  { %9753 = shalt.err (!%p9750_p3)
}
  0x44   :  { %47 = dma.hbm_to_vmem [thread:$0]  %s10080_s2, 65536, %s9873_s23, [#allocation6], %s9807_s28, %s9807_s28, %s9808_s29  }
  0x45   :  { %s9814_s18 = smov [#allocation10]   ;;  %s9754_s22 = scalar_lea.hbm %s10082_s4, 16 }
  0x46   :  { %s66_s19 = sshll.u32 %s9814_s18, 4  ;;  %p9755_p4 = scmp.ne.s32.totalorder %s10082_s4, %s9754_s22  ;;  %s67_s19 = int_to_ptr.vmem [resolvable:$true] %s66_s19 }
  0x47   :  { %p9758_p5 = scmp.lt.u32.totalorder %s9754_s22, %s10082_s4 }
  0x49   :  { %p9760_p6 = pnand %p9758_p5, %p9755_p4 }
  0x4b   :  { %9763 = shalt.err (!%p9760_p6)
}
  0x4c   :  { %s9764_s30 = scalar_lea.vmem %s67_s19, 16  ;;  %s9768_s2 = scalar_lea.vmem %s67_s19, 32 }
  0x4d   :  { %p9765_p7 = scmp.ne.s32.totalorder %s67_s19, %s9764_s30  ;;  %p9769_p8 = scmp.lt.s32.totalorder %s67_s19, %s67_s19 }
  0x4e   :  { %p9770_p9 = scmp.lt.s32.totalorder %s9768_s2, %s9764_s30 }
  0x50   :  { %p9771_p10 = por %p9770_p9, %p9769_p8 }
  0x52   :  { %p9772_p11 = pnand %p9771_p10, %p9765_p7 }
  0x54   :  { %9775 = shalt.err (!%p9772_p11)
}
  0x55   :  { %69 = dma.hbm_to_vmem [thread:$0]  %s10082_s4, 16, %s67_s19, [#allocation9]  }
  0x56   :  { %9798 = dma.done.wait [#allocation3], 512  }
  0x57   :  { %9799 = vsyncadd [#allocation3], 4294966784 }
  0x58   :  { %9800 = dma.done.wait [#allocation6], 131072  }
  0x59   :  { %9801 = vsyncadd [#allocation6], 4294836224 }
  0x5a   :  { %9802 = dma.done.wait [#allocation9], 8208  }
  0x5b   :  { %9803 = vsyncadd [#allocation9], 4294959088  ;;  %v90_v0 = vld [vmem:[#allocation5] sm:$0xff]  ;;  %v91_v2 = vld [vmem:[#allocation5 + $0x8] sm:$0xff]  ;;  %s9815_s4 = smov [#allocation11]  }
  0x5c   :  { %v94_v1 = vld [vmem:[#allocation5 + $0x20] sm:$0xff]  ;;  %v95_v4 = vld [vmem:[#allocation5 + $0x28] sm:$0xff]  ;;  %s8292_s23 = sshll.u32 %s9815_s4, 4  ;;  %s8293_s23 = int_to_ptr.vmem [resolvable:$true] %s8292_s23 }
  0x5d   :  { %v8312_v3 = vcombine.high %v90_v0, %v94_v1  ;;  %v8311_v5 = vcombine.low %v90_v0, %v94_v1  ;;  %v98_v6 = vld [vmem:[#allocation5 + $0x40] sm:$0xff]  ;;  %v8314_v8 = vcombine.high %v91_v2, %v95_v4  ;;  %v8313_v9 = vcombine.low %v91_v2, %v95_v4  ;;  %v99_v11 = vld [vmem:[#allocation5 + $0x48] sm:$0xff]  ;;  %s9776_s6 = scalar_lea.vmem %s8293_s23, 128  ;;  %p9781_p13 = scmp.lt.s32.totalorder %s8293_s23, %s8293_s23 }
  0x5e   :  { %v102_v7 = vld [vmem:[#allocation5 + $0x60] sm:$0xff]  ;;  %v103_v12 = vld [vmem:[#allocation5 + $0x68] sm:$0xff]  ;;  %p9777_p12 = scmp.ne.s32.totalorder %s8293_s23, %s9776_s6  ;;  %p9782_p0 = scmp.lt.s32.totalorder %s9776_s6, %s9776_s6 }
  0x5f   :  { %v8320_v10 = vcombine.high %v98_v6, %v102_v7  ;;  %v106_v13 = vld [vmem:[#allocation5 + $0x80] sm:$0xff]  ;;  %3190 = vmatprep.subr.bf16.mxu0 %v8312_v3  ;;  %v8322_v14 = vcombine.high %v99_v11, %v103_v12  ;;  %v107_v16 = vld [vmem:[#allocation5 + $0x88] sm:$0xff]  ;;  %3354 = vmatprep.subr.bf16.mxu1 %v8314_v8  ;;  %v8319_v18 = vcombine.low %v98_v6, %v102_v7 }
  0x60   :  { %v110_v15 = vld [vmem:[#allocation5 + $0xa0] sm:$0xff]  ;;  %v111_v17 = vld [vmem:[#allocation5 + $0xa8] sm:$0xff]  ;;  %3191 = vmatpush1.bf16.msra.mxu0 %v8311_v5  ;;  %3355 = vmatpush1.bf16.msra.mxu1 %v8313_v9  ;;  %v8321_v19 = vcombine.low %v99_v11, %v103_v12  ;;  %p9783_p1 = por %p9782_p0, %p9781_p13 }
  0x61   :  { %3192 = vmatprep.subr.bf16.mxu0 %v8320_v10  ;;  %v8328_v20 = vcombine.high %v106_v13, %v110_v15  ;;  %3356 = vmatprep.subr.bf16.mxu1 %v8322_v14  ;;  %v8330_v21 = vcombine.high %v107_v16, %v111_v17  ;;  %v114_v22 = vld [vmem:[#allocation5 + $0xc0] sm:$0xff]  ;;  %v115_v24 = vld [vmem:[#allocation5 + $0xc8] sm:$0xff]  ;;  %v8327_v26 = vcombine.low %v106_v13, %v110_v15 }
  0x62   :  { %v118_v23 = vld [vmem:[#allocation5 + $0xe0] sm:$0xff]  ;;  %v119_v25 = vld [vmem:[#allocation5 + $0xe8] sm:$0xff]  ;;  %v8329_v27 = vcombine.low %v107_v16, %v111_v17  ;;  %p9784_p2 = pnand %p9783_p1, %p9777_p12 }
  0x63   :  { %v8336_v28 = vcombine.high %v114_v22, %v118_v23  ;;  %v8338_v29 = vcombine.high %v115_v24, %v119_v25  ;;  %v122_v30 = vld [vmem:[#allocation5 + $0x100] sm:$0xff]  ;;  %v123_v32 = vld [vmem:[#allocation5 + $0x108] sm:$0xff]  ;;  %v8335_v34 = vcombine.low %v114_v22, %v118_v23  ;;  %v8337_v35 = vcombine.low %v115_v24, %v119_v25 }
  0x64   :  { %3193 = vmatpush1.bf16.msra.mxu0 %v8319_v18  ;;  %3357 = vmatpush1.bf16.msra.mxu1 %v8321_v19  ;;  %v126_v31 = vld [vmem:[#allocation5 + $0x120] sm:$0xff]  ;;  %v127_v33 = vld [vmem:[#allocation5 + $0x128] sm:$0xff] }
  0x65   :  { %3194 = vmatprep.subr.bf16.mxu0 %v8328_v20  ;;  %3358 = vmatprep.subr.bf16.mxu1 %v8330_v21  ;;  %v8344_v36 = vcombine.high %v122_v30, %v126_v31  ;;  %v8346_v37 = vcombine.high %v123_v32, %v127_v33  ;;  %v130_v38 = vld [vmem:[#allocation5 + $0x140] sm:$0xff]  ;;  %v131_v40 = vld [vmem:[#allocation5 + $0x148] sm:$0xff]  ;;  %v8343_v42 = vcombine.low %v122_v30, %v126_v31 }
  0x66   :  { %v134_v39 = vld [vmem:[#allocation5 + $0x160] sm:$0xff]  ;;  %v135_v41 = vld [vmem:[#allocation5 + $0x168] sm:$0xff]  ;;  %v8345_v43 = vcombine.low %v123_v32, %v127_v33 }
  0x67   :  { %v8352_v44 = vcombine.high %v130_v38, %v134_v39  ;;  %v8354_v45 = vcombine.high %v131_v40, %v135_v41  ;;  %v138_v46 = vld [vmem:[#allocation5 + $0x180] sm:$0xff]  ;;  %v139_v48 = vld [vmem:[#allocation5 + $0x188] sm:$0xff]  ;;  %v8351_v50 = vcombine.low %v130_v38, %v134_v39  ;;  %v8353_v51 = vcombine.low %v131_v40, %v135_v41 }
  0x68   :  { %3195 = vmatpush1.bf16.msra.mxu0 %v8327_v26  ;;  %3359 = vmatpush1.bf16.msra.mxu1 %v8329_v27  ;;  %v142_v47 = vld [vmem:[#allocation5 + $0x1a0] sm:$0xff]  ;;  %v143_v49 = vld [vmem:[#allocation5 + $0x1a8] sm:$0xff] }
  0x69   :  { %3196 = vmatprep.subr.bf16.mxu0 %v8336_v28  ;;  %3360 = vmatprep.subr.bf16.mxu1 %v8338_v29  ;;  %v8360_v52 = vcombine.high %v138_v46, %v142_v47  ;;  %v9919_v53 = vld [vmem:[#allocation2] sm:$0xff]  ;;  %v8362_v54 = vcombine.high %v139_v48, %v143_v49  ;;  %v147_v58 = vld [vmem:[#allocation5 + $0x1c8] sm:$0xff]  ;;  %v8359_v60 = vcombine.low %v138_v46, %v142_v47 }
  0x6a   :  { %v146_v55 = vld [vmem:[#allocation5 + $0x1c0] sm:$0xff]  ;;  %v9923_v57 = vcombine.high %v9919_v53, %v9919_v53  ;;  %v151_v59 = vld [vmem:[#allocation5 + $0x1e8] sm:$0xff]  ;;  %v8361_v61 = vcombine.low %v139_v48, %v143_v49 }
  0x6b   :  { %v150_v56 = vld [vmem:[#allocation5 + $0x1e0] sm:$0xff]  ;;  %v8370_v63 = vcombine.high %v147_v58, %v151_v59  ;;  %v155_v2 = vld [vmem:[#allocation5 + $0x208] sm:$0xff]  ;;  %v8369_v5 = vcombine.low %v147_v58, %v151_v59 }
  0x6c   :  { %3197 = vmatpush1.bf16.msra.mxu0 %v8335_v34  ;;  %3361 = vmatpush1.bf16.msra.mxu1 %v8337_v35  ;;  %v8368_v62 = vcombine.high %v146_v55, %v150_v56  ;;  %v154_v0 = vld [vmem:[#allocation5 + $0x200] sm:$0xff]  ;;  %v159_v3 = vld [vmem:[#allocation5 + $0x228] sm:$0xff]  ;;  %v8367_v4 = vcombine.low %v146_v55, %v150_v56 }
  0x6d   :  { %3198 = vmatprep.subr.bf16.mxu0 %v8344_v36  ;;  %3362 = vmatprep.subr.bf16.mxu1 %v8346_v37  ;;  %v158_v1 = vld [vmem:[#allocation5 + $0x220] sm:$0xff]  ;;  %v8378_v7 = vcombine.high %v155_v2, %v159_v3  ;;  %v163_v10 = vld [vmem:[#allocation5 + $0x248] sm:$0xff]  ;;  %v8377_v13 = vcombine.low %v155_v2, %v159_v3 }
  0x6e   :  { %3222 = vmatprep.mubr.bf16.mxu0 %v9923_v57  ;;  %3386 = vmatprep.mubr.bf16.mxu1 %v9923_v57  ;;  %v8376_v6 = vcombine.high %v154_v0, %v158_v1  ;;  %v162_v8 = vld [vmem:[#allocation5 + $0x240] sm:$0xff]  ;;  %v167_v11 = vld [vmem:[#allocation5 + $0x268] sm:$0xff]  ;;  %v8375_v12 = vcombine.low %v154_v0, %v158_v1 }
  0x6f   :  { %v166_v9 = vld [vmem:[#allocation5 + $0x260] sm:$0xff]  ;;  %v8386_v15 = vcombine.high %v163_v10, %v167_v11  ;;  %v171_v18 = vld [vmem:[#allocation5 + $0x288] sm:$0xff]  ;;  %v8385_v21 = vcombine.low %v163_v10, %v167_v11 }
  0x70   :  { %3199 = vmatpush1.bf16.msra.mxu0 %v8343_v42  ;;  %3363 = vmatpush1.bf16.msra.mxu1 %v8345_v43  ;;  %v8384_v14 = vcombine.high %v162_v8, %v166_v9  ;;  %v170_v16 = vld [vmem:[#allocation5 + $0x280] sm:$0xff]  ;;  %v175_v19 = vld [vmem:[#allocation5 + $0x2a8] sm:$0xff]  ;;  %v8383_v20 = vcombine.low %v162_v8, %v166_v9 }
  0x71   :  { %3200 = vmatprep.subr.bf16.mxu0 %v8352_v44  ;;  %3364 = vmatprep.subr.bf16.mxu1 %v8354_v45  ;;  %v174_v17 = vld [vmem:[#allocation5 + $0x2a0] sm:$0xff]  ;;  %v8394_v23 = vcombine.high %v171_v18, %v175_v19  ;;  %v179_v26 = vld [vmem:[#allocation5 + $0x2c8] sm:$0xff]  ;;  %v8393_v29 = vcombine.low %v171_v18, %v175_v19 }
  0x72   :  { %v8392_v22 = vcombine.high %v170_v16, %v174_v17  ;;  %v178_v24 = vld [vmem:[#allocation5 + $0x2c0] sm:$0xff]  ;;  %v183_v27 = vld [vmem:[#allocation5 + $0x2e8] sm:$0xff]  ;;  %v8391_v28 = vcombine.low %v170_v16, %v174_v17 }
  0x73   :  { %v182_v25 = vld [vmem:[#allocation5 + $0x2e0] sm:$0xff]  ;;  %v8402_v31 = vcombine.high %v179_v26, %v183_v27  ;;  %v187_v34 = vld [vmem:[#allocation5 + $0x308] sm:$0xff]  ;;  %v8401_v37 = vcombine.low %v179_v26, %v183_v27 }
  0x74   :  { %3201 = vmatpush1.bf16.msra.mxu0 %v8351_v50  ;;  %3365 = vmatpush1.bf16.msra.mxu1 %v8353_v51  ;;  %v8400_v30 = vcombine.high %v178_v24, %v182_v25  ;;  %v186_v32 = vld [vmem:[#allocation5 + $0x300] sm:$0xff]  ;;  %v191_v35 = vld [vmem:[#allocation5 + $0x328] sm:$0xff]  ;;  %v8399_v36 = vcombine.low %v178_v24, %v182_v25 }
  0x75   :  { %3202 = vmatprep.subr.bf16.mxu0 %v8360_v52  ;;  %3366 = vmatprep.subr.bf16.mxu1 %v8362_v54  ;;  %v190_v33 = vld [vmem:[#allocation5 + $0x320] sm:$0xff]  ;;  %v8410_v39 = vcombine.high %v187_v34, %v191_v35  ;;  %v195_v42 = vld [vmem:[#allocation5 + $0x348] sm:$0xff]  ;;  %v8409_v45 = vcombine.low %v187_v34, %v191_v35 }
  0x76   :  { %v8408_v38 = vcombine.high %v186_v32, %v190_v33  ;;  %v194_v40 = vld [vmem:[#allocation5 + $0x340] sm:$0xff]  ;;  %v199_v43 = vld [vmem:[#allocation5 + $0x368] sm:$0xff]  ;;  %v8407_v44 = vcombine.low %v186_v32, %v190_v33 }
  0x77   :  { %v198_v41 = vld [vmem:[#allocation5 + $0x360] sm:$0xff]  ;;  %v8418_v47 = vcombine.high %v195_v42, %v199_v43  ;;  %v203_v50 = vld [vmem:[#allocation5 + $0x388] sm:$0xff]  ;;  %v8417_v54 = vcombine.low %v195_v42, %v199_v43 }
  0x78   :  { %3203 = vmatpush1.bf16.msra.mxu0 %v8359_v60  ;;  %3367 = vmatpush1.bf16.msra.mxu1 %v8361_v61  ;;  %v8416_v46 = vcombine.high %v194_v40, %v198_v41  ;;  %v202_v48 = vld [vmem:[#allocation5 + $0x380] sm:$0xff]  ;;  %v207_v51 = vld [vmem:[#allocation5 + $0x3a8] sm:$0xff]  ;;  %v8415_v52 = vcombine.low %v194_v40, %v198_v41 }
  0x79   :  { %3204 = vmatprep.subr.bf16.mxu0 %v8368_v62  ;;  %3368 = vmatprep.subr.bf16.mxu1 %v8370_v63  ;;  %v206_v49 = vld [vmem:[#allocation5 + $0x3a0] sm:$0xff]  ;;  %v8426_v56 = vcombine.high %v203_v50, %v207_v51  ;;  %v211_v60 = vld [vmem:[#allocation5 + $0x3c8] sm:$0xff]  ;;  %v8425_v63 = vcombine.low %v203_v50, %v207_v51 }
  0x7a   :  { %v8424_v55 = vcombine.high %v202_v48, %v206_v49  ;;  %v210_v58 = vld [vmem:[#allocation5 + $0x3c0] sm:$0xff]  ;;  %v215_v61 = vld [vmem:[#allocation5 + $0x3e8] sm:$0xff]  ;;  %v8423_v62 = vcombine.low %v202_v48, %v206_v49 }
  0x7b   :  { %v214_v59 = vld [vmem:[#allocation5 + $0x3e0] sm:$0xff]  ;;  %v8434_v1 = vcombine.high %v211_v60, %v215_v61 }
  0x7c   :  { %3205 = vmatpush1.bf16.msra.mxu0 %v8367_v4  ;;  %3369 = vmatpush1.bf16.msra.mxu1 %v8369_v5  ;;  %v8432_v0 = vcombine.high %v210_v58, %v214_v59  ;;  %v218_v2 = vld [vmem:[#allocation5 + $0x400] sm:$0xff]  ;;  %v219_v4 = vld [vmem:[#allocation5 + $0x408] sm:$0xff] }
  0x7d   :  { %3206 = vmatprep.subr.bf16.mxu0 %v8376_v6  ;;  %3370 = vmatprep.subr.bf16.mxu1 %v8378_v7  ;;  %v222_v3 = vld [vmem:[#allocation5 + $0x420] sm:$0xff]  ;;  %v223_v5 = vld [vmem:[#allocation5 + $0x428] sm:$0xff]  ;;  %v8431_v6 = vcombine.low %v210_v58, %v214_v59  ;;  %v8433_v7 = vcombine.low %v211_v60, %v215_v61 }
  0x7e   :  { %v8440_v8 = vcombine.high %v218_v2, %v222_v3  ;;  %v8442_v9 = vcombine.high %v219_v4, %v223_v5  ;;  %v226_v10 = vld [vmem:[#allocation5 + $0x440] sm:$0xff]  ;;  %v8439_v16 = vcombine.low %v218_v2, %v222_v3  ;;  %v8441_v17 = vcombine.low %v219_v4, %v223_v5 }
  0x7f   :  { %v230_v11 = vld [vmem:[#allocation5 + $0x460] sm:$0xff] }
  0x80   :  { %3207 = vmatpush1.bf16.msra.mxu0 %v8375_v12  ;;  %3371 = vmatpush1.bf16.msra.mxu1 %v8377_v13  ;;  %v9929_v12 = vcombine.low %v9919_v53, %v9919_v53  ;;  %v227_v13 = vld [vmem:[#allocation5 + $0x448] sm:$0xff]  ;;  %v8448_v18 = vcombine.high %v226_v10, %v230_v11  ;;  %v234_v19 = vld [vmem:[#allocation5 + $0x480] sm:$0xff]  ;;  %v8447_v24 = vcombine.low %v226_v10, %v230_v11 }
  0x81   :  { %3208 = vmatprep.subr.bf16.mxu0 %v8384_v14  ;;  %3372 = vmatprep.subr.bf16.mxu1 %v8386_v15  ;;  %v231_v14 = vld [vmem:[#allocation5 + $0x468] sm:$0xff]  ;;  %v242_v27 = vld [vmem:[#allocation5 + $0x4c0] sm:$0xff] }
  0x82   :  { %v9931_v15 = vld [vmem:[#allocation2 + $0x8] sm:$0xff]  ;;  %v8449_v25 = vcombine.low %v227_v13, %v231_v14  ;;  %v250_v35 = vld [vmem:[#allocation5 + $0x500] sm:$0xff] }
  0x83   :  { %v9935_v53 = vcombine.high %v9931_v15, %v9931_v15  ;;  %v258_v43 = vld [vmem:[#allocation5 + $0x540] sm:$0xff] }
  0x84   :  { %3209 = vmatpush1.bf16.msra.mxu0 %v8383_v20  ;;  %3373 = vmatpush1.bf16.msra.mxu1 %v8385_v21  ;;  %v238_v20 = vld [vmem:[#allocation5 + $0x4a0] sm:$0xff]  ;;  %v8450_v21 = vcombine.high %v227_v13, %v231_v14 }
  0x85   :  { %3210 = vmatprep.subr.bf16.mxu0 %v8392_v22  ;;  %3374 = vmatprep.subr.bf16.mxu1 %v8394_v23  ;;  %v235_v22 = vld [vmem:[#allocation5 + $0x488] sm:$0xff]  ;;  %v8456_v26 = vcombine.high %v234_v19, %v238_v20  ;;  %v8455_v32 = vcombine.low %v234_v19, %v238_v20  ;;  %v266_v51 = vld [vmem:[#allocation5 + $0x580] sm:$0xff] }
  0x86   :  { %v239_v23 = vld [vmem:[#allocation5 + $0x4a8] sm:$0xff]  ;;  %v274_v61 = vld [vmem:[#allocation5 + $0x5c0] sm:$0xff] }
  0x87   :  { %v8457_v33 = vcombine.low %v235_v22, %v239_v23  ;;  %v282_v5 = vld [vmem:[#allocation5 + $0x600] sm:$0xff]  ;;  %v295_v19 = vld [vmem:[#allocation5 + $0x668] sm:$0xff] }
  0x88   :  { %3211 = vmatpush1.bf16.msra.mxu0 %v8391_v28  ;;  %3375 = vmatpush1.bf16.msra.mxu1 %v8393_v29  ;;  %v246_v28 = vld [vmem:[#allocation5 + $0x4e0] sm:$0xff]  ;;  %v243_v29 = vld [vmem:[#allocation5 + $0x4c8] sm:$0xff] }
  0x89   :  { %3212 = vmatprep.subr.bf16.mxu0 %v8400_v30  ;;  %3376 = vmatprep.subr.bf16.mxu1 %v8402_v31  ;;  %v8458_v30 = vcombine.high %v235_v22, %v239_v23  ;;  %v247_v31 = vld [vmem:[#allocation5 + $0x4e8] sm:$0xff]  ;;  %v8464_v34 = vcombine.high %v242_v27, %v246_v28  ;;  %v8463_v40 = vcombine.low %v242_v27, %v246_v28  ;;  %v290_v14 = vld [vmem:[#allocation5 + $0x640] sm:$0xff] }
  0x8a   :  { %v8465_v41 = vcombine.low %v243_v29, %v247_v31  ;;  %v298_v23 = vld [vmem:[#allocation5 + $0x680] sm:$0xff]  ;;  %v303_v27 = vld [vmem:[#allocation5 + $0x6a8] sm:$0xff] }
  0x8c   :  { %3213 = vmatpush1.bf16.msra.mxu0 %v8399_v36  ;;  %3377 = vmatpush1.bf16.msra.mxu1 %v8401_v37  ;;  %v254_v36 = vld [vmem:[#allocation5 + $0x520] sm:$0xff]  ;;  %v251_v37 = vld [vmem:[#allocation5 + $0x508] sm:$0xff] }
  0x8d   :  { %3214 = vmatprep.subr.bf16.mxu0 %v8408_v38  ;;  %3378 = vmatprep.subr.bf16.mxu1 %v8410_v39  ;;  %v8466_v38 = vcombine.high %v243_v29, %v247_v31  ;;  %v255_v39 = vld [vmem:[#allocation5 + $0x528] sm:$0xff]  ;;  %v8472_v42 = vcombine.high %v250_v35, %v254_v36  ;;  %v8471_v48 = vcombine.low %v250_v35, %v254_v36  ;;  %v306_v31 = vld [vmem:[#allocation5 + $0x6c0] sm:$0xff] }
  0x8e   :  { %v8473_v49 = vcombine.low %v251_v37, %v255_v39  ;;  %v311_v35 = vld [vmem:[#allocation5 + $0x6e8] sm:$0xff] }
  0x90   :  { %3215 = vmatpush1.bf16.msra.mxu0 %v8407_v44  ;;  %3379 = vmatpush1.bf16.msra.mxu1 %v8409_v45  ;;  %v262_v44 = vld [vmem:[#allocation5 + $0x560] sm:$0xff]  ;;  %v259_v45 = vld [vmem:[#allocation5 + $0x548] sm:$0xff] }
  0x91   :  { %3216 = vmatprep.subr.bf16.mxu0 %v8416_v46  ;;  %3380 = vmatprep.subr.bf16.mxu1 %v8418_v47  ;;  %v8474_v46 = vcombine.high %v251_v37, %v255_v39  ;;  %v263_v47 = vld [vmem:[#allocation5 + $0x568] sm:$0xff]  ;;  %v8480_v50 = vcombine.high %v258_v43, %v262_v44  ;;  %v8479_v58 = vcombine.low %v258_v43, %v262_v44  ;;  %v314_v39 = vld [vmem:[#allocation5 + $0x700] sm:$0xff] }
  0x92   :  { %v8481_v59 = vcombine.low %v259_v45, %v263_v47  ;;  %v319_v43 = vld [vmem:[#allocation5 + $0x728] sm:$0xff] }
  0x94   :  { %3217 = vmatpush1.bf16.msra.mxu0 %v8415_v52  ;;  %3381 = vmatpush1.bf16.msra.mxu1 %v8417_v54  ;;  %v270_v52 = vld [vmem:[#allocation5 + $0x5a0] sm:$0xff]  ;;  %v267_v54 = vld [vmem:[#allocation5 + $0x588] sm:$0xff] }
  0x95   :  { %3218 = vmatprep.subr.bf16.mxu0 %v8424_v55  ;;  %3382 = vmatprep.subr.bf16.mxu1 %v8426_v56  ;;  %v8482_v55 = vcombine.high %v259_v45, %v263_v47  ;;  %v271_v56 = vld [vmem:[#allocation5 + $0x5a8] sm:$0xff]  ;;  %v8488_v60 = vcombine.high %v266_v51, %v270_v52  ;;  %v8487_v2 = vcombine.low %v266_v51, %v270_v52  ;;  %v322_v47 = vld [vmem:[#allocation5 + $0x740] sm:$0xff] }
  0x96   :  { %v8489_v3 = vcombine.low %v267_v54, %v271_v56  ;;  %v327_v51 = vld [vmem:[#allocation5 + $0x768] sm:$0xff] }
  0x98   :  { %3219 = vmatpush1.bf16.msra.mxu0 %v8423_v62  ;;  %3383 = vmatpush1.bf16.msra.mxu1 %v8425_v63  ;;  %v278_v62 = vld [vmem:[#allocation5 + $0x5e0] sm:$0xff]  ;;  %v275_v63 = vld [vmem:[#allocation5 + $0x5c8] sm:$0xff] }
  0x99   :  { %3220 = vmatprep.subr.bf16.mxu0 %v8432_v0  ;;  %3384 = vmatprep.subr.bf16.mxu1 %v8434_v1  ;;  %v8490_v0 = vcombine.high %v267_v54, %v271_v56  ;;  %v279_v1 = vld [vmem:[#allocation5 + $0x5e8] sm:$0xff]  ;;  %v8496_v4 = vcombine.high %v274_v61, %v278_v62  ;;  %v8495_v10 = vcombine.low %v274_v61, %v278_v62  ;;  %v330_v56 = vld [vmem:[#allocation5 + $0x780] sm:$0xff] }
  0x9a   :  { %v8497_v11 = vcombine.low %v275_v63, %v279_v1  ;;  %v335_v61 = vld [vmem:[#allocation5 + $0x7a8] sm:$0xff] }
  0x9c   :  { %3221 = vmatpush1.bf16.msra.mxu0 %v8431_v6  ;;  %3385 = vmatpush1.bf16.msra.mxu1 %v8433_v7  ;;  %v286_v6 = vld [vmem:[#allocation5 + $0x620] sm:$0xff]  ;;  %v283_v7 = vld [vmem:[#allocation5 + $0x608] sm:$0xff] }
  0x9d   :  { %3231 = vmatprep.subr.bf16.mxu0 %v8440_v8  ;;  %3395 = vmatprep.subr.bf16.mxu1 %v8442_v9  ;;  %v8498_v8 = vcombine.high %v275_v63, %v279_v1  ;;  %v287_v9 = vld [vmem:[#allocation5 + $0x628] sm:$0xff]  ;;  %v8504_v13 = vcombine.high %v282_v5, %v286_v6  ;;  %v8503_v20 = vcombine.low %v282_v5, %v286_v6  ;;  %v338_v1 = vld [vmem:[#allocation5 + $0x7c0] sm:$0xff] }
  0x9e   :  { %v343_v5 = vld [vmem:[#allocation5 + $0x7e8] sm:$0xff] }
  0x9f   :  { %3223 = vmatmul.mubr.bf16.vlgmr.msra.gmra.mrb[0].mxu0 %v9929_v12  ;;  %3387 = vmatmul.mubr.bf16.vlgmr.msra.gmra.mrb[0].mxu1 %v9929_v12 }
  0xa0   :  { %3232 = vmatpush1.bf16.msra.mxu0 %v8439_v16  ;;  %3396 = vmatpush1.bf16.msra.mxu1 %v8441_v17  ;;  %v294_v16 = vld [vmem:[#allocation5 + $0x660] sm:$0xff]  ;;  %v291_v17 = vld [vmem:[#allocation5 + $0x648] sm:$0xff] }
  0xa1   :  { %3233 = vmatprep.subr.bf16.mxu0 %v8448_v18  ;;  %3397 = vmatprep.subr.bf16.mxu1 %v8450_v21  ;;  %v8506_v18 = vcombine.high %v283_v7, %v287_v9  ;;  %v8505_v21 = vcombine.low %v283_v7, %v287_v9  ;;  %v8512_v22 = vcombine.high %v290_v14, %v294_v16  ;;  %v346_v9 = vld [vmem:[#allocation5 + $0x800] sm:$0xff] }
  0xa2   :  { %3263 = vmatprep.mubr.bf16.mxu0 %v9935_v53  ;;  %3427 = vmatprep.mubr.bf16.mxu1 %v9935_v53  ;;  %v8511_v28 = vcombine.low %v290_v14, %v294_v16  ;;  %v8513_v29 = vcombine.low %v291_v17, %v295_v19  ;;  %v351_v14 = vld [vmem:[#allocation5 + $0x828] sm:$0xff] }
  0xa4   :  { %3234 = vmatpush1.bf16.msra.mxu0 %v8447_v24  ;;  %3398 = vmatpush1.bf16.msra.mxu1 %v8449_v25  ;;  %v302_v24 = vld [vmem:[#allocation5 + $0x6a0] sm:$0xff]  ;;  %v299_v25 = vld [vmem:[#allocation5 + $0x688] sm:$0xff] }
  0xa5   :  { %3235 = vmatprep.subr.bf16.mxu0 %v8456_v26  ;;  %3399 = vmatprep.subr.bf16.mxu1 %v8458_v30  ;;  %v8514_v26 = vcombine.high %v291_v17, %v295_v19  ;;  %v8520_v30 = vcombine.high %v298_v23, %v302_v24  ;;  %v8519_v36 = vcombine.low %v298_v23, %v302_v24  ;;  %v354_v17 = vld [vmem:[#allocation5 + $0x840] sm:$0xff]  ;;  %v9941_v24 = vld [vmem:[#allocation2 + $0x10] sm:$0xff] }
  0xa6   :  { %v8521_v37 = vcombine.low %v299_v25, %v303_v27 }
  0xa8   :  { %3236 = vmatpush1.bf16.msra.mxu0 %v8455_v32  ;;  %3400 = vmatpush1.bf16.msra.mxu1 %v8457_v33  ;;  %v310_v32 = vld [vmem:[#allocation5 + $0x6e0] sm:$0xff]  ;;  %v307_v33 = vld [vmem:[#allocation5 + $0x6c8] sm:$0xff] }
  0xa9   :  { %3237 = vmatprep.subr.bf16.mxu0 %v8464_v34  ;;  %3401 = vmatprep.subr.bf16.mxu1 %v8466_v38  ;;  %v8522_v34 = vcombine.high %v299_v25, %v303_v27  ;;  %v8528_v38 = vcombine.high %v306_v31, %v310_v32  ;;  %v8527_v44 = vcombine.low %v306_v31, %v310_v32  ;;  %v366_v31 = vld [vmem:[#allocation5 + $0x8a0] sm:$0xff] }
  0xaa   :  { %v8529_v45 = vcombine.low %v307_v33, %v311_v35  ;;  %v9945_v25 = vcombine.low %v9931_v15, %v9931_v15  ;;  %v9949_v32 = vcombine.high %v9941_v24, %v9941_v24 }
  0xac   :  { %3238 = vmatpush1.bf16.msra.mxu0 %v8463_v40  ;;  %3402 = vmatpush1.bf16.msra.mxu1 %v8465_v41  ;;  %v318_v40 = vld [vmem:[#allocation5 + $0x720] sm:$0xff]  ;;  %v315_v41 = vld [vmem:[#allocation5 + $0x708] sm:$0xff] }
  0xad   :  { %3239 = vmatprep.subr.bf16.mxu0 %v8472_v42  ;;  %3403 = vmatprep.subr.bf16.mxu1 %v8474_v46  ;;  %v8530_v42 = vcombine.high %v307_v33, %v311_v35  ;;  %v8536_v46 = vcombine.high %v314_v39, %v318_v40  ;;  %v8535_v52 = vcombine.low %v314_v39, %v318_v40  ;;  %v363_v33 = vld [vmem:[#allocation5 + $0x888] sm:$0xff]  ;;  %v374_v39 = vld [vmem:[#allocation5 + $0x8e0] sm:$0xff] }
  0xae   :  { %v8537_v54 = vcombine.low %v315_v41, %v319_v43  ;;  %v371_v40 = vld [vmem:[#allocation5 + $0x8c8] sm:$0xff] }
  0xb0   :  { %3240 = vmatpush1.bf16.msra.mxu0 %v8471_v48  ;;  %3404 = vmatpush1.bf16.msra.mxu1 %v8473_v49  ;;  %v326_v48 = vld [vmem:[#allocation5 + $0x760] sm:$0xff]  ;;  %v323_v49 = vld [vmem:[#allocation5 + $0x748] sm:$0xff] }
  0xb1   :  { %3241 = vmatprep.subr.bf16.mxu0 %v8480_v50  ;;  %3405 = vmatprep.subr.bf16.mxu1 %v8482_v55  ;;  %v8538_v50 = vcombine.high %v315_v41, %v319_v43  ;;  %v8544_v55 = vcombine.high %v322_v47, %v326_v48  ;;  %v8543_v62 = vcombine.low %v322_v47, %v326_v48  ;;  %v375_v41 = vld [vmem:[#allocation5 + $0x8e8] sm:$0xff]  ;;  %v382_v47 = vld [vmem:[#allocation5 + $0x920] sm:$0xff] }
  0xb2   :  { %v8545_v63 = vcombine.low %v323_v49, %v327_v51  ;;  %v379_v48 = vld [vmem:[#allocation5 + $0x908] sm:$0xff] }
  0xb4   :  { %3242 = vmatpush1.bf16.msra.mxu0 %v8479_v58  ;;  %3406 = vmatpush1.bf16.msra.mxu1 %v8481_v59  ;;  %v334_v58 = vld [vmem:[#allocation5 + $0x7a0] sm:$0xff]  ;;  %v331_v59 = vld [vmem:[#allocation5 + $0x788] sm:$0xff] }
  0xb5   :  { %3243 = vmatprep.subr.bf16.mxu0 %v8488_v60  ;;  %3407 = vmatprep.subr.bf16.mxu1 %v8490_v0  ;;  %v8546_v60 = vcombine.high %v323_v49, %v327_v51  ;;  %v8552_v0 = vcombine.high %v330_v56, %v334_v58  ;;  %v8551_v6 = vcombine.low %v330_v56, %v334_v58  ;;  %v383_v49 = vld [vmem:[#allocation5 + $0x928] sm:$0xff]  ;;  %v390_v56 = vld [vmem:[#allocation5 + $0x960] sm:$0xff] }
  0xb6   :  { %v8553_v7 = vcombine.low %v331_v59, %v335_v61  ;;  %v8593_v51 = vcombine.low %v371_v40, %v375_v41  ;;  %v387_v58 = vld [vmem:[#allocation5 + $0x948] sm:$0xff] }
  0xb8   :  { %3244 = vmatpush1.bf16.msra.mxu0 %v8487_v2  ;;  %3408 = vmatpush1.bf16.msra.mxu1 %v8489_v3  ;;  %v342_v2 = vld [vmem:[#allocation5 + $0x7e0] sm:$0xff]  ;;  %v339_v3 = vld [vmem:[#allocation5 + $0x7c8] sm:$0xff] }
  0xb9   :  { %3245 = vmatprep.subr.bf16.mxu0 %v8496_v4  ;;  %3409 = vmatprep.subr.bf16.mxu1 %v8498_v8  ;;  %v8554_v4 = vcombine.high %v331_v59, %v335_v61  ;;  %v8560_v8 = vcombine.high %v338_v1, %v342_v2  ;;  %v8559_v16 = vcombine.low %v338_v1, %v342_v2  ;;  %v391_v59 = vld [vmem:[#allocation5 + $0x968] sm:$0xff]  ;;  %v398_v1 = vld [vmem:[#allocation5 + $0x9a0] sm:$0xff] }
  0xba   :  { %v8601_v61 = vcombine.low %v379_v48, %v383_v49  ;;  %v395_v2 = vld [vmem:[#allocation5 + $0x988] sm:$0xff] }
  0xbc   :  { %3246 = vmatpush1.bf16.msra.mxu0 %v8495_v10  ;;  %3410 = vmatpush1.bf16.msra.mxu1 %v8497_v11  ;;  %v350_v10 = vld [vmem:[#allocation5 + $0x820] sm:$0xff]  ;;  %v347_v11 = vld [vmem:[#allocation5 + $0x808] sm:$0xff] }
  0xbd   :  { %3247 = vmatprep.subr.bf16.mxu0 %v8504_v13  ;;  %3411 = vmatprep.subr.bf16.mxu1 %v8506_v18  ;;  %v8562_v13 = vcombine.high %v339_v3, %v343_v5  ;;  %v8561_v18 = vcombine.low %v339_v3, %v343_v5  ;;  %v8568_v19 = vcombine.high %v346_v9, %v350_v10  ;;  %v399_v3 = vld [vmem:[#allocation5 + $0x9a8] sm:$0xff] }
  0xbe   :  { %v8570_v23 = vcombine.high %v347_v11, %v351_v14  ;;  %v8569_v27 = vcombine.low %v347_v11, %v351_v14  ;;  %v8609_v5 = vcombine.low %v387_v58, %v391_v59  ;;  %v407_v11 = vld [vmem:[#allocation5 + $0x9e8] sm:$0xff]  ;;  %v8617_v14 = vcombine.low %v395_v2, %v399_v3 }
  0xc0   :  { %3248 = vmatpush1.bf16.msra.mxu0 %v8503_v20  ;;  %3412 = vmatpush1.bf16.msra.mxu1 %v8505_v21  ;;  %v358_v20 = vld [vmem:[#allocation5 + $0x860] sm:$0xff]  ;;  %v355_v21 = vld [vmem:[#allocation5 + $0x848] sm:$0xff] }
  0xc1   :  { %3249 = vmatprep.subr.bf16.mxu0 %v8512_v22  ;;  %3413 = vmatprep.subr.bf16.mxu1 %v8514_v26  ;;  %v359_v22 = vld [vmem:[#allocation5 + $0x868] sm:$0xff]  ;;  %v8567_v26 = vcombine.low %v346_v9, %v350_v10  ;;  %v8575_v15 = vcombine.low %v354_v17, %v358_v20  ;;  %v406_v9 = vld [vmem:[#allocation5 + $0x9e0] sm:$0xff] }
  0xc2   :  { %v8577_v35 = vcombine.low %v355_v21, %v359_v22  ;;  %v403_v10 = vld [vmem:[#allocation5 + $0x9c8] sm:$0xff] }
  0xc4   :  { %3250 = vmatpush1.bf16.msra.mxu0 %v8511_v28  ;;  %3414 = vmatpush1.bf16.msra.mxu1 %v8513_v29  ;;  %v8576_v28 = vcombine.high %v354_v17, %v358_v20  ;;  %v8578_v29 = vcombine.high %v355_v21, %v359_v22  ;;  %v8626_v17 = vcombine.high %v403_v10, %v407_v11  ;;  %v411_v20 = vld [vmem:[#allocation5 + $0xa08] sm:$0xff] }
  0xc5   :  { %3251 = vmatprep.subr.bf16.mxu0 %v8520_v30  ;;  %3415 = vmatprep.subr.bf16.mxu1 %v8522_v34  ;;  %v362_v30 = vld [vmem:[#allocation5 + $0x880] sm:$0xff]  ;;  %v367_v34 = vld [vmem:[#allocation5 + $0x8a8] sm:$0xff] }
  0xc6   :  { %v8585_v43 = vcombine.low %v363_v33, %v367_v34  ;;  %v415_v21 = vld [vmem:[#allocation5 + $0xa28] sm:$0xff] }
  0xc8   :  { %3252 = vmatpush1.bf16.msra.mxu0 %v8519_v36  ;;  %3416 = vmatpush1.bf16.msra.mxu1 %v8521_v37  ;;  %v8584_v36 = vcombine.high %v362_v30, %v366_v31  ;;  %v8586_v37 = vcombine.high %v363_v33, %v367_v34  ;;  %v8633_v34 = vcombine.low %v411_v20, %v415_v21 }
  0xc9   :  { %3253 = vmatprep.subr.bf16.mxu0 %v8528_v38  ;;  %3417 = vmatprep.subr.bf16.mxu1 %v8530_v42  ;;  %v370_v38 = vld [vmem:[#allocation5 + $0x8c0] sm:$0xff]  ;;  %v8583_v42 = vcombine.low %v362_v30, %v366_v31  ;;  %v419_v30 = vld [vmem:[#allocation5 + $0xa48] sm:$0xff] }
  0xca   :  { %v423_v31 = vld [vmem:[#allocation5 + $0xa68] sm:$0xff] }
  0xcc   :  { %3254 = vmatpush1.bf16.msra.mxu0 %v8527_v44  ;;  %3418 = vmatpush1.bf16.msra.mxu1 %v8529_v45  ;;  %v8592_v44 = vcombine.high %v370_v38, %v374_v39  ;;  %v8594_v45 = vcombine.high %v371_v40, %v375_v41  ;;  %v8641_v41 = vcombine.low %v419_v30, %v423_v31 }
  0xcd   :  { %3255 = vmatprep.subr.bf16.mxu0 %v8536_v46  ;;  %3419 = vmatprep.subr.bf16.mxu1 %v8538_v50  ;;  %v378_v46 = vld [vmem:[#allocation5 + $0x900] sm:$0xff]  ;;  %v8591_v50 = vcombine.low %v370_v38, %v374_v39  ;;  %v427_v38 = vld [vmem:[#allocation5 + $0xa88] sm:$0xff] }
  0xce   :  { %v431_v39 = vld [vmem:[#allocation5 + $0xaa8] sm:$0xff] }
  0xd0   :  { %3256 = vmatpush1.bf16.msra.mxu0 %v8535_v52  ;;  %3420 = vmatpush1.bf16.msra.mxu1 %v8537_v54  ;;  %v8600_v52 = vcombine.high %v378_v46, %v382_v47  ;;  %v8602_v54 = vcombine.high %v379_v48, %v383_v49  ;;  %v8649_v49 = vcombine.low %v427_v38, %v431_v39 }
  0xd1   :  { %3257 = vmatprep.subr.bf16.mxu0 %v8544_v55  ;;  %3421 = vmatprep.subr.bf16.mxu1 %v8546_v60  ;;  %v386_v55 = vld [vmem:[#allocation5 + $0x940] sm:$0xff]  ;;  %v8599_v60 = vcombine.low %v378_v46, %v382_v47  ;;  %v435_v46 = vld [vmem:[#allocation5 + $0xac8] sm:$0xff] }
  0xd2   :  { %v439_v47 = vld [vmem:[#allocation5 + $0xae8] sm:$0xff] }
  0xd4   :  { %3258 = vmatpush1.bf16.msra.mxu0 %v8543_v62  ;;  %3422 = vmatpush1.bf16.msra.mxu1 %v8545_v63  ;;  %v8608_v62 = vcombine.high %v386_v55, %v390_v56  ;;  %v8610_v63 = vcombine.high %v387_v58, %v391_v59  ;;  %v8657_v59 = vcombine.low %v435_v46, %v439_v47 }
  0xd5   :  { %3259 = vmatprep.subr.bf16.mxu0 %v8552_v0  ;;  %3423 = vmatprep.subr.bf16.mxu1 %v8554_v4  ;;  %v394_v0 = vld [vmem:[#allocation5 + $0x980] sm:$0xff]  ;;  %v8607_v4 = vcombine.low %v386_v55, %v390_v56  ;;  %v443_v55 = vld [vmem:[#allocation5 + $0xb08] sm:$0xff] }
  0xd6   :  { %v447_v56 = vld [vmem:[#allocation5 + $0xb28] sm:$0xff] }
  0xd8   :  { %3260 = vmatpush1.bf16.msra.mxu0 %v8551_v6  ;;  %3424 = vmatpush1.bf16.msra.mxu1 %v8553_v7  ;;  %v8616_v6 = vcombine.high %v394_v0, %v398_v1  ;;  %v8618_v7 = vcombine.high %v395_v2, %v399_v3  ;;  %v8665_v3 = vcombine.low %v443_v55, %v447_v56 }
  0xd9   :  { %3261 = vmatprep.subr.bf16.mxu0 %v8560_v8  ;;  %3425 = vmatprep.subr.bf16.mxu1 %v8562_v13  ;;  %v402_v8 = vld [vmem:[#allocation5 + $0x9c0] sm:$0xff]  ;;  %v8615_v13 = vcombine.low %v394_v0, %v398_v1  ;;  %v451_v0 = vld [vmem:[#allocation5 + $0xb48] sm:$0xff] }
  0xda   :  { %v8623_v22 = vcombine.low %v402_v8, %v406_v9  ;;  %v455_v1 = vld [vmem:[#allocation5 + $0xb68] sm:$0xff] }
  0xdc   :  { %3262 = vmatpush1.bf16.msra.mxu0 %v8559_v16  ;;  %3426 = vmatpush1.bf16.msra.mxu1 %v8561_v18  ;;  %v8624_v16 = vcombine.high %v402_v8, %v406_v9  ;;  %v410_v18 = vld [vmem:[#allocation5 + $0xa00] sm:$0xff]  ;;  %v459_v8 = vld [vmem:[#allocation5 + $0xb88] sm:$0xff] }
  0xdd   :  { %3272 = vmatprep.subr.bf16.mxu0 %v8568_v19  ;;  %3436 = vmatprep.subr.bf16.mxu1 %v8570_v23  ;;  %v414_v19 = vld [vmem:[#allocation5 + $0xa20] sm:$0xff]  ;;  %v8625_v23 = vcombine.low %v403_v10, %v407_v11  ;;  %v463_v9 = vld [vmem:[#allocation5 + $0xba8] sm:$0xff]  ;;  %v8673_v11 = vcombine.low %v451_v0, %v455_v1 }
  0xde   :  { %v8631_v33 = vcombine.low %v410_v18, %v414_v19 }
  0xdf   :  { %3264 = vmatmul.mubr.bf16.vlgmr.msra.gmra.mrb[0].mxu0 %v9945_v25  ;;  %3428 = vmatmul.mubr.bf16.vlgmr.msra.gmra.mrb[0].mxu1 %v9945_v25 }
  0xe0   :  { %3273 = vmatpush1.bf16.msra.mxu0 %v8567_v26  ;;  %3437 = vmatpush1.bf16.msra.mxu1 %v8569_v27  ;;  %v8632_v26 = vcombine.high %v410_v18, %v414_v19  ;;  %v8634_v27 = vcombine.high %v411_v20, %v415_v21  ;;  %v467_v18 = vld [vmem:[#allocation5 + $0xbc8] sm:$0xff]  ;;  %v8681_v21 = vcombine.low %v459_v8, %v463_v9 }
  0xe1   :  { %3274 = vmatprep.subr.bf16.mxu0 %v8576_v28  ;;  %3438 = vmatprep.subr.bf16.mxu1 %v8578_v29  ;;  %v418_v28 = vld [vmem:[#allocation5 + $0xa40] sm:$0xff]  ;;  %v471_v19 = vld [vmem:[#allocation5 + $0xbe8] sm:$0xff] }
  0xe2   :  { %3304 = vmatprep.mubr.bf16.mxu0 %v9949_v32  ;;  %3468 = vmatprep.mubr.bf16.mxu1 %v9949_v32  ;;  %v422_v29 = vld [vmem:[#allocation5 + $0xa60] sm:$0xff] }
  0xe3   :  { %v8639_v40 = vcombine.low %v418_v28, %v422_v29 }
  0xe4   :  { %3275 = vmatpush1.bf16.msra.mxu0 %v8575_v15  ;;  %3439 = vmatpush1.bf16.msra.mxu1 %v8577_v35  ;;  %v8640_v15 = vcombine.high %v418_v28, %v422_v29  ;;  %v8642_v35 = vcombine.high %v419_v30, %v423_v31  ;;  %v475_v28 = vld [vmem:[#allocation5 + $0xc08] sm:$0xff]  ;;  %v8689_v31 = vcombine.low %v467_v18, %v471_v19 }
  0xe5   :  { %3276 = vmatprep.subr.bf16.mxu0 %v8584_v36  ;;  %3440 = vmatprep.subr.bf16.mxu1 %v8586_v37  ;;  %v426_v36 = vld [vmem:[#allocation5 + $0xa80] sm:$0xff]  ;;  %v479_v29 = vld [vmem:[#allocation5 + $0xc28] sm:$0xff] }
  0xe6   :  { %v430_v37 = vld [vmem:[#allocation5 + $0xaa0] sm:$0xff] }
  0xe7   :  { %v8647_v48 = vcombine.low %v426_v36, %v430_v37 }
  0xe8   :  { %3277 = vmatpush1.bf16.msra.mxu0 %v8583_v42  ;;  %3441 = vmatpush1.bf16.msra.mxu1 %v8585_v43  ;;  %v8648_v42 = vcombine.high %v426_v36, %v430_v37  ;;  %v8650_v43 = vcombine.high %v427_v38, %v431_v39  ;;  %v9957_v36 = vcombine.low %v9941_v24, %v9941_v24  ;;  %v483_v37 = vld [vmem:[#allocation5 + $0xc48] sm:$0xff]  ;;  %v9959_v39 = vld [vmem:[#allocation2 + $0x18] sm:$0xff] }
  0xe9   :  { %3278 = vmatprep.subr.bf16.mxu0 %v8592_v44  ;;  %3442 = vmatprep.subr.bf16.mxu1 %v8594_v45  ;;  %v434_v44 = vld [vmem:[#allocation5 + $0xac0] sm:$0xff]  ;;  %v487_v38 = vld [vmem:[#allocation5 + $0xc68] sm:$0xff] }
  0xea   :  { %v438_v45 = vld [vmem:[#allocation5 + $0xae0] sm:$0xff]  ;;  %v491_v24 = vld [vmem:[#allocation5 + $0xc88] sm:$0xff] }
  0xeb   :  { %v8655_v58 = vcombine.low %v434_v44, %v438_v45 }
  0xec   :  { %3279 = vmatpush1.bf16.msra.mxu0 %v8591_v50  ;;  %3443 = vmatpush1.bf16.msra.mxu1 %v8593_v51  ;;  %v8656_v50 = vcombine.high %v434_v44, %v438_v45  ;;  %v8658_v51 = vcombine.high %v435_v46, %v439_v47  ;;  %v490_v44 = vld [vmem:[#allocation5 + $0xc80] sm:$0xff]  ;;  %v9963_v46 = vcombine.high %v9959_v39, %v9959_v39  ;;  %v495_v47 = vld [vmem:[#allocation5 + $0xca8] sm:$0xff] }
  0xed   :  { %3280 = vmatprep.subr.bf16.mxu0 %v8600_v52  ;;  %3444 = vmatprep.subr.bf16.mxu1 %v8602_v54  ;;  %v442_v52 = vld [vmem:[#allocation5 + $0xb00] sm:$0xff] }
  0xee   :  { %v446_v54 = vld [vmem:[#allocation5 + $0xb20] sm:$0xff] }
  0xef   :  { %v8663_v2 = vcombine.low %v442_v52, %v446_v54  ;;  %v494_v45 = vld [vmem:[#allocation5 + $0xca0] sm:$0xff] }
  0xf0   :  { %3281 = vmatpush1.bf16.msra.mxu0 %v8599_v60  ;;  %3445 = vmatpush1.bf16.msra.mxu1 %v8601_v61  ;;  %v8664_v60 = vcombine.high %v442_v52, %v446_v54  ;;  %v8666_v61 = vcombine.high %v443_v55, %v447_v56  ;;  %v498_v52 = vld [vmem:[#allocation5 + $0xcc0] sm:$0xff]  ;;  %v499_v55 = vld [vmem:[#allocation5 + $0xcc8] sm:$0xff] }
  0xf1   :  { %3282 = vmatprep.subr.bf16.mxu0 %v8608_v62  ;;  %3446 = vmatprep.subr.bf16.mxu1 %v8610_v63  ;;  %v450_v62 = vld [vmem:[#allocation5 + $0xb40] sm:$0xff]  ;;  %v503_v56 = vld [vmem:[#allocation5 + $0xce8] sm:$0xff] }
  0xf2   :  { %v454_v63 = vld [vmem:[#allocation5 + $0xb60] sm:$0xff] }
  0xf3   :  { %v8671_v10 = vcombine.low %v450_v62, %v454_v63  ;;  %v502_v54 = vld [vmem:[#allocation5 + $0xce0] sm:$0xff] }
  0xf4   :  { %3283 = vmatpush1.bf16.msra.mxu0 %v8607_v4  ;;  %3447 = vmatpush1.bf16.msra.mxu1 %v8609_v5  ;;  %v8672_v4 = vcombine.high %v450_v62, %v454_v63  ;;  %v8674_v5 = vcombine.high %v451_v0, %v455_v1  ;;  %v506_v62 = vld [vmem:[#allocation5 + $0xd00] sm:$0xff]  ;;  %v507_v0 = vld [vmem:[#allocation5 + $0xd08] sm:$0xff] }
  0xf5   :  { %3284 = vmatprep.subr.bf16.mxu0 %v8616_v6  ;;  %3448 = vmatprep.subr.bf16.mxu1 %v8618_v7  ;;  %v458_v6 = vld [vmem:[#allocation5 + $0xb80] sm:$0xff]  ;;  %v511_v1 = vld [vmem:[#allocation5 + $0xd28] sm:$0xff] }
  0xf6   :  { %v462_v7 = vld [vmem:[#allocation5 + $0xba0] sm:$0xff] }
  0xf7   :  { %v8679_v20 = vcombine.low %v458_v6, %v462_v7  ;;  %v510_v63 = vld [vmem:[#allocation5 + $0xd20] sm:$0xff] }
  0xf8   :  { %3285 = vmatpush1.bf16.msra.mxu0 %v8615_v13  ;;  %3449 = vmatpush1.bf16.msra.mxu1 %v8617_v14  ;;  %v8680_v13 = vcombine.high %v458_v6, %v462_v7  ;;  %v8682_v14 = vcombine.high %v459_v8, %v463_v9  ;;  %v514_v6 = vld [vmem:[#allocation5 + $0xd40] sm:$0xff]  ;;  %v515_v8 = vld [vmem:[#allocation5 + $0xd48] sm:$0xff] }
  0xf9   :  { %3286 = vmatprep.subr.bf16.mxu0 %v8624_v16  ;;  %3450 = vmatprep.subr.bf16.mxu1 %v8626_v17  ;;  %v466_v16 = vld [vmem:[#allocation5 + $0xbc0] sm:$0xff]  ;;  %v519_v9 = vld [vmem:[#allocation5 + $0xd68] sm:$0xff] }
  0xfa   :  { %v470_v17 = vld [vmem:[#allocation5 + $0xbe0] sm:$0xff] }
  0xfb   :  { %v8687_v30 = vcombine.low %v466_v16, %v470_v17  ;;  %v518_v7 = vld [vmem:[#allocation5 + $0xd60] sm:$0xff] }
  0xfc   :  { %3287 = vmatpush1.bf16.msra.mxu0 %v8623_v22  ;;  %3451 = vmatpush1.bf16.msra.mxu1 %v8625_v23  ;;  %v8688_v22 = vcombine.high %v466_v16, %v470_v17  ;;  %v8690_v23 = vcombine.high %v467_v18, %v471_v19  ;;  %v522_v16 = vld [vmem:[#allocation5 + $0xd80] sm:$0xff]  ;;  %v523_v18 = vld [vmem:[#allocation5 + $0xd88] sm:$0xff] }
  0xfd   :  { %3288 = vmatprep.subr.bf16.mxu0 %v8632_v26  ;;  %3452 = vmatprep.subr.bf16.mxu1 %v8634_v27  ;;  %v474_v26 = vld [vmem:[#allocation5 + $0xc00] sm:$0xff]  ;;  %v527_v19 = vld [vmem:[#allocation5 + $0xda8] sm:$0xff] }
  0xfe   :  { %v478_v27 = vld [vmem:[#allocation5 + $0xc20] sm:$0xff] }
  0xff   :  { %v526_v17 = vld [vmem:[#allocation5 + $0xda0] sm:$0xff] }
 0x100   :  { %3289 = vmatpush1.bf16.msra.mxu0 %v8631_v33  ;;  %3453 = vmatpush1.bf16.msra.mxu1 %v8633_v34  ;;  %v8696_v33 = vcombine.high %v474_v26, %v478_v27  ;;  %v8698_v34 = vcombine.high %v475_v28, %v479_v29 }
 0x101   :  { %3290 = vmatprep.subr.bf16.mxu0 %v8640_v15  ;;  %3454 = vmatprep.subr.bf16.mxu1 %v8642_v35  ;;  %v482_v15 = vld [vmem:[#allocation5 + $0xc40] sm:$0xff] }
 0x102   :  { %v486_v35 = vld [vmem:[#allocation5 + $0xc60] sm:$0xff] }
 0x104   :  { %3291 = vmatpush1.bf16.msra.mxu0 %v8639_v40  ;;  %3455 = vmatpush1.bf16.msra.mxu1 %v8641_v41  ;;  %v8695_v40 = vcombine.low %v474_v26, %v478_v27  ;;  %v8697_v41 = vcombine.low %v475_v28, %v479_v29  ;;  %v530_v26 = vld [vmem:[#allocation5 + $0xdc0] sm:$0xff]  ;;  %v531_v28 = vld [vmem:[#allocation5 + $0xdc8] sm:$0xff] }
 0x105   :  { %3292 = vmatprep.subr.bf16.mxu0 %v8648_v42  ;;  %3456 = vmatprep.subr.bf16.mxu1 %v8650_v43  ;;  %v8704_v42 = vcombine.high %v482_v15, %v486_v35  ;;  %v8706_v43 = vcombine.high %v483_v37, %v487_v38  ;;  %v534_v27 = vld [vmem:[#allocation5 + $0xde0] sm:$0xff]  ;;  %v535_v29 = vld [vmem:[#allocation5 + $0xde8] sm:$0xff] }
 0x108   :  { %3293 = vmatpush1.bf16.msra.mxu0 %v8647_v48  ;;  %3457 = vmatpush1.bf16.msra.mxu1 %v8649_v49  ;;  %v8703_v48 = vcombine.low %v482_v15, %v486_v35  ;;  %v8705_v49 = vcombine.low %v483_v37, %v487_v38  ;;  %v538_v15 = vld [vmem:[#allocation5 + $0xe00] sm:$0xff]  ;;  %v539_v37 = vld [vmem:[#allocation5 + $0xe08] sm:$0xff] }
 0x109   :  { %3294 = vmatprep.subr.bf16.mxu0 %v8656_v50  ;;  %3458 = vmatprep.subr.bf16.mxu1 %v8658_v51  ;;  %v8712_v50 = vcombine.high %v490_v44, %v494_v45  ;;  %v8714_v51 = vcombine.high %v491_v24, %v495_v47  ;;  %v542_v35 = vld [vmem:[#allocation5 + $0xe20] sm:$0xff]  ;;  %v543_v38 = vld [vmem:[#allocation5 + $0xe28] sm:$0xff] }
 0x10c   :  { %3295 = vmatpush1.bf16.msra.mxu0 %v8655_v58  ;;  %3459 = vmatpush1.bf16.msra.mxu1 %v8657_v59  ;;  %v8711_v58 = vcombine.low %v490_v44, %v494_v45  ;;  %v8713_v59 = vcombine.low %v491_v24, %v495_v47  ;;  %v546_v44 = vld [vmem:[#allocation5 + $0xe40] sm:$0xff]  ;;  %v547_v24 = vld [vmem:[#allocation5 + $0xe48] sm:$0xff] }
 0x10d   :  { %3296 = vmatprep.subr.bf16.mxu0 %v8664_v60  ;;  %3460 = vmatprep.subr.bf16.mxu1 %v8666_v61  ;;  %v8720_v60 = vcombine.high %v498_v52, %v502_v54  ;;  %v8722_v61 = vcombine.high %v499_v55, %v503_v56  ;;  %v550_v45 = vld [vmem:[#allocation5 + $0xe60] sm:$0xff]  ;;  %v551_v47 = vld [vmem:[#allocation5 + $0xe68] sm:$0xff] }
 0x110   :  { %3297 = vmatpush1.bf16.msra.mxu0 %v8663_v2  ;;  %3461 = vmatpush1.bf16.msra.mxu1 %v8665_v3  ;;  %v8719_v2 = vcombine.low %v498_v52, %v502_v54  ;;  %v8721_v3 = vcombine.low %v499_v55, %v503_v56  ;;  %v554_v52 = vld [vmem:[#allocation5 + $0xe80] sm:$0xff]  ;;  %v555_v55 = vld [vmem:[#allocation5 + $0xe88] sm:$0xff] }
 0x111   :  { %3298 = vmatprep.subr.bf16.mxu0 %v8672_v4  ;;  %3462 = vmatprep.subr.bf16.mxu1 %v8674_v5  ;;  %v8728_v4 = vcombine.high %v506_v62, %v510_v63  ;;  %v8730_v5 = vcombine.high %v507_v0, %v511_v1  ;;  %v558_v54 = vld [vmem:[#allocation5 + $0xea0] sm:$0xff]  ;;  %v559_v56 = vld [vmem:[#allocation5 + $0xea8] sm:$0xff] }
 0x114   :  { %3299 = vmatpush1.bf16.msra.mxu0 %v8671_v10  ;;  %3463 = vmatpush1.bf16.msra.mxu1 %v8673_v11  ;;  %v8727_v10 = vcombine.low %v506_v62, %v510_v63  ;;  %v8729_v11 = vcombine.low %v507_v0, %v511_v1  ;;  %v562_v62 = vld [vmem:[#allocation5 + $0xec0] sm:$0xff]  ;;  %v563_v0 = vld [vmem:[#allocation5 + $0xec8] sm:$0xff] }
 0x115   :  { %3300 = vmatprep.subr.bf16.mxu0 %v8680_v13  ;;  %3464 = vmatprep.subr.bf16.mxu1 %v8682_v14  ;;  %v8736_v13 = vcombine.high %v514_v6, %v518_v7  ;;  %v8738_v14 = vcombine.high %v515_v8, %v519_v9  ;;  %v566_v63 = vld [vmem:[#allocation5 + $0xee0] sm:$0xff]  ;;  %v567_v1 = vld [vmem:[#allocation5 + $0xee8] sm:$0xff] }
 0x118   :  { %3301 = vmatpush1.bf16.msra.mxu0 %v8679_v20  ;;  %3465 = vmatpush1.bf16.msra.mxu1 %v8681_v21  ;;  %v8735_v20 = vcombine.low %v514_v6, %v518_v7  ;;  %v8737_v21 = vcombine.low %v515_v8, %v519_v9  ;;  %v570_v6 = vld [vmem:[#allocation5 + $0xf00] sm:$0xff]  ;;  %v571_v8 = vld [vmem:[#allocation5 + $0xf08] sm:$0xff] }
 0x119   :  { %3302 = vmatprep.subr.bf16.mxu0 %v8688_v22  ;;  %3466 = vmatprep.subr.bf16.mxu1 %v8690_v23  ;;  %v8744_v22 = vcombine.high %v522_v16, %v526_v17  ;;  %v8746_v23 = vcombine.high %v523_v18, %v527_v19  ;;  %v574_v7 = vld [vmem:[#allocation5 + $0xf20] sm:$0xff]  ;;  %v575_v9 = vld [vmem:[#allocation5 + $0xf28] sm:$0xff] }
 0x11c   :  { %3303 = vmatpush1.bf16.msra.mxu0 %v8687_v30  ;;  %3467 = vmatpush1.bf16.msra.mxu1 %v8689_v31  ;;  %v8743_v30 = vcombine.low %v522_v16, %v526_v17  ;;  %v8745_v31 = vcombine.low %v523_v18, %v527_v19  ;;  %v578_v16 = vld [vmem:[#allocation5 + $0xf40] sm:$0xff]  ;;  %v579_v18 = vld [vmem:[#allocation5 + $0xf48] sm:$0xff] }
 0x11d   :  { %3313 = vmatprep.subr.bf16.mxu0 %v8696_v33  ;;  %3477 = vmatprep.subr.bf16.mxu1 %v8698_v34  ;;  %v8752_v33 = vcombine.high %v530_v26, %v534_v27  ;;  %v8754_v34 = vcombine.high %v531_v28, %v535_v29  ;;  %v582_v17 = vld [vmem:[#allocation5 + $0xf60] sm:$0xff]  ;;  %v583_v19 = vld [vmem:[#allocation5 + $0xf68] sm:$0xff] }
 0x11f   :  { %3305 = vmatmul.mubr.bf16.vlgmr.msra.gmra.mrb[0].mxu0 %v9957_v36  ;;  %3469 = vmatmul.mubr.bf16.vlgmr.msra.gmra.mrb[0].mxu1 %v9957_v36 }
 0x120   :  { %3314 = vmatpush1.bf16.msra.mxu0 %v8695_v40  ;;  %3478 = vmatpush1.bf16.msra.mxu1 %v8697_v41  ;;  %v8751_v40 = vcombine.low %v530_v26, %v534_v27  ;;  %v8753_v41 = vcombine.low %v531_v28, %v535_v29  ;;  %v586_v26 = vld [vmem:[#allocation5 + $0xf80] sm:$0xff]  ;;  %v587_v28 = vld [vmem:[#allocation5 + $0xf88] sm:$0xff] }
 0x121   :  { %3315 = vmatprep.subr.bf16.mxu0 %v8704_v42  ;;  %3479 = vmatprep.subr.bf16.mxu1 %v8706_v43  ;;  %v8760_v42 = vcombine.high %v538_v15, %v542_v35  ;;  %v8762_v43 = vcombine.high %v539_v37, %v543_v38  ;;  %v590_v27 = vld [vmem:[#allocation5 + $0xfa0] sm:$0xff]  ;;  %v591_v29 = vld [vmem:[#allocation5 + $0xfa8] sm:$0xff] }
 0x122   :  { %3345 = vmatprep.mubr.bf16.mxu0 %v9963_v46  ;;  %3509 = vmatprep.mubr.bf16.mxu1 %v9963_v46 }
 0x124   :  { %3316 = vmatpush1.bf16.msra.mxu0 %v8703_v48  ;;  %3480 = vmatpush1.bf16.msra.mxu1 %v8705_v49  ;;  %v8759_v48 = vcombine.low %v538_v15, %v542_v35  ;;  %v8761_v49 = vcombine.low %v539_v37, %v543_v38  ;;  %v594_v15 = vld [vmem:[#allocation5 + $0xfc0] sm:$0xff]  ;;  %v595_v37 = vld [vmem:[#allocation5 + $0xfc8] sm:$0xff] }
 0x125   :  { %3317 = vmatprep.subr.bf16.mxu0 %v8712_v50  ;;  %3481 = vmatprep.subr.bf16.mxu1 %v8714_v51  ;;  %v8768_v50 = vcombine.high %v546_v44, %v550_v45  ;;  %v8770_v51 = vcombine.high %v547_v24, %v551_v47  ;;  %v598_v35 = vld [vmem:[#allocation5 + $0xfe0] sm:$0xff]  ;;  %v599_v38 = vld [vmem:[#allocation5 + $0xfe8] sm:$0xff] }
 0x128   :  { %3318 = vmatpush1.bf16.msra.mxu0 %v8711_v58  ;;  %3482 = vmatpush1.bf16.msra.mxu1 %v8713_v59  ;;  %v8767_v58 = vcombine.low %v546_v44, %v550_v45  ;;  %v8769_v59 = vcombine.low %v547_v24, %v551_v47  ;;  %v92_v44 = vld [vmem:[#allocation5 + $0x10] sm:$0xff]  ;;  %v93_v24 = vld [vmem:[#allocation5 + $0x18] sm:$0xff] }
 0x129   :  { %3319 = vmatprep.subr.bf16.mxu0 %v8720_v60  ;;  %3483 = vmatprep.subr.bf16.mxu1 %v8722_v61  ;;  %v8776_v60 = vcombine.high %v554_v52, %v558_v54  ;;  %v8778_v61 = vcombine.high %v555_v55, %v559_v56  ;;  %v96_v45 = vld [vmem:[#allocation5 + $0x30] sm:$0xff]  ;;  %v97_v47 = vld [vmem:[#allocation5 + $0x38] sm:$0xff] }
 0x12c   :  { %3320 = vmatpush1.bf16.msra.mxu0 %v8719_v2  ;;  %3484 = vmatpush1.bf16.msra.mxu1 %v8721_v3  ;;  %v8775_v2 = vcombine.low %v554_v52, %v558_v54  ;;  %v8777_v3 = vcombine.low %v555_v55, %v559_v56  ;;  %v100_v52 = vld [vmem:[#allocation5 + $0x50] sm:$0xff]  ;;  %v9971_v55 = vcombine.low %v9959_v39, %v9959_v39  ;;  %v101_v56 = vld [vmem:[#allocation5 + $0x58] sm:$0xff] }
 0x12d   :  { %3321 = vmatprep.subr.bf16.mxu0 %v8728_v4  ;;  %3485 = vmatprep.subr.bf16.mxu1 %v8730_v5  ;;  %v8784_v4 = vcombine.high %v562_v62, %v566_v63  ;;  %v8786_v5 = vcombine.high %v563_v0, %v567_v1  ;;  %v104_v54 = vld [vmem:[#allocation5 + $0x70] sm:$0xff] }
 0x12e   :  { %v8323_v39 = vcombine.low %v100_v52, %v104_v54 }
 0x130   :  { %3322 = vmatpush1.bf16.msra.mxu0 %v8727_v10  ;;  %3486 = vmatpush1.bf16.msra.mxu1 %v8729_v11  ;;  %v8783_v10 = vcombine.low %v562_v62, %v566_v63  ;;  %v8785_v11 = vcombine.low %v563_v0, %v567_v1  ;;  %v108_v63 = vld [vmem:[#allocation5 + $0x90] sm:$0xff]  ;;  %v109_v1 = vld [vmem:[#allocation5 + $0x98] sm:$0xff] }
 0x131   :  { %3323 = vmatprep.subr.bf16.mxu0 %v8736_v13  ;;  %3487 = vmatprep.subr.bf16.mxu1 %v8738_v14  ;;  %v8792_v13 = vcombine.high %v570_v6, %v574_v7  ;;  %v8794_v14 = vcombine.high %v571_v8, %v575_v9  ;;  %v112_v0 = vld [vmem:[#allocation5 + $0xb0] sm:$0xff] }
 0x134   :  { %3324 = vmatpush1.bf16.msra.mxu0 %v8735_v20  ;;  %3488 = vmatpush1.bf16.msra.mxu1 %v8737_v21  ;;  %v8791_v20 = vcombine.low %v570_v6, %v574_v7  ;;  %v8793_v21 = vcombine.low %v571_v8, %v575_v9  ;;  %v116_v6 = vld [vmem:[#allocation5 + $0xd0] sm:$0xff]  ;;  %v117_v8 = vld [vmem:[#allocation5 + $0xd8] sm:$0xff] }
 0x135   :  { %3325 = vmatprep.subr.bf16.mxu0 %v8744_v22  ;;  %3489 = vmatprep.subr.bf16.mxu1 %v8746_v23  ;;  %v8800_v22 = vcombine.high %v578_v16, %v582_v17  ;;  %v8802_v23 = vcombine.high %v579_v18, %v583_v19  ;;  %v120_v7 = vld [vmem:[#allocation5 + $0xf0] sm:$0xff]  ;;  %v121_v9 = vld [vmem:[#allocation5 + $0xf8] sm:$0xff] }
 0x138   :  { %3326 = vmatpush1.bf16.msra.mxu0 %v8743_v30  ;;  %3490 = vmatpush1.bf16.msra.mxu1 %v8745_v31  ;;  %v8799_v30 = vcombine.low %v578_v16, %v582_v17  ;;  %v8801_v31 = vcombine.low %v579_v18, %v583_v19  ;;  %v124_v16 = vld [vmem:[#allocation5 + $0x110] sm:$0xff]  ;;  %v125_v18 = vld [vmem:[#allocation5 + $0x118] sm:$0xff] }
 0x139   :  { %3327 = vmatprep.subr.bf16.mxu0 %v8752_v33  ;;  %3491 = vmatprep.subr.bf16.mxu1 %v8754_v34  ;;  %v8808_v33 = vcombine.high %v586_v26, %v590_v27  ;;  %v8810_v34 = vcombine.high %v587_v28, %v591_v29  ;;  %v128_v17 = vld [vmem:[#allocation5 + $0x130] sm:$0xff]  ;;  %v129_v19 = vld [vmem:[#allocation5 + $0x138] sm:$0xff] }
 0x13c   :  { %3328 = vmatpush1.bf16.msra.mxu0 %v8751_v40  ;;  %3492 = vmatpush1.bf16.msra.mxu1 %v8753_v41  ;;  %v8807_v40 = vcombine.low %v586_v26, %v590_v27  ;;  %v8809_v41 = vcombine.low %v587_v28, %v591_v29  ;;  %v136_v26 = vld [vmem:[#allocation5 + $0x170] sm:$0xff]  ;;  %v133_v27 = vld [vmem:[#allocation5 + $0x158] sm:$0xff]  ;;  %v8347_v29 = vcombine.low %v124_v16, %v128_v17 }
 0x13d   :  { %3329 = vmatprep.subr.bf16.mxu0 %v8760_v42  ;;  %3493 = vmatprep.subr.bf16.mxu1 %v8762_v43  ;;  %v8816_v42 = vcombine.high %v594_v15, %v598_v35  ;;  %v8818_v43 = vcombine.high %v595_v37, %v599_v38  ;;  %v137_v28 = vld [vmem:[#allocation5 + $0x178] sm:$0xff] }
 0x140   :  { %3330 = vmatpush1.bf16.msra.mxu0 %v8759_v48  ;;  %3494 = vmatpush1.bf16.msra.mxu1 %v8761_v49  ;;  %v8815_v48 = vcombine.low %v594_v15, %v598_v35  ;;  %v8817_v49 = vcombine.low %v595_v37, %v599_v38  ;;  %v144_v15 = vld [vmem:[#allocation5 + $0x1b0] sm:$0xff]  ;;  %v141_v35 = vld [vmem:[#allocation5 + $0x198] sm:$0xff] }
 0x141   :  { %3331 = vmatprep.subr.bf16.mxu0 %v8768_v50  ;;  %3495 = vmatprep.subr.bf16.mxu1 %v8770_v51  ;;  %v8316_v50 = vcombine.high %v92_v44, %v96_v45  ;;  %v8318_v51 = vcombine.high %v93_v24, %v97_v47  ;;  %v145_v37 = vld [vmem:[#allocation5 + $0x1b8] sm:$0xff] }
 0x144   :  { %3332 = vmatpush1.bf16.msra.mxu0 %v8767_v58  ;;  %3496 = vmatpush1.bf16.msra.mxu1 %v8769_v59  ;;  %v105_v58 = vld [vmem:[#allocation5 + $0x78] sm:$0xff]  ;;  %v8315_v59 = vcombine.low %v92_v44, %v96_v45  ;;  %v152_v44 = vld [vmem:[#allocation5 + $0x1f0] sm:$0xff] }
 0x145   :  { %3333 = vmatprep.subr.bf16.mxu0 %v8776_v60  ;;  %3497 = vmatprep.subr.bf16.mxu1 %v8778_v61  ;;  %v8317_v60 = vcombine.low %v93_v24, %v97_v47  ;;  %v8324_v61 = vcombine.high %v100_v52, %v104_v54  ;;  %v8326_v62 = vcombine.high %v101_v56, %v105_v58  ;;  %v149_v45 = vld [vmem:[#allocation5 + $0x1d8] sm:$0xff]  ;;  %v160_v52 = vld [vmem:[#allocation5 + $0x230] sm:$0xff] }
 0x146   :  { %v153_v24 = vld [vmem:[#allocation5 + $0x1f8] sm:$0xff] }
 0x147   :  { %v157_v54 = vld [vmem:[#allocation5 + $0x218] sm:$0xff] }
 0x148   :  { %3334 = vmatpush1.bf16.msra.mxu0 %v8775_v2  ;;  %3498 = vmatpush1.bf16.msra.mxu1 %v8777_v3  ;;  %v113_v2 = vld [vmem:[#allocation5 + $0xb8] sm:$0xff]  ;;  %v8325_v3 = vcombine.low %v101_v56, %v105_v58 }
 0x149   :  { %3335 = vmatprep.subr.bf16.mxu0 %v8784_v4  ;;  %3499 = vmatprep.subr.bf16.mxu1 %v8786_v5  ;;  %v8332_v4 = vcombine.high %v108_v63, %v112_v0  ;;  %v8334_v5 = vcombine.high %v109_v1, %v113_v2  ;;  %v161_v56 = vld [vmem:[#allocation5 + $0x238] sm:$0xff] }
 0x14c   :  { %3336 = vmatpush1.bf16.msra.mxu0 %v8783_v10  ;;  %3500 = vmatpush1.bf16.msra.mxu1 %v8785_v11  ;;  %v8331_v10 = vcombine.low %v108_v63, %v112_v0  ;;  %v8333_v11 = vcombine.low %v109_v1, %v113_v2  ;;  %v168_v63 = vld [vmem:[#allocation5 + $0x270] sm:$0xff]  ;;  %v165_v0 = vld [vmem:[#allocation5 + $0x258] sm:$0xff] }
 0x14d   :  { %3337 = vmatprep.subr.bf16.mxu0 %v8792_v13  ;;  %3501 = vmatprep.subr.bf16.mxu1 %v8794_v14  ;;  %v8340_v13 = vcombine.high %v116_v6, %v120_v7  ;;  %v8342_v14 = vcombine.high %v117_v8, %v121_v9  ;;  %v169_v1 = vld [vmem:[#allocation5 + $0x278] sm:$0xff] }
 0x150   :  { %3338 = vmatpush1.bf16.msra.mxu0 %v8791_v20  ;;  %3502 = vmatpush1.bf16.msra.mxu1 %v8793_v21  ;;  %v8339_v20 = vcombine.low %v116_v6, %v120_v7  ;;  %v8341_v21 = vcombine.low %v117_v8, %v121_v9  ;;  %v176_v6 = vld [vmem:[#allocation5 + $0x2b0] sm:$0xff]  ;;  %v173_v7 = vld [vmem:[#allocation5 + $0x298] sm:$0xff] }
 0x151   :  { %3339 = vmatprep.subr.bf16.mxu0 %v8800_v22  ;;  %3503 = vmatprep.subr.bf16.mxu1 %v8802_v23  ;;  %v8348_v22 = vcombine.high %v124_v16, %v128_v17  ;;  %v132_v23 = vld [vmem:[#allocation5 + $0x150] sm:$0xff]  ;;  %v177_v8 = vld [vmem:[#allocation5 + $0x2b8] sm:$0xff] }
 0x152   :  { %v8355_v38 = vcombine.low %v132_v23, %v136_v26  ;;  %v184_v16 = vld [vmem:[#allocation5 + $0x2f0] sm:$0xff]  ;;  %v181_v17 = vld [vmem:[#allocation5 + $0x2d8] sm:$0xff] }
 0x154   :  { %3340 = vmatpush1.bf16.msra.mxu0 %v8799_v30  ;;  %3504 = vmatpush1.bf16.msra.mxu1 %v8801_v31  ;;  %v8349_v30 = vcombine.low %v125_v18, %v129_v19  ;;  %v8356_v31 = vcombine.high %v132_v23, %v136_v26  ;;  %v192_v23 = vld [vmem:[#allocation5 + $0x330] sm:$0xff]  ;;  %v189_v26 = vld [vmem:[#allocation5 + $0x318] sm:$0xff] }
 0x155   :  { %3341 = vmatprep.subr.bf16.mxu0 %v8808_v33  ;;  %3505 = vmatprep.subr.bf16.mxu1 %v8810_v34  ;;  %v8358_v33 = vcombine.high %v133_v27, %v137_v28  ;;  %v140_v34 = vld [vmem:[#allocation5 + $0x190] sm:$0xff] }
 0x156   :  { %v8363_v47 = vcombine.low %v140_v34, %v144_v15 }
 0x158   :  { %3342 = vmatpush1.bf16.msra.mxu0 %v8807_v40  ;;  %3506 = vmatpush1.bf16.msra.mxu1 %v8809_v41  ;;  %v8357_v40 = vcombine.low %v133_v27, %v137_v28  ;;  %v8364_v41 = vcombine.high %v140_v34, %v144_v15  ;;  %v193_v27 = vld [vmem:[#allocation5 + $0x338] sm:$0xff]  ;;  %v200_v34 = vld [vmem:[#allocation5 + $0x370] sm:$0xff] }
 0x159   :  { %3343 = vmatprep.subr.bf16.mxu0 %v8816_v42  ;;  %3507 = vmatprep.subr.bf16.mxu1 %v8818_v43  ;;  %v8366_v42 = vcombine.high %v141_v35, %v145_v37  ;;  %v148_v43 = vld [vmem:[#allocation5 + $0x1d0] sm:$0xff]  ;;  %v197_v15 = vld [vmem:[#allocation5 + $0x358] sm:$0xff] }
 0x15a   :  { %v8371_v58 = vcombine.low %v148_v43, %v152_v44 }
 0x15c   :  { %3344 = vmatpush1.bf16.msra.mxu0 %v8815_v48  ;;  %3508 = vmatpush1.bf16.msra.mxu1 %v8817_v49  ;;  %v8365_v48 = vcombine.low %v141_v35, %v145_v37  ;;  %v8372_v49 = vcombine.high %v148_v43, %v152_v44  ;;  %v201_v35 = vld [vmem:[#allocation5 + $0x378] sm:$0xff]  ;;  %v208_v43 = vld [vmem:[#allocation5 + $0x3b0] sm:$0xff] }
 0x15d   :  { %3518 = vmatprep.subr.bf16.mxu0 %v8316_v50  ;;  %3682 = vmatprep.subr.bf16.mxu1 %v8318_v51  ;;  %v8374_v50 = vcombine.high %v149_v45, %v153_v24  ;;  %v156_v51 = vld [vmem:[#allocation5 + $0x210] sm:$0xff]  ;;  %v205_v44 = vld [vmem:[#allocation5 + $0x398] sm:$0xff] }
 0x15e   :  { %v8379_v2 = vcombine.low %v156_v51, %v160_v52 }
 0x15f   :  { %3346 = vmatmul.mubr.bf16.vlgmr.msra.gmra.mrb[0].mxu0 %v9971_v55  ;;  %3510 = vmatmul.mubr.bf16.vlgmr.msra.gmra.mrb[0].mxu1 %v9971_v55 }
 0x160   :  { %3519 = vmatpush1.bf16.msra.mxu0 %v8315_v59  ;;  %3683 = vmatpush1.bf16.msra.mxu1 %v8317_v60  ;;  %v8373_v59 = vcombine.low %v149_v45, %v153_v24  ;;  %v8380_v60 = vcombine.high %v156_v51, %v160_v52  ;;  %v209_v45 = vld [vmem:[#allocation5 + $0x3b8] sm:$0xff]  ;;  %v216_v51 = vld [vmem:[#allocation5 + $0x3f0] sm:$0xff] }
 0x161   :  { %3520 = vmatprep.subr.bf16.mxu0 %v8324_v61  ;;  %3684 = vmatprep.subr.bf16.mxu1 %v8326_v62  ;;  %v8382_v61 = vcombine.high %v157_v54, %v161_v56  ;;  %v164_v62 = vld [vmem:[#allocation5 + $0x250] sm:$0xff]  ;;  %v213_v52 = vld [vmem:[#allocation5 + $0x3d8] sm:$0xff] }
 0x162   :  { %3550 = vmatprep.mubr.bf16.mxu0 %v9923_v57  ;;  %3714 = vmatprep.mubr.bf16.mxu1 %v9923_v57  ;;  %v8350_v57 = vcombine.high %v125_v18, %v129_v19  ;;  %v8387_v9 = vcombine.low %v164_v62, %v168_v63  ;;  %v185_v18 = vld [vmem:[#allocation5 + $0x2f8] sm:$0xff] }
 0x164   :  { %3521 = vmatpush1.bf16.msra.mxu0 %v8323_v39  ;;  %3685 = vmatpush1.bf16.msra.mxu1 %v8325_v3  ;;  %v8381_v39 = vcombine.low %v157_v54, %v161_v56  ;;  %v8388_v3 = vcombine.high %v164_v62, %v168_v63  ;;  %v217_v54 = vld [vmem:[#allocation5 + $0x3f8] sm:$0xff]  ;;  %v224_v62 = vld [vmem:[#allocation5 + $0x430] sm:$0xff] }
 0x165   :  { %3522 = vmatprep.subr.bf16.mxu0 %v8332_v4  ;;  %3686 = vmatprep.subr.bf16.mxu1 %v8334_v5  ;;  %v8390_v4 = vcombine.high %v165_v0, %v169_v1  ;;  %v172_v5 = vld [vmem:[#allocation5 + $0x290] sm:$0xff]  ;;  %v221_v63 = vld [vmem:[#allocation5 + $0x418] sm:$0xff] }
 0x166   :  { %v8395_v19 = vcombine.low %v172_v5, %v176_v6 }
 0x168   :  { %3523 = vmatpush1.bf16.msra.mxu0 %v8331_v10  ;;  %3687 = vmatpush1.bf16.msra.mxu1 %v8333_v11  ;;  %v8389_v10 = vcombine.low %v165_v0, %v169_v1  ;;  %v8396_v11 = vcombine.high %v172_v5, %v176_v6  ;;  %v225_v0 = vld [vmem:[#allocation5 + $0x438] sm:$0xff]  ;;  %v232_v5 = vld [vmem:[#allocation5 + $0x470] sm:$0xff] }
 0x169   :  { %3524 = vmatprep.subr.bf16.mxu0 %v8340_v13  ;;  %3688 = vmatprep.subr.bf16.mxu1 %v8342_v14  ;;  %v8398_v13 = vcombine.high %v173_v7, %v177_v8  ;;  %v180_v14 = vld [vmem:[#allocation5 + $0x2d0] sm:$0xff]  ;;  %v229_v6 = vld [vmem:[#allocation5 + $0x458] sm:$0xff] }
 0x16a   :  { %v8403_v28 = vcombine.low %v180_v14, %v184_v16 }
 0x16c   :  { %3525 = vmatpush1.bf16.msra.mxu0 %v8339_v20  ;;  %3689 = vmatpush1.bf16.msra.mxu1 %v8341_v21  ;;  %v8397_v20 = vcombine.low %v173_v7, %v177_v8  ;;  %v8404_v21 = vcombine.high %v180_v14, %v184_v16  ;;  %v233_v7 = vld [vmem:[#allocation5 + $0x478] sm:$0xff]  ;;  %v240_v14 = vld [vmem:[#allocation5 + $0x4b0] sm:$0xff] }
 0x16d   :  { %3526 = vmatprep.subr.bf16.mxu0 %v8348_v22  ;;  %3690 = vmatprep.subr.bf16.mxu1 %v8350_v57  ;;  %v8406_v22 = vcombine.high %v181_v17, %v185_v18  ;;  %v188_v57 = vld [vmem:[#allocation5 + $0x310] sm:$0xff]  ;;  %v237_v16 = vld [vmem:[#allocation5 + $0x498] sm:$0xff] }
 0x16e   :  { %v8411_v37 = vcombine.low %v188_v57, %v192_v23 }
 0x170   :  { %3527 = vmatpush1.bf16.msra.mxu0 %v8347_v29  ;;  %3691 = vmatpush1.bf16.msra.mxu1 %v8349_v30  ;;  %v8405_v29 = vcombine.low %v181_v17, %v185_v18  ;;  %v8412_v30 = vcombine.high %v188_v57, %v192_v23  ;;  %v241_v17 = vld [vmem:[#allocation5 + $0x4b8] sm:$0xff]  ;;  %v248_v57 = vld [vmem:[#allocation5 + $0x4f0] sm:$0xff] }
 0x171   :  { %3528 = vmatprep.subr.bf16.mxu0 %v8356_v31  ;;  %3692 = vmatprep.subr.bf16.mxu1 %v8358_v33  ;;  %v8414_v31 = vcombine.high %v189_v26, %v193_v27  ;;  %v196_v33 = vld [vmem:[#allocation5 + $0x350] sm:$0xff]  ;;  %v245_v23 = vld [vmem:[#allocation5 + $0x4d8] sm:$0xff] }
 0x172   :  { %v8419_v24 = vcombine.low %v196_v33, %v200_v34 }
 0x174   :  { %3529 = vmatpush1.bf16.msra.mxu0 %v8355_v38  ;;  %3693 = vmatpush1.bf16.msra.mxu1 %v8357_v40  ;;  %v8413_v38 = vcombine.low %v189_v26, %v193_v27  ;;  %v8420_v40 = vcombine.high %v196_v33, %v200_v34  ;;  %v249_v26 = vld [vmem:[#allocation5 + $0x4f8] sm:$0xff] }
 0x175   :  { %3530 = vmatprep.subr.bf16.mxu0 %v8364_v41  ;;  %3694 = vmatprep.subr.bf16.mxu1 %v8366_v42  ;;  %v8422_v41 = vcombine.high %v197_v15, %v201_v35  ;;  %v204_v42 = vld [vmem:[#allocation5 + $0x390] sm:$0xff]  ;;  %v253_v33 = vld [vmem:[#allocation5 + $0x518] sm:$0xff] }
 0x176   :  { %v8427_v56 = vcombine.low %v204_v42, %v208_v43  ;;  %v257_v34 = vld [vmem:[#allocation5 + $0x538] sm:$0xff] }
 0x178   :  { %3531 = vmatpush1.bf16.msra.mxu0 %v8363_v47  ;;  %3695 = vmatpush1.bf16.msra.mxu1 %v8365_v48  ;;  %v8421_v47 = vcombine.low %v197_v15, %v201_v35  ;;  %v8428_v48 = vcombine.high %v204_v42, %v208_v43  ;;  %v8469_v35 = vcombine.low %v245_v23, %v249_v26  ;;  %v265_v42 = vld [vmem:[#allocation5 + $0x578] sm:$0xff] }
 0x179   :  { %3532 = vmatprep.subr.bf16.mxu0 %v8372_v49  ;;  %3696 = vmatprep.subr.bf16.mxu1 %v8374_v50  ;;  %v8430_v49 = vcombine.high %v205_v44, %v209_v45  ;;  %v212_v50 = vld [vmem:[#allocation5 + $0x3d0] sm:$0xff] }
 0x17a   :  { %v8435_v1 = vcombine.low %v212_v50, %v216_v51 }
 0x17c   :  { %3533 = vmatpush1.bf16.msra.mxu0 %v8371_v58  ;;  %3697 = vmatpush1.bf16.msra.mxu1 %v8373_v59  ;;  %v8429_v58 = vcombine.low %v205_v44, %v209_v45  ;;  %v8436_v59 = vcombine.high %v212_v50, %v216_v51  ;;  %v8477_v44 = vcombine.low %v253_v33, %v257_v34  ;;  %v273_v50 = vld [vmem:[#allocation5 + $0x5b8] sm:$0xff] }
 0x17d   :  { %3534 = vmatprep.subr.bf16.mxu0 %v8380_v60  ;;  %3698 = vmatprep.subr.bf16.mxu1 %v8382_v61  ;;  %v8438_v60 = vcombine.high %v213_v52, %v217_v54  ;;  %v220_v61 = vld [vmem:[#allocation5 + $0x410] sm:$0xff] }
 0x17e   :  { %v8443_v8 = vcombine.low %v220_v61, %v224_v62 }
 0x180   :  { %3535 = vmatpush1.bf16.msra.mxu0 %v8379_v2  ;;  %3699 = vmatpush1.bf16.msra.mxu1 %v8381_v39  ;;  %v8437_v2 = vcombine.low %v213_v52, %v217_v54  ;;  %v8444_v39 = vcombine.high %v220_v61, %v224_v62  ;;  %v281_v61 = vld [vmem:[#allocation5 + $0x5f8] sm:$0xff] }
 0x181   :  { %3536 = vmatprep.subr.bf16.mxu0 %v8388_v3  ;;  %3700 = vmatprep.subr.bf16.mxu1 %v8390_v4  ;;  %v8446_v3 = vcombine.high %v221_v63, %v225_v0  ;;  %v228_v4 = vld [vmem:[#allocation5 + $0x450] sm:$0xff] }
 0x182   :  { %v8451_v18 = vcombine.low %v228_v4, %v232_v5 }
 0x184   :  { %3537 = vmatpush1.bf16.msra.mxu0 %v8387_v9  ;;  %3701 = vmatpush1.bf16.msra.mxu1 %v8389_v10  ;;  %v8445_v9 = vcombine.low %v221_v63, %v225_v0  ;;  %v8452_v10 = vcombine.high %v228_v4, %v232_v5  ;;  %v289_v4 = vld [vmem:[#allocation5 + $0x638] sm:$0xff] }
 0x185   :  { %3538 = vmatprep.subr.bf16.mxu0 %v8396_v11  ;;  %3702 = vmatprep.subr.bf16.mxu1 %v8398_v13  ;;  %v8454_v11 = vcombine.high %v229_v6, %v233_v7  ;;  %v236_v13 = vld [vmem:[#allocation5 + $0x490] sm:$0xff] }
 0x186   :  { %v8459_v27 = vcombine.low %v236_v13, %v240_v14 }
 0x188   :  { %3539 = vmatpush1.bf16.msra.mxu0 %v8395_v19  ;;  %3703 = vmatpush1.bf16.msra.mxu1 %v8397_v20  ;;  %v8453_v19 = vcombine.low %v229_v6, %v233_v7  ;;  %v8460_v20 = vcombine.high %v236_v13, %v240_v14  ;;  %v297_v13 = vld [vmem:[#allocation5 + $0x678] sm:$0xff] }
 0x189   :  { %3540 = vmatprep.subr.bf16.mxu0 %v8404_v21  ;;  %3704 = vmatprep.subr.bf16.mxu1 %v8406_v22  ;;  %v8462_v21 = vcombine.high %v237_v16, %v241_v17  ;;  %v244_v22 = vld [vmem:[#allocation5 + $0x4d0] sm:$0xff] }
 0x18a   :  { %v8467_v15 = vcombine.low %v244_v22, %v248_v57 }
 0x18c   :  { %3541 = vmatpush1.bf16.msra.mxu0 %v8403_v28  ;;  %3705 = vmatpush1.bf16.msra.mxu1 %v8405_v29  ;;  %v8468_v28 = vcombine.high %v244_v22, %v248_v57  ;;  %v8470_v29 = vcombine.high %v245_v23, %v249_v26  ;;  %v305_v22 = vld [vmem:[#allocation5 + $0x6b8] sm:$0xff] }
 0x18d   :  { %3542 = vmatprep.subr.bf16.mxu0 %v8412_v30  ;;  %3706 = vmatprep.subr.bf16.mxu1 %v8414_v31  ;;  %v252_v30 = vld [vmem:[#allocation5 + $0x510] sm:$0xff] }
 0x18e   :  { %v256_v31 = vld [vmem:[#allocation5 + $0x530] sm:$0xff] }
 0x18f   :  { %v8475_v43 = vcombine.low %v252_v30, %v256_v31 }
 0x190   :  { %3543 = vmatpush1.bf16.msra.mxu0 %v8411_v37  ;;  %3707 = vmatpush1.bf16.msra.mxu1 %v8413_v38  ;;  %v8476_v37 = vcombine.high %v252_v30, %v256_v31  ;;  %v260_v38 = vld [vmem:[#allocation5 + $0x550] sm:$0xff]  ;;  %v313_v30 = vld [vmem:[#allocation5 + $0x6f8] sm:$0xff] }
 0x191   :  { %3544 = vmatprep.subr.bf16.mxu0 %v8420_v40  ;;  %3708 = vmatprep.subr.bf16.mxu1 %v8422_v41  ;;  %v264_v40 = vld [vmem:[#allocation5 + $0x570] sm:$0xff]  ;;  %v261_v41 = vld [vmem:[#allocation5 + $0x558] sm:$0xff] }
 0x192   :  { %v8484_v45 = vcombine.high %v260_v38, %v264_v40  ;;  %v8483_v51 = vcombine.low %v260_v38, %v264_v40  ;;  %v8485_v52 = vcombine.low %v261_v41, %v265_v42  ;;  %v321_v38 = vld [vmem:[#allocation5 + $0x738] sm:$0xff] }
 0x194   :  { %3545 = vmatpush1.bf16.msra.mxu0 %v8419_v24  ;;  %3709 = vmatpush1.bf16.msra.mxu1 %v8421_v47  ;;  %v8486_v24 = vcombine.high %v261_v41, %v265_v42  ;;  %v268_v47 = vld [vmem:[#allocation5 + $0x590] sm:$0xff] }
 0x195   :  { %3546 = vmatprep.subr.bf16.mxu0 %v8428_v48  ;;  %3710 = vmatprep.subr.bf16.mxu1 %v8430_v49  ;;  %v272_v48 = vld [vmem:[#allocation5 + $0x5b0] sm:$0xff]  ;;  %v269_v49 = vld [vmem:[#allocation5 + $0x598] sm:$0xff] }
 0x196   :  { %v8492_v54 = vcombine.high %v268_v47, %v272_v48  ;;  %v8491_v62 = vcombine.low %v268_v47, %v272_v48  ;;  %v8493_v63 = vcombine.low %v269_v49, %v273_v50  ;;  %v329_v47 = vld [vmem:[#allocation5 + $0x778] sm:$0xff] }
 0x198   :  { %3547 = vmatpush1.bf16.msra.mxu0 %v8427_v56  ;;  %3711 = vmatpush1.bf16.msra.mxu1 %v8429_v58  ;;  %v8494_v56 = vcombine.high %v269_v49, %v273_v50  ;;  %v276_v58 = vld [vmem:[#allocation5 + $0x5d0] sm:$0xff] }
 0x199   :  { %3548 = vmatprep.subr.bf16.mxu0 %v8436_v59  ;;  %3712 = vmatprep.subr.bf16.mxu1 %v8438_v60  ;;  %v280_v59 = vld [vmem:[#allocation5 + $0x5f0] sm:$0xff]  ;;  %v277_v60 = vld [vmem:[#allocation5 + $0x5d8] sm:$0xff] }
 0x19a   :  { %v8500_v0 = vcombine.high %v276_v58, %v280_v59  ;;  %v8499_v5 = vcombine.low %v276_v58, %v280_v59  ;;  %v8501_v6 = vcombine.low %v277_v60, %v281_v61  ;;  %v337_v58 = vld [vmem:[#allocation5 + $0x7b8] sm:$0xff] }
 0x19c   :  { %3549 = vmatpush1.bf16.msra.mxu0 %v8435_v1  ;;  %3713 = vmatpush1.bf16.msra.mxu1 %v8437_v2  ;;  %v8502_v1 = vcombine.high %v277_v60, %v281_v61  ;;  %v284_v2 = vld [vmem:[#allocation5 + $0x610] sm:$0xff] }
 0x19d   :  { %3559 = vmatprep.subr.bf16.mxu0 %v8444_v39  ;;  %3723 = vmatprep.subr.bf16.mxu1 %v8446_v3  ;;  %v288_v39 = vld [vmem:[#allocation5 + $0x630] sm:$0xff]  ;;  %v285_v3 = vld [vmem:[#allocation5 + $0x618] sm:$0xff] }
 0x19e   :  { %v8508_v7 = vcombine.high %v284_v2, %v288_v39  ;;  %v8507_v14 = vcombine.low %v284_v2, %v288_v39  ;;  %v345_v2 = vld [vmem:[#allocation5 + $0x7f8] sm:$0xff] }
 0x19f   :  { %3551 = vmatmul.mubr.bf16.vlgmr.msra.gmra.mrb[4].mxu0 %v9929_v12  ;;  %3715 = vmatmul.mubr.bf16.vlgmr.msra.gmra.mrb[4].mxu1 %v9929_v12  ;;  %v8461_v12 = vcombine.low %v237_v16, %v241_v17  ;;  %v8509_v16 = vcombine.low %v285_v3, %v289_v4 }
 0x1a0   :  { %3560 = vmatpush1.bf16.msra.mxu0 %v8443_v8  ;;  %3724 = vmatpush1.bf16.msra.mxu1 %v8445_v9  ;;  %v8510_v8 = vcombine.high %v285_v3, %v289_v4  ;;  %v292_v9 = vld [vmem:[#allocation5 + $0x650] sm:$0xff] }
 0x1a1   :  { %3561 = vmatprep.subr.bf16.mxu0 %v8452_v10  ;;  %3725 = vmatprep.subr.bf16.mxu1 %v8454_v11  ;;  %v296_v10 = vld [vmem:[#allocation5 + $0x670] sm:$0xff]  ;;  %v293_v11 = vld [vmem:[#allocation5 + $0x658] sm:$0xff] }
 0x1a2   :  { %3591 = vmatprep.mubr.bf16.mxu0 %v9935_v53  ;;  %3755 = vmatprep.mubr.bf16.mxu1 %v9935_v53  ;;  %v8478_v53 = vcombine.high %v253_v33, %v257_v34  ;;  %v8516_v17 = vcombine.high %v292_v9, %v296_v10  ;;  %v8515_v57 = vcombine.low %v292_v9, %v296_v10  ;;  %v353_v9 = vld [vmem:[#allocation5 + $0x838] sm:$0xff] }
 0x1a3   :  { %v8517_v23 = vcombine.low %v293_v11, %v297_v13 }
 0x1a4   :  { %3562 = vmatpush1.bf16.msra.mxu0 %v8451_v18  ;;  %3726 = vmatpush1.bf16.msra.mxu1 %v8453_v19  ;;  %v8518_v18 = vcombine.high %v293_v11, %v297_v13  ;;  %v300_v19 = vld [vmem:[#allocation5 + $0x690] sm:$0xff] }
 0x1a5   :  { %3563 = vmatprep.subr.bf16.mxu0 %v8460_v20  ;;  %3727 = vmatprep.subr.bf16.mxu1 %v8462_v21  ;;  %v304_v20 = vld [vmem:[#allocation5 + $0x6b0] sm:$0xff]  ;;  %v301_v21 = vld [vmem:[#allocation5 + $0x698] sm:$0xff] }
 0x1a6   :  { %v8524_v26 = vcombine.high %v300_v19, %v304_v20  ;;  %v8523_v31 = vcombine.low %v300_v19, %v304_v20  ;;  %v8525_v33 = vcombine.low %v301_v21, %v305_v22  ;;  %v361_v19 = vld [vmem:[#allocation5 + $0x878] sm:$0xff] }
 0x1a8   :  { %3564 = vmatpush1.bf16.msra.mxu0 %v8459_v27  ;;  %3728 = vmatpush1.bf16.msra.mxu1 %v8461_v12  ;;  %v8526_v27 = vcombine.high %v301_v21, %v305_v22  ;;  %v308_v12 = vld [vmem:[#allocation5 + $0x6d0] sm:$0xff] }
 0x1a9   :  { %3565 = vmatprep.subr.bf16.mxu0 %v8468_v28  ;;  %3729 = vmatprep.subr.bf16.mxu1 %v8470_v29  ;;  %v312_v28 = vld [vmem:[#allocation5 + $0x6f0] sm:$0xff]  ;;  %v309_v29 = vld [vmem:[#allocation5 + $0x6d8] sm:$0xff] }
 0x1aa   :  { %v8532_v34 = vcombine.high %v308_v12, %v312_v28  ;;  %v8531_v40 = vcombine.low %v308_v12, %v312_v28  ;;  %v8533_v41 = vcombine.low %v309_v29, %v313_v30  ;;  %v369_v12 = vld [vmem:[#allocation5 + $0x8b8] sm:$0xff] }
 0x1ac   :  { %3566 = vmatpush1.bf16.msra.mxu0 %v8467_v15  ;;  %3730 = vmatpush1.bf16.msra.mxu1 %v8469_v35  ;;  %v8534_v15 = vcombine.high %v309_v29, %v313_v30  ;;  %v316_v35 = vld [vmem:[#allocation5 + $0x710] sm:$0xff] }
 0x1ad   :  { %3567 = vmatprep.subr.bf16.mxu0 %v8476_v37  ;;  %3731 = vmatprep.subr.bf16.mxu1 %v8478_v53  ;;  %v320_v37 = vld [vmem:[#allocation5 + $0x730] sm:$0xff]  ;;  %v317_v53 = vld [vmem:[#allocation5 + $0x718] sm:$0xff] }
 0x1ae   :  { %v8540_v42 = vcombine.high %v316_v35, %v320_v37  ;;  %v8539_v48 = vcombine.low %v316_v35, %v320_v37  ;;  %v8541_v49 = vcombine.low %v317_v53, %v321_v38  ;;  %v377_v35 = vld [vmem:[#allocation5 + $0x8f8] sm:$0xff] }
 0x1b0   :  { %3568 = vmatpush1.bf16.msra.mxu0 %v8475_v43  ;;  %3732 = vmatpush1.bf16.msra.mxu1 %v8477_v44  ;;  %v8542_v43 = vcombine.high %v317_v53, %v321_v38  ;;  %v324_v44 = vld [vmem:[#allocation5 + $0x750] sm:$0xff] }
 0x1b1   :  { %3569 = vmatprep.subr.bf16.mxu0 %v8484_v45  ;;  %3733 = vmatprep.subr.bf16.mxu1 %v8486_v24  ;;  %v328_v45 = vld [vmem:[#allocation5 + $0x770] sm:$0xff]  ;;  %v325_v24 = vld [vmem:[#allocation5 + $0x758] sm:$0xff] }
 0x1b2   :  { %v8548_v50 = vcombine.high %v324_v44, %v328_v45  ;;  %v8547_v59 = vcombine.low %v324_v44, %v328_v45  ;;  %v8549_v60 = vcombine.low %v325_v24, %v329_v47 }
 0x1b4   :  { %3570 = vmatpush1.bf16.msra.mxu0 %v8483_v51  ;;  %3734 = vmatpush1.bf16.msra.mxu1 %v8485_v52  ;;  %v8550_v51 = vcombine.high %v325_v24, %v329_v47  ;;  %v332_v52 = vld [vmem:[#allocation5 + $0x790] sm:$0xff] }
 0x1b5   :  { %3571 = vmatprep.subr.bf16.mxu0 %v8492_v54  ;;  %3735 = vmatprep.subr.bf16.mxu1 %v8494_v56  ;;  %v336_v54 = vld [vmem:[#allocation5 + $0x7b0] sm:$0xff]  ;;  %v333_v56 = vld [vmem:[#allocation5 + $0x798] sm:$0xff] }
 0x1b6   :  { %v8556_v61 = vcombine.high %v332_v52, %v336_v54  ;;  %v8555_v39 = vcombine.low %v332_v52, %v336_v54  ;;  %v8557_v3 = vcombine.low %v333_v56, %v337_v58  ;;  %v388_v47 = vld [vmem:[#allocation5 + $0x950] sm:$0xff] }
 0x1b8   :  { %3572 = vmatpush1.bf16.msra.mxu0 %v8491_v62  ;;  %3736 = vmatpush1.bf16.msra.mxu1 %v8493_v63  ;;  %v8558_v62 = vcombine.high %v333_v56, %v337_v58  ;;  %v340_v63 = vld [vmem:[#allocation5 + $0x7d0] sm:$0xff] }
 0x1b9   :  { %3573 = vmatprep.subr.bf16.mxu0 %v8500_v0  ;;  %3737 = vmatprep.subr.bf16.mxu1 %v8502_v1  ;;  %v344_v0 = vld [vmem:[#allocation5 + $0x7f0] sm:$0xff]  ;;  %v341_v1 = vld [vmem:[#allocation5 + $0x7d8] sm:$0xff] }
 0x1ba   :  { %v8564_v4 = vcombine.high %v340_v63, %v344_v0  ;;  %v8563_v10 = vcombine.low %v340_v63, %v344_v0  ;;  %v8565_v11 = vcombine.low %v341_v1, %v345_v2  ;;  %v396_v58 = vld [vmem:[#allocation5 + $0x990] sm:$0xff] }
 0x1bc   :  { %3574 = vmatpush1.bf16.msra.mxu0 %v8499_v5  ;;  %3738 = vmatpush1.bf16.msra.mxu1 %v8501_v6  ;;  %v8566_v5 = vcombine.high %v341_v1, %v345_v2  ;;  %v348_v6 = vld [vmem:[#allocation5 + $0x810] sm:$0xff] }
 0x1bd   :  { %3575 = vmatprep.subr.bf16.mxu0 %v8508_v7  ;;  %3739 = vmatprep.subr.bf16.mxu1 %v8510_v8  ;;  %v352_v7 = vld [vmem:[#allocation5 + $0x830] sm:$0xff]  ;;  %v349_v8 = vld [vmem:[#allocation5 + $0x818] sm:$0xff] }
 0x1be   :  { %v8572_v13 = vcombine.high %v348_v6, %v352_v7  ;;  %v8571_v20 = vcombine.low %v348_v6, %v352_v7  ;;  %v8573_v21 = vcombine.low %v349_v8, %v353_v9  ;;  %v404_v2 = vld [vmem:[#allocation5 + $0x9d0] sm:$0xff] }
 0x1c0   :  { %3576 = vmatpush1.bf16.msra.mxu0 %v8507_v14  ;;  %3740 = vmatpush1.bf16.msra.mxu1 %v8509_v16  ;;  %v8574_v14 = vcombine.high %v349_v8, %v353_v9  ;;  %v356_v16 = vld [vmem:[#allocation5 + $0x850] sm:$0xff] }
 0x1c1   :  { %3577 = vmatprep.subr.bf16.mxu0 %v8516_v17  ;;  %3741 = vmatprep.subr.bf16.mxu1 %v8518_v18  ;;  %v360_v17 = vld [vmem:[#allocation5 + $0x870] sm:$0xff]  ;;  %v357_v18 = vld [vmem:[#allocation5 + $0x858] sm:$0xff] }
 0x1c2   :  { %v8580_v22 = vcombine.high %v356_v16, %v360_v17  ;;  %v8579_v28 = vcombine.low %v356_v16, %v360_v17  ;;  %v8581_v29 = vcombine.low %v357_v18, %v361_v19  ;;  %v412_v9 = vld [vmem:[#allocation5 + $0xa10] sm:$0xff] }
 0x1c4   :  { %3578 = vmatpush1.bf16.msra.mxu0 %v8515_v57  ;;  %3742 = vmatpush1.bf16.msra.mxu1 %v8517_v23  ;;  %v8582_v57 = vcombine.high %v357_v18, %v361_v19  ;;  %v364_v23 = vld [vmem:[#allocation5 + $0x890] sm:$0xff] }
 0x1c5   :  { %3579 = vmatprep.subr.bf16.mxu0 %v8524_v26  ;;  %3743 = vmatprep.subr.bf16.mxu1 %v8526_v27  ;;  %v368_v26 = vld [vmem:[#allocation5 + $0x8b0] sm:$0xff]  ;;  %v365_v27 = vld [vmem:[#allocation5 + $0x898] sm:$0xff] }
 0x1c6   :  { %v8588_v30 = vcombine.high %v364_v23, %v368_v26  ;;  %v8587_v37 = vcombine.low %v364_v23, %v368_v26  ;;  %v420_v19 = vld [vmem:[#allocation5 + $0xa50] sm:$0xff] }
 0x1c8   :  { %3580 = vmatpush1.bf16.msra.mxu0 %v8523_v31  ;;  %3744 = vmatpush1.bf16.msra.mxu1 %v8525_v33  ;;  %v8590_v31 = vcombine.high %v365_v27, %v369_v12  ;;  %v372_v33 = vld [vmem:[#allocation5 + $0x8d0] sm:$0xff] }
 0x1c9   :  { %3581 = vmatprep.subr.bf16.mxu0 %v8532_v34  ;;  %3745 = vmatprep.subr.bf16.mxu1 %v8534_v15  ;;  %v376_v34 = vld [vmem:[#allocation5 + $0x8f0] sm:$0xff]  ;;  %v373_v15 = vld [vmem:[#allocation5 + $0x8d8] sm:$0xff] }
 0x1ca   :  { %v8596_v53 = vcombine.high %v372_v33, %v376_v34  ;;  %v8598_v38 = vcombine.high %v373_v15, %v377_v35  ;;  %v8595_v44 = vcombine.low %v372_v33, %v376_v34  ;;  %v8597_v45 = vcombine.low %v373_v15, %v377_v35  ;;  %v436_v35 = vld [vmem:[#allocation5 + $0xad0] sm:$0xff] }
 0x1cc   :  { %3582 = vmatpush1.bf16.msra.mxu0 %v8531_v40  ;;  %3746 = vmatpush1.bf16.msra.mxu1 %v8533_v41  ;;  %v380_v40 = vld [vmem:[#allocation5 + $0x910] sm:$0xff] }
 0x1cd   :  { %3583 = vmatprep.subr.bf16.mxu0 %v8540_v42  ;;  %3747 = vmatprep.subr.bf16.mxu1 %v8542_v43  ;;  %v384_v41 = vld [vmem:[#allocation5 + $0x930] sm:$0xff]  ;;  %v381_v42 = vld [vmem:[#allocation5 + $0x918] sm:$0xff] }
 0x1ce   :  { %v385_v43 = vld [vmem:[#allocation5 + $0x938] sm:$0xff]  ;;  %v8604_v24 = vcombine.high %v380_v40, %v384_v41 }
 0x1cf   :  { %v8605_v52 = vcombine.low %v381_v42, %v385_v43 }
 0x1d0   :  { %3584 = vmatpush1.bf16.msra.mxu0 %v8539_v48  ;;  %3748 = vmatpush1.bf16.msra.mxu1 %v8541_v49  ;;  %v392_v48 = vld [vmem:[#allocation5 + $0x970] sm:$0xff]  ;;  %v389_v49 = vld [vmem:[#allocation5 + $0x958] sm:$0xff] }
 0x1d1   :  { %3585 = vmatprep.subr.bf16.mxu0 %v8548_v50  ;;  %3749 = vmatprep.subr.bf16.mxu1 %v8550_v51  ;;  %v393_v50 = vld [vmem:[#allocation5 + $0x978] sm:$0xff]  ;;  %v8603_v51 = vcombine.low %v380_v40, %v384_v41  ;;  %v8612_v54 = vcombine.high %v388_v47, %v392_v48 }
 0x1d2   :  { %v8614_v56 = vcombine.high %v389_v49, %v393_v50  ;;  %v8613_v63 = vcombine.low %v389_v49, %v393_v50  ;;  %v452_v50 = vld [vmem:[#allocation5 + $0xb50] sm:$0xff] }
 0x1d4   :  { %3586 = vmatpush1.bf16.msra.mxu0 %v8547_v59  ;;  %3750 = vmatpush1.bf16.msra.mxu1 %v8549_v60  ;;  %v400_v59 = vld [vmem:[#allocation5 + $0x9b0] sm:$0xff]  ;;  %v397_v60 = vld [vmem:[#allocation5 + $0x998] sm:$0xff] }
 0x1d5   :  { %3587 = vmatprep.subr.bf16.mxu0 %v8556_v61  ;;  %3751 = vmatprep.subr.bf16.mxu1 %v8558_v62  ;;  %v401_v61 = vld [vmem:[#allocation5 + $0x9b8] sm:$0xff]  ;;  %v8611_v62 = vcombine.low %v388_v47, %v392_v48  ;;  %v8620_v0 = vcombine.high %v396_v58, %v400_v59 }
 0x1d6   :  { %v8622_v1 = vcombine.high %v397_v60, %v401_v61  ;;  %v8621_v6 = vcombine.low %v397_v60, %v401_v61  ;;  %v460_v61 = vld [vmem:[#allocation5 + $0xb90] sm:$0xff] }
 0x1d8   :  { %3588 = vmatpush1.bf16.msra.mxu0 %v8555_v39  ;;  %3752 = vmatpush1.bf16.msra.mxu1 %v8557_v3  ;;  %v408_v39 = vld [vmem:[#allocation5 + $0x9f0] sm:$0xff]  ;;  %v405_v3 = vld [vmem:[#allocation5 + $0x9d8] sm:$0xff] }
 0x1d9   :  { %3589 = vmatprep.subr.bf16.mxu0 %v8564_v4  ;;  %3753 = vmatprep.subr.bf16.mxu1 %v8566_v5  ;;  %v409_v4 = vld [vmem:[#allocation5 + $0x9f8] sm:$0xff]  ;;  %v8619_v5 = vcombine.low %v396_v58, %v400_v59  ;;  %v8628_v7 = vcombine.high %v404_v2, %v408_v39 }
 0x1da   :  { %v8630_v8 = vcombine.high %v405_v3, %v409_v4  ;;  %v8629_v16 = vcombine.low %v405_v3, %v409_v4  ;;  %v468_v4 = vld [vmem:[#allocation5 + $0xbd0] sm:$0xff] }
 0x1dc   :  { %3590 = vmatpush1.bf16.msra.mxu0 %v8563_v10  ;;  %3754 = vmatpush1.bf16.msra.mxu1 %v8565_v11  ;;  %v416_v10 = vld [vmem:[#allocation5 + $0xa30] sm:$0xff]  ;;  %v413_v11 = vld [vmem:[#allocation5 + $0xa18] sm:$0xff] }
 0x1dd   :  { %3600 = vmatprep.subr.bf16.mxu0 %v8572_v13  ;;  %3764 = vmatprep.subr.bf16.mxu1 %v8574_v14  ;;  %v417_v13 = vld [vmem:[#allocation5 + $0xa38] sm:$0xff]  ;;  %v8627_v14 = vcombine.low %v404_v2, %v408_v39  ;;  %v8636_v17 = vcombine.high %v412_v9, %v416_v10 }
 0x1de   :  { %v8638_v18 = vcombine.high %v413_v11, %v417_v13  ;;  %v8637_v23 = vcombine.low %v413_v11, %v417_v13  ;;  %v476_v13 = vld [vmem:[#allocation5 + $0xc10] sm:$0xff] }
 0x1df   :  { %3592 = vmatmul.mubr.bf16.vlgmr.msra.gmra.mrb[4].mxu0 %v9945_v25  ;;  %3756 = vmatmul.mubr.bf16.vlgmr.msra.gmra.mrb[4].mxu1 %v9945_v25  ;;  %v8589_v25 = vcombine.low %v365_v27, %v369_v12  ;;  %v428_v12 = vld [vmem:[#allocation5 + $0xa90] sm:$0xff] }
 0x1e0   :  { %3601 = vmatpush1.bf16.msra.mxu0 %v8571_v20  ;;  %3765 = vmatpush1.bf16.msra.mxu1 %v8573_v21  ;;  %v424_v20 = vld [vmem:[#allocation5 + $0xa70] sm:$0xff]  ;;  %v421_v21 = vld [vmem:[#allocation5 + $0xa58] sm:$0xff] }
 0x1e1   :  { %3602 = vmatprep.subr.bf16.mxu0 %v8580_v22  ;;  %3766 = vmatprep.subr.bf16.mxu1 %v8582_v57  ;;  %v425_v22 = vld [vmem:[#allocation5 + $0xa78] sm:$0xff]  ;;  %v8635_v57 = vcombine.low %v412_v9, %v416_v10  ;;  %v8644_v26 = vcombine.high %v420_v19, %v424_v20 }
 0x1e2   :  { %3632 = vmatprep.mubr.bf16.mxu0 %v9949_v32  ;;  %3796 = vmatprep.mubr.bf16.mxu1 %v9949_v32  ;;  %v8606_v32 = vcombine.high %v381_v42, %v385_v43  ;;  %v8646_v27 = vcombine.high %v421_v21, %v425_v22  ;;  %v8645_v33 = vcombine.low %v421_v21, %v425_v22  ;;  %v444_v43 = vld [vmem:[#allocation5 + $0xb10] sm:$0xff] }
 0x1e3   :  { %v484_v22 = vld [vmem:[#allocation5 + $0xc50] sm:$0xff] }
 0x1e4   :  { %3603 = vmatpush1.bf16.msra.mxu0 %v8579_v28  ;;  %3767 = vmatpush1.bf16.msra.mxu1 %v8581_v29  ;;  %v432_v28 = vld [vmem:[#allocation5 + $0xab0] sm:$0xff]  ;;  %v429_v29 = vld [vmem:[#allocation5 + $0xa98] sm:$0xff] }
 0x1e5   :  { %3604 = vmatprep.subr.bf16.mxu0 %v8588_v30  ;;  %3768 = vmatprep.subr.bf16.mxu1 %v8590_v31  ;;  %v433_v30 = vld [vmem:[#allocation5 + $0xab8] sm:$0xff]  ;;  %v8643_v31 = vcombine.low %v420_v19, %v424_v20  ;;  %v8652_v34 = vcombine.high %v428_v12, %v432_v28 }
 0x1e6   :  { %v8654_v15 = vcombine.high %v429_v29, %v433_v30  ;;  %v8653_v40 = vcombine.low %v429_v29, %v433_v30  ;;  %v492_v30 = vld [vmem:[#allocation5 + $0xc90] sm:$0xff] }
 0x1e8   :  { %3605 = vmatpush1.bf16.msra.mxu0 %v8587_v37  ;;  %3769 = vmatpush1.bf16.msra.mxu1 %v8589_v25  ;;  %v440_v37 = vld [vmem:[#allocation5 + $0xaf0] sm:$0xff]  ;;  %v437_v25 = vld [vmem:[#allocation5 + $0xad8] sm:$0xff] }
 0x1e9   :  { %3606 = vmatprep.subr.bf16.mxu0 %v8596_v53  ;;  %3770 = vmatprep.subr.bf16.mxu1 %v8598_v38  ;;  %v441_v53 = vld [vmem:[#allocation5 + $0xaf8] sm:$0xff]  ;;  %v8651_v38 = vcombine.low %v428_v12, %v432_v28  ;;  %v8660_v41 = vcombine.high %v436_v35, %v440_v37 }
 0x1ea   :  { %v8662_v42 = vcombine.high %v437_v25, %v441_v53  ;;  %v8661_v47 = vcombine.low %v437_v25, %v441_v53  ;;  %v500_v53 = vld [vmem:[#allocation5 + $0xcd0] sm:$0xff] }
 0x1ec   :  { %3607 = vmatpush1.bf16.msra.mxu0 %v8595_v44  ;;  %3771 = vmatpush1.bf16.msra.mxu1 %v8597_v45  ;;  %v448_v44 = vld [vmem:[#allocation5 + $0xb30] sm:$0xff]  ;;  %v445_v45 = vld [vmem:[#allocation5 + $0xb18] sm:$0xff] }
 0x1ed   :  { %3608 = vmatprep.subr.bf16.mxu0 %v8604_v24  ;;  %3772 = vmatprep.subr.bf16.mxu1 %v8606_v32  ;;  %v449_v24 = vld [vmem:[#allocation5 + $0xb38] sm:$0xff]  ;;  %v8659_v32 = vcombine.low %v436_v35, %v440_v37  ;;  %v8668_v48 = vcombine.high %v444_v43, %v448_v44 }
 0x1ee   :  { %v8670_v49 = vcombine.high %v445_v45, %v449_v24  ;;  %v8669_v58 = vcombine.low %v445_v45, %v449_v24  ;;  %v508_v45 = vld [vmem:[#allocation5 + $0xd10] sm:$0xff] }
 0x1ef   :  { %v512_v24 = vld [vmem:[#allocation5 + $0xd30] sm:$0xff] }
 0x1f0   :  { %3609 = vmatpush1.bf16.msra.mxu0 %v8603_v51  ;;  %3773 = vmatpush1.bf16.msra.mxu1 %v8605_v52  ;;  %v456_v51 = vld [vmem:[#allocation5 + $0xb70] sm:$0xff]  ;;  %v453_v52 = vld [vmem:[#allocation5 + $0xb58] sm:$0xff] }
 0x1f1   :  { %3610 = vmatprep.subr.bf16.mxu0 %v8612_v54  ;;  %3774 = vmatprep.subr.bf16.mxu1 %v8614_v56  ;;  %v457_v54 = vld [vmem:[#allocation5 + $0xb78] sm:$0xff]  ;;  %v8667_v56 = vcombine.low %v444_v43, %v448_v44  ;;  %v8676_v59 = vcombine.high %v452_v50, %v456_v51 }
 0x1f2   :  { %v8678_v60 = vcombine.high %v453_v52, %v457_v54  ;;  %v8677_v2 = vcombine.low %v453_v52, %v457_v54  ;;  %v520_v52 = vld [vmem:[#allocation5 + $0xd70] sm:$0xff]  ;;  %v517_v54 = vld [vmem:[#allocation5 + $0xd58] sm:$0xff] }
 0x1f4   :  { %3611 = vmatpush1.bf16.msra.mxu0 %v8611_v62  ;;  %3775 = vmatpush1.bf16.msra.mxu1 %v8613_v63  ;;  %v464_v62 = vld [vmem:[#allocation5 + $0xbb0] sm:$0xff]  ;;  %v461_v63 = vld [vmem:[#allocation5 + $0xb98] sm:$0xff] }
 0x1f5   :  { %3612 = vmatprep.subr.bf16.mxu0 %v8620_v0  ;;  %3776 = vmatprep.subr.bf16.mxu1 %v8622_v1  ;;  %v465_v0 = vld [vmem:[#allocation5 + $0xbb8] sm:$0xff]  ;;  %v8675_v1 = vcombine.low %v452_v50, %v456_v51  ;;  %v8684_v39 = vcombine.high %v460_v61, %v464_v62  ;;  %v8732_v50 = vcombine.high %v508_v45, %v512_v24  ;;  %v516_v51 = vld [vmem:[#allocation5 + $0xd50] sm:$0xff] }
 0x1f6   :  { %v8686_v3 = vcombine.high %v461_v63, %v465_v0  ;;  %v8685_v9 = vcombine.low %v461_v63, %v465_v0  ;;  %v528_v63 = vld [vmem:[#allocation5 + $0xdb0] sm:$0xff]  ;;  %v525_v0 = vld [vmem:[#allocation5 + $0xd98] sm:$0xff] }
 0x1f8   :  { %3613 = vmatpush1.bf16.msra.mxu0 %v8619_v5  ;;  %3777 = vmatpush1.bf16.msra.mxu1 %v8621_v6  ;;  %v472_v5 = vld [vmem:[#allocation5 + $0xbf0] sm:$0xff]  ;;  %v469_v6 = vld [vmem:[#allocation5 + $0xbd8] sm:$0xff] }
 0x1f9   :  { %3614 = vmatprep.subr.bf16.mxu0 %v8628_v7  ;;  %3778 = vmatprep.subr.bf16.mxu1 %v8630_v8  ;;  %v473_v7 = vld [vmem:[#allocation5 + $0xbf8] sm:$0xff]  ;;  %v8683_v8 = vcombine.low %v460_v61, %v464_v62  ;;  %v8692_v10 = vcombine.high %v468_v4, %v472_v5  ;;  %v524_v62 = vld [vmem:[#allocation5 + $0xd90] sm:$0xff] }
 0x1fa   :  { %v8694_v11 = vcombine.high %v469_v6, %v473_v7  ;;  %v8693_v19 = vcombine.low %v469_v6, %v473_v7  ;;  %v532_v6 = vld [vmem:[#allocation5 + $0xdd0] sm:$0xff] }
 0x1fb   :  { %v536_v7 = vld [vmem:[#allocation5 + $0xdf0] sm:$0xff] }
 0x1fc   :  { %3615 = vmatpush1.bf16.msra.mxu0 %v8627_v14  ;;  %3779 = vmatpush1.bf16.msra.mxu1 %v8629_v16  ;;  %v480_v14 = vld [vmem:[#allocation5 + $0xc30] sm:$0xff]  ;;  %v477_v16 = vld [vmem:[#allocation5 + $0xc18] sm:$0xff] }
 0x1fd   :  { %3616 = vmatprep.subr.bf16.mxu0 %v8636_v17  ;;  %3780 = vmatprep.subr.bf16.mxu1 %v8638_v18  ;;  %v481_v17 = vld [vmem:[#allocation5 + $0xc38] sm:$0xff]  ;;  %v8691_v18 = vcombine.low %v468_v4, %v472_v5  ;;  %v8700_v20 = vcombine.high %v476_v13, %v480_v14 }
 0x1fe   :  { %v8702_v21 = vcombine.high %v477_v16, %v481_v17  ;;  %v8701_v12 = vcombine.low %v477_v16, %v481_v17  ;;  %v8747_v16 = vcombine.low %v524_v62, %v528_v63 }
 0x200   :  { %3617 = vmatpush1.bf16.msra.mxu0 %v8635_v57  ;;  %3781 = vmatpush1.bf16.msra.mxu1 %v8637_v23  ;;  %v488_v57 = vld [vmem:[#allocation5 + $0xc70] sm:$0xff]  ;;  %v485_v23 = vld [vmem:[#allocation5 + $0xc58] sm:$0xff] }
 0x201   :  { %3618 = vmatprep.subr.bf16.mxu0 %v8644_v26  ;;  %3782 = vmatprep.subr.bf16.mxu1 %v8646_v27  ;;  %v489_v26 = vld [vmem:[#allocation5 + $0xc78] sm:$0xff]  ;;  %v8699_v27 = vcombine.low %v476_v13, %v480_v14  ;;  %v8708_v28 = vcombine.high %v484_v22, %v488_v57 }
 0x202   :  { %v8710_v29 = vcombine.high %v485_v23, %v489_v26  ;;  %v8709_v35 = vcombine.low %v485_v23, %v489_v26  ;;  %v544_v23 = vld [vmem:[#allocation5 + $0xe30] sm:$0xff]  ;;  %v541_v26 = vld [vmem:[#allocation5 + $0xe18] sm:$0xff] }
 0x204   :  { %3619 = vmatpush1.bf16.msra.mxu0 %v8643_v31  ;;  %3783 = vmatpush1.bf16.msra.mxu1 %v8645_v33  ;;  %v496_v31 = vld [vmem:[#allocation5 + $0xcb0] sm:$0xff]  ;;  %v493_v33 = vld [vmem:[#allocation5 + $0xc98] sm:$0xff] }
 0x205   :  { %3620 = vmatprep.subr.bf16.mxu0 %v8652_v34  ;;  %3784 = vmatprep.subr.bf16.mxu1 %v8654_v15  ;;  %v497_v34 = vld [vmem:[#allocation5 + $0xcb8] sm:$0xff]  ;;  %v8707_v15 = vcombine.low %v484_v22, %v488_v57  ;;  %v8716_v37 = vcombine.high %v492_v30, %v496_v31  ;;  %v540_v57 = vld [vmem:[#allocation5 + $0xe10] sm:$0xff] }
 0x206   :  { %v8718_v25 = vcombine.high %v493_v33, %v497_v34 }
 0x208   :  { %3621 = vmatpush1.bf16.msra.mxu0 %v8651_v38  ;;  %3785 = vmatpush1.bf16.msra.mxu1 %v8653_v40  ;;  %v504_v38 = vld [vmem:[#allocation5 + $0xcf0] sm:$0xff]  ;;  %v501_v40 = vld [vmem:[#allocation5 + $0xcd8] sm:$0xff] }
 0x209   :  { %3622 = vmatprep.subr.bf16.mxu0 %v8660_v41  ;;  %3786 = vmatprep.subr.bf16.mxu1 %v8662_v42  ;;  %v505_v41 = vld [vmem:[#allocation5 + $0xcf8] sm:$0xff]  ;;  %v8715_v42 = vcombine.low %v492_v30, %v496_v31  ;;  %v8724_v43 = vcombine.high %v500_v53, %v504_v38  ;;  %v548_v31 = vld [vmem:[#allocation5 + $0xe50] sm:$0xff] }
 0x20a   :  { %v8726_v44 = vcombine.high %v501_v40, %v505_v41 }
 0x20c   :  { %3623 = vmatpush1.bf16.msra.mxu0 %v8659_v32  ;;  %3787 = vmatpush1.bf16.msra.mxu1 %v8661_v47  ;;  %v509_v32 = vld [vmem:[#allocation5 + $0xd18] sm:$0xff] }
 0x20d   :  { %3624 = vmatprep.subr.bf16.mxu0 %v8668_v48  ;;  %3788 = vmatprep.subr.bf16.mxu1 %v8670_v49  ;;  %v513_v47 = vld [vmem:[#allocation5 + $0xd38] sm:$0xff]  ;;  %v8723_v48 = vcombine.low %v500_v53, %v504_v38  ;;  %v8725_v49 = vcombine.low %v501_v40, %v505_v41  ;;  %v556_v38 = vld [vmem:[#allocation5 + $0xe90] sm:$0xff] }
 0x20e   :  { %v560_v40 = vld [vmem:[#allocation5 + $0xeb0] sm:$0xff]  ;;  %v557_v41 = vld [vmem:[#allocation5 + $0xe98] sm:$0xff] }
 0x210   :  { %3625 = vmatpush1.bf16.msra.mxu0 %v8667_v56  ;;  %3789 = vmatpush1.bf16.msra.mxu1 %v8669_v58  ;;  %v521_v56 = vld [vmem:[#allocation5 + $0xd78] sm:$0xff]  ;;  %v8731_v58 = vcombine.low %v508_v45, %v512_v24  ;;  %v564_v24 = vld [vmem:[#allocation5 + $0xed0] sm:$0xff] }
 0x211   :  { %3626 = vmatprep.subr.bf16.mxu0 %v8676_v59  ;;  %3790 = vmatprep.subr.bf16.mxu1 %v8678_v60  ;;  %v8733_v59 = vcombine.low %v509_v32, %v513_v47  ;;  %v8740_v60 = vcombine.high %v516_v51, %v520_v52  ;;  %v8742_v61 = vcombine.high %v517_v54, %v521_v56 }
 0x214   :  { %3627 = vmatpush1.bf16.msra.mxu0 %v8675_v1  ;;  %3791 = vmatpush1.bf16.msra.mxu1 %v8677_v2  ;;  %v529_v1 = vld [vmem:[#allocation5 + $0xdb8] sm:$0xff]  ;;  %v8739_v2 = vcombine.low %v516_v51, %v520_v52  ;;  %v572_v52 = vld [vmem:[#allocation5 + $0xf10] sm:$0xff] }
 0x215   :  { %3628 = vmatprep.subr.bf16.mxu0 %v8684_v39  ;;  %3792 = vmatprep.subr.bf16.mxu1 %v8686_v3  ;;  %v8741_v39 = vcombine.low %v517_v54, %v521_v56  ;;  %v8748_v3 = vcombine.high %v524_v62, %v528_v63  ;;  %v8750_v5 = vcombine.high %v525_v0, %v529_v1  ;;  %v576_v54 = vld [vmem:[#allocation5 + $0xf30] sm:$0xff]  ;;  %v573_v56 = vld [vmem:[#allocation5 + $0xf18] sm:$0xff] }
 0x216   :  { %v580_v63 = vld [vmem:[#allocation5 + $0xf50] sm:$0xff] }
 0x218   :  { %3629 = vmatpush1.bf16.msra.mxu0 %v8683_v8  ;;  %3793 = vmatpush1.bf16.msra.mxu1 %v8685_v9 }
 0x219   :  { %3630 = vmatprep.subr.bf16.mxu0 %v8692_v10  ;;  %3794 = vmatprep.subr.bf16.mxu1 %v8694_v11  ;;  %v533_v10 = vld [vmem:[#allocation5 + $0xdd8] sm:$0xff] }
 0x21a   :  { %v537_v11 = vld [vmem:[#allocation5 + $0xdf8] sm:$0xff] }
 0x21b   :  { %v8758_v22 = vcombine.high %v533_v10, %v537_v11 }
 0x21c   :  { %3631 = vmatpush1.bf16.msra.mxu0 %v8691_v18  ;;  %3795 = vmatpush1.bf16.msra.mxu1 %v8693_v19  ;;  %v8749_v19 = vcombine.low %v525_v0, %v529_v1  ;;  %v584_v0 = vld [vmem:[#allocation5 + $0xf70] sm:$0xff]  ;;  %v581_v1 = vld [vmem:[#allocation5 + $0xf58] sm:$0xff] }
 0x21d   :  { %3641 = vmatprep.subr.bf16.mxu0 %v8700_v20  ;;  %3805 = vmatprep.subr.bf16.mxu1 %v8702_v21  ;;  %v8756_v20 = vcombine.high %v532_v6, %v536_v7 }
 0x21f   :  { %3633 = vmatmul.mubr.bf16.vlgmr.msra.gmra.mrb[4].mxu0 %v9957_v36  ;;  %3797 = vmatmul.mubr.bf16.vlgmr.msra.gmra.mrb[4].mxu1 %v9957_v36  ;;  %v8717_v36 = vcombine.low %v493_v33, %v497_v34  ;;  %v552_v33 = vld [vmem:[#allocation5 + $0xe70] sm:$0xff]  ;;  %v549_v34 = vld [vmem:[#allocation5 + $0xe58] sm:$0xff] }
 0x220   :  { %3642 = vmatpush1.bf16.msra.mxu0 %v8699_v27  ;;  %3806 = vmatpush1.bf16.msra.mxu1 %v8701_v12  ;;  %v545_v27 = vld [vmem:[#allocation5 + $0xe38] sm:$0xff]  ;;  %v8755_v12 = vcombine.low %v532_v6, %v536_v7  ;;  %v588_v7 = vld [vmem:[#allocation5 + $0xf90] sm:$0xff] }
 0x221   :  { %3643 = vmatprep.subr.bf16.mxu0 %v8708_v28  ;;  %3807 = vmatprep.subr.bf16.mxu1 %v8710_v29  ;;  %v8757_v28 = vcombine.low %v533_v10, %v537_v11  ;;  %v8764_v29 = vcombine.high %v540_v57, %v544_v23  ;;  %v8766_v30 = vcombine.high %v541_v26, %v545_v27  ;;  %v592_v10 = vld [vmem:[#allocation5 + $0xfb0] sm:$0xff]  ;;  %v589_v11 = vld [vmem:[#allocation5 + $0xf98] sm:$0xff] }
 0x222   :  { %3673 = vmatprep.mubr.bf16.mxu0 %v9963_v46  ;;  %3837 = vmatprep.mubr.bf16.mxu1 %v9963_v46  ;;  %v8734_v46 = vcombine.high %v509_v32, %v513_v47  ;;  %v568_v32 = vld [vmem:[#allocation5 + $0xef0] sm:$0xff]  ;;  %v565_v47 = vld [vmem:[#allocation5 + $0xed8] sm:$0xff] }
 0x224   :  { %3644 = vmatpush1.bf16.msra.mxu0 %v8707_v15  ;;  %3808 = vmatpush1.bf16.msra.mxu1 %v8709_v35  ;;  %v553_v15 = vld [vmem:[#allocation5 + $0xe78] sm:$0xff]  ;;  %v8763_v35 = vcombine.low %v540_v57, %v544_v23  ;;  %v8811_v23 = vcombine.low %v588_v7, %v592_v10 }
 0x225   :  { %3645 = vmatprep.subr.bf16.mxu0 %v8716_v37  ;;  %3809 = vmatprep.subr.bf16.mxu1 %v8718_v25  ;;  %v8765_v37 = vcombine.low %v541_v26, %v545_v27  ;;  %v8772_v25 = vcombine.high %v548_v31, %v552_v33  ;;  %v8774_v53 = vcombine.high %v549_v34, %v553_v15  ;;  %v601_v57 = vld [vmem:[#allocation5 + $0xff8] sm:$0xff] }
 0x228   :  { %3646 = vmatpush1.bf16.msra.mxu0 %v8715_v42  ;;  %3810 = vmatpush1.bf16.msra.mxu1 %v8717_v36  ;;  %v561_v42 = vld [vmem:[#allocation5 + $0xeb8] sm:$0xff]  ;;  %v8771_v36 = vcombine.low %v548_v31, %v552_v33  ;;  %v3867_v31 = vld [vmem:[#allocation7 + $0x28] sm:$0xff] }
 0x229   :  { %3647 = vmatprep.subr.bf16.mxu0 %v8724_v43  ;;  %3811 = vmatprep.subr.bf16.mxu1 %v8726_v44  ;;  %v8773_v43 = vcombine.low %v549_v34, %v553_v15  ;;  %v8780_v44 = vcombine.high %v556_v38, %v560_v40  ;;  %v8782_v45 = vcombine.high %v557_v41, %v561_v42 }
 0x22c   :  { %3648 = vmatpush1.bf16.msra.mxu0 %v8723_v48  ;;  %3812 = vmatpush1.bf16.msra.mxu1 %v8725_v49  ;;  %v569_v48 = vld [vmem:[#allocation5 + $0xef8] sm:$0xff]  ;;  %v8779_v49 = vcombine.low %v556_v38, %v560_v40  ;;  %v3871_v40 = vld [vmem:[#allocation7 + $0x48] sm:$0xff] }
 0x22d   :  { %3649 = vmatprep.subr.bf16.mxu0 %v8732_v50  ;;  %3813 = vmatprep.subr.bf16.mxu1 %v8734_v46  ;;  %v8781_v50 = vcombine.low %v557_v41, %v561_v42  ;;  %v8788_v46 = vcombine.high %v564_v24, %v568_v32  ;;  %v8790_v51 = vcombine.high %v565_v47, %v569_v48  ;;  %v3875_v41 = vld [vmem:[#allocation7 + $0x68] sm:$0xff] }
 0x230   :  { %3650 = vmatpush1.bf16.msra.mxu0 %v8731_v58  ;;  %3814 = vmatpush1.bf16.msra.mxu1 %v8733_v59  ;;  %v577_v58 = vld [vmem:[#allocation5 + $0xf38] sm:$0xff]  ;;  %v8787_v59 = vcombine.low %v564_v24, %v568_v32  ;;  %v8834_v24 = vcombine.high %v3871_v40, %v3875_v41  ;;  %v3879_v32 = vld [vmem:[#allocation7 + $0x88] sm:$0xff] }
 0x231   :  { %3651 = vmatprep.subr.bf16.mxu0 %v8740_v60  ;;  %3815 = vmatprep.subr.bf16.mxu1 %v8742_v61  ;;  %v8789_v60 = vcombine.low %v565_v47, %v569_v48  ;;  %v8796_v61 = vcombine.high %v572_v52, %v576_v54  ;;  %v8798_v62 = vcombine.high %v573_v56, %v577_v58 }
 0x232   :  { %v9989_v4 = vpop.f32.mrb[0].mxu0  ;;  %v9991_v8 = vpop.f32.mrb[0].mxu1  ;;  %v8833_v48 = vcombine.low %v3871_v40, %v3875_v41  ;;  %v3934_v41 = vld [vmem:[#allocation7 + $0x240] sm:$0xff] }
 0x233   :  { %v9993_v9 = vpop.f32.mrb[1].mxu0  ;;  %v9995_v13 = vpop.f32.mrb[1].mxu1 }
 0x234   :  { %v3351_v14 = vpop.f32.mrb[2].mxu0  ;;  %3652 = vmatpush1.bf16.msra.mxu0 %v8739_v2  ;;  %v3515_v17 = vpop.f32.mrb[2].mxu1  ;;  %3816 = vmatpush1.bf16.msra.mxu1 %v8741_v39  ;;  %v585_v2 = vld [vmem:[#allocation5 + $0xf78] sm:$0xff]  ;;  %v8795_v39 = vcombine.low %v572_v52, %v576_v54  ;;  %v3887_v52 = vld [vmem:[#allocation7 + $0xc8] sm:$0xff] }
 0x235   :  { %v3352_v18 = vpop.f32.mrb[3].mxu0  ;;  %3653 = vmatprep.subr.bf16.mxu0 %v8748_v3  ;;  %v3516_v21 = vpop.f32.mrb[3].mxu1  ;;  %3817 = vmatprep.subr.bf16.mxu1 %v8750_v5  ;;  %v8797_v3 = vcombine.low %v573_v56, %v577_v58  ;;  %v8804_v5 = vcombine.high %v580_v63, %v584_v0  ;;  %v8806_v6 = vcombine.high %v581_v1, %v585_v2  ;;  %v593_v14 = vld [vmem:[#allocation5 + $0xfb8] sm:$0xff]  ;;  %v3891_v54 = vld [vmem:[#allocation7 + $0xe8] sm:$0xff] }
 0x236   :  { %v8805_v17 = vcombine.low %v581_v1, %v585_v2  ;;  %v8812_v18 = vcombine.high %v588_v7, %v592_v10  ;;  %v600_v21 = vld [vmem:[#allocation5 + $0xff0] sm:$0xff]  ;;  %v8813_v26 = vcombine.low %v589_v11, %v593_v14  ;;  %v8849_v1 = vcombine.low %v3887_v52, %v3891_v54  ;;  %v3907_v7 = vld [vmem:[#allocation7 + $0x168] sm:$0xff] }
 0x238   :  { %3654 = vmatpush1.bf16.msra.mxu0 %v8747_v16  ;;  %3818 = vmatpush1.bf16.msra.mxu1 %v8749_v19  ;;  %v8803_v16 = vcombine.low %v580_v63, %v584_v0  ;;  %v8814_v19 = vcombine.high %v589_v11, %v593_v14  ;;  %v3899_v63 = vld [vmem:[#allocation7 + $0x128] sm:$0xff] }
 0x239   :  { %3655 = vmatprep.subr.bf16.mxu0 %v8756_v20  ;;  %3819 = vmatprep.subr.bf16.mxu1 %v8758_v22  ;;  %v596_v20 = vld [vmem:[#allocation5 + $0xfd0] sm:$0xff]  ;;  %v597_v22 = vld [vmem:[#allocation5 + $0xfd8] sm:$0xff] }
 0x23a   :  { %v8820_v27 = vcombine.high %v596_v20, %v600_v21  ;;  %v8819_v33 = vcombine.low %v596_v20, %v600_v21  ;;  %v8821_v34 = vcombine.low %v597_v22, %v601_v57  ;;  %v3915_v20 = vld [vmem:[#allocation7 + $0x1a8] sm:$0xff] }
 0x23c   :  { %3656 = vmatpush1.bf16.msra.mxu0 %v8755_v12  ;;  %3820 = vmatpush1.bf16.msra.mxu1 %v8757_v28  ;;  %v8822_v12 = vcombine.high %v597_v22, %v601_v57  ;;  %v3862_v28 = vld [vmem:[#allocation7] sm:$0xff] }
 0x23d   :  { %3657 = vmatprep.subr.bf16.mxu0 %v8764_v29  ;;  %3821 = vmatprep.subr.bf16.mxu1 %v8766_v30  ;;  %v3866_v29 = vld [vmem:[#allocation7 + $0x20] sm:$0xff]  ;;  %v3863_v30 = vld [vmem:[#allocation7 + $0x8] sm:$0xff] }
 0x23e   :  { %v8824_v15 = vcombine.high %v3862_v28, %v3866_v29  ;;  %v8823_v38 = vcombine.low %v3862_v28, %v3866_v29  ;;  %v8825_v42 = vcombine.low %v3863_v30, %v3867_v31  ;;  %v3923_v28 = vld [vmem:[#allocation7 + $0x1e8] sm:$0xff] }
 0x240   :  { %3658 = vmatpush1.bf16.msra.mxu0 %v8763_v35  ;;  %3822 = vmatpush1.bf16.msra.mxu1 %v8765_v37  ;;  %v8826_v35 = vcombine.high %v3863_v30, %v3867_v31  ;;  %v3847_v37 = vmax.f32 %v9993_v9, 0.0  ;;  %v3883_v9 = vld [vmem:[#allocation7 + $0xa8] sm:$0xff] }
 0x241   :  { %3659 = vmatprep.subr.bf16.mxu0 %v8772_v25  ;;  %3823 = vmatprep.subr.bf16.mxu1 %v8774_v53  ;;  %v3870_v25 = vld [vmem:[#allocation7 + $0x40] sm:$0xff] }
 0x242   :  { %v3874_v53 = vld [vmem:[#allocation7 + $0x60] sm:$0xff] }
 0x243   :  { %v8831_v47 = vcombine.low %v3870_v25, %v3874_v53 }
 0x244   :  { %3660 = vmatpush1.bf16.msra.mxu0 %v8771_v36  ;;  %3824 = vmatpush1.bf16.msra.mxu1 %v8773_v43  ;;  %v8832_v36 = vcombine.high %v3870_v25, %v3874_v53  ;;  %v3878_v43 = vld [vmem:[#allocation7 + $0x80] sm:$0xff] }
 0x245   :  { %3661 = vmatprep.subr.bf16.mxu0 %v8780_v44  ;;  %3825 = vmatprep.subr.bf16.mxu1 %v8782_v45  ;;  %v3882_v44 = vld [vmem:[#allocation7 + $0xa0] sm:$0xff]  ;;  %v9998_v45 = vpack.c.bf16 %v3847_v37, %v3847_v37  ;;  %v3931_v37 = vld [vmem:[#allocation7 + $0x228] sm:$0xff] }
 0x246   :  { %v8839_v56 = vcombine.low %v3878_v43, %v3882_v44 }
 0x248   :  { %3662 = vmatpush1.bf16.msra.mxu0 %v8779_v49  ;;  %3826 = vmatpush1.bf16.msra.mxu1 %v8781_v50  ;;  %v8840_v49 = vcombine.high %v3878_v43, %v3882_v44  ;;  %v8842_v50 = vcombine.high %v3879_v32, %v3883_v9  ;;  %v3939_v43 = vld [vmem:[#allocation7 + $0x268] sm:$0xff] }
 0x249   :  { %3663 = vmatprep.subr.bf16.mxu0 %v8788_v46  ;;  %3827 = vmatprep.subr.bf16.mxu1 %v8790_v51  ;;  %v3886_v46 = vld [vmem:[#allocation7 + $0xc0] sm:$0xff] }
 0x24a   :  { %v3890_v51 = vld [vmem:[#allocation7 + $0xe0] sm:$0xff] }
 0x24b   :  { %v8848_v58 = vcombine.high %v3886_v46, %v3890_v51  ;;  %v8847_v0 = vcombine.low %v3886_v46, %v3890_v51 }
 0x24c   :  { %3664 = vmatpush1.bf16.msra.mxu0 %v8787_v59  ;;  %3828 = vmatpush1.bf16.msra.mxu1 %v8789_v60  ;;  %v8850_v59 = vcombine.high %v3887_v52, %v3891_v54  ;;  %v3894_v60 = vld [vmem:[#allocation7 + $0x100] sm:$0xff] }
 0x24d   :  { %3665 = vmatprep.subr.bf16.mxu0 %v8796_v61  ;;  %3829 = vmatprep.subr.bf16.mxu1 %v8798_v62  ;;  %v3898_v61 = vld [vmem:[#allocation7 + $0x120] sm:$0xff]  ;;  %v3895_v62 = vld [vmem:[#allocation7 + $0x108] sm:$0xff] }
 0x24e   :  { %v8856_v2 = vcombine.high %v3894_v60, %v3898_v61  ;;  %v8855_v10 = vcombine.low %v3894_v60, %v3898_v61  ;;  %v8857_v11 = vcombine.low %v3895_v62, %v3899_v63 }
 0x250   :  { %3666 = vmatpush1.bf16.msra.mxu0 %v8795_v39  ;;  %3830 = vmatpush1.bf16.msra.mxu1 %v8797_v3  ;;  %v8858_v39 = vcombine.high %v3895_v62, %v3899_v63  ;;  %v3902_v3 = vld [vmem:[#allocation7 + $0x140] sm:$0xff] }
 0x251   :  { %3667 = vmatprep.subr.bf16.mxu0 %v8804_v5  ;;  %3831 = vmatprep.subr.bf16.mxu1 %v8806_v6  ;;  %v3906_v5 = vld [vmem:[#allocation7 + $0x160] sm:$0xff]  ;;  %v3903_v6 = vld [vmem:[#allocation7 + $0x148] sm:$0xff] }
 0x252   :  { %v8864_v14 = vcombine.high %v3902_v3, %v3906_v5  ;;  %v8863_v21 = vcombine.low %v3902_v3, %v3906_v5  ;;  %v8865_v22 = vcombine.low %v3903_v6, %v3907_v7 }
 0x254   :  { %3668 = vmatpush1.bf16.msra.mxu0 %v8803_v16  ;;  %3832 = vmatpush1.bf16.msra.mxu1 %v8805_v17  ;;  %v8866_v16 = vcombine.high %v3903_v6, %v3907_v7  ;;  %v3910_v17 = vld [vmem:[#allocation7 + $0x180] sm:$0xff] }
 0x255   :  { %3669 = vmatprep.subr.bf16.mxu0 %v8812_v18  ;;  %3833 = vmatprep.subr.bf16.mxu1 %v8814_v19  ;;  %v3914_v18 = vld [vmem:[#allocation7 + $0x1a0] sm:$0xff]  ;;  %v3911_v19 = vld [vmem:[#allocation7 + $0x188] sm:$0xff] }
 0x256   :  { %v8872_v57 = vcombine.high %v3910_v17, %v3914_v18  ;;  %v8871_v29 = vcombine.low %v3910_v17, %v3914_v18  ;;  %v8873_v30 = vcombine.low %v3911_v19, %v3915_v20 }
 0x258   :  { %3670 = vmatpush1.bf16.msra.mxu0 %v8811_v23  ;;  %3834 = vmatpush1.bf16.msra.mxu1 %v8813_v26  ;;  %v8874_v23 = vcombine.high %v3911_v19, %v3915_v20  ;;  %v3918_v26 = vld [vmem:[#allocation7 + $0x1c0] sm:$0xff] }
 0x259   :  { %3671 = vmatprep.subr.bf16.mxu0 %v8820_v27  ;;  %3835 = vmatprep.subr.bf16.mxu1 %v8822_v12  ;;  %v3922_v27 = vld [vmem:[#allocation7 + $0x1e0] sm:$0xff]  ;;  %v3919_v12 = vld [vmem:[#allocation7 + $0x1c8] sm:$0xff] }
 0x25a   :  { %v8880_v31 = vcombine.high %v3918_v26, %v3922_v27  ;;  %v8879_v25 = vcombine.low %v3918_v26, %v3922_v27  ;;  %v8881_v53 = vcombine.low %v3919_v12, %v3923_v28 }
 0x25c   :  { %3672 = vmatpush1.bf16.msra.mxu0 %v8819_v33  ;;  %3836 = vmatpush1.bf16.msra.mxu1 %v8821_v34  ;;  %v8882_v33 = vcombine.high %v3919_v12, %v3923_v28  ;;  %v3926_v34 = vld [vmem:[#allocation7 + $0x200] sm:$0xff] }
 0x25d   :  { %6934 = vmatprep.subr.bf16.mxu0 %v8824_v15  ;;  %7098 = vmatprep.subr.bf16.mxu1 %v8826_v35  ;;  %v3930_v15 = vld [vmem:[#allocation7 + $0x220] sm:$0xff]  ;;  %v3927_v35 = vld [vmem:[#allocation7 + $0x208] sm:$0xff] }
 0x25e   :  { %v8890_v40 = vcombine.high %v3927_v35, %v3931_v37  ;;  %v8887_v44 = vcombine.low %v3926_v34, %v3930_v15 }
 0x25f   :  { %3674 = vmatmul.mubr.bf16.vlgmr.msra.gmra.mrb[4].mxu0 %v9971_v55  ;;  %3838 = vmatmul.mubr.bf16.vlgmr.msra.gmra.mrb[4].mxu1 %v9971_v55  ;;  %v8841_v55 = vcombine.low %v3879_v32, %v3883_v9 }
 0x260   :  { %6935 = vmatpush1.bf16.msra.mxu0 %v8823_v38  ;;  %6966 = vmatprep.mubr.bf16.mxu0 %v9998_v45  ;;  %v8888_v38 = vcombine.high %v3926_v34, %v3930_v15 }
 0x261   :  { %7099 = vmatpush1.bf16.msra.mxu1 %v8825_v42  ;;  %7130 = vmatprep.mubr.bf16.mxu1 %v9998_v45  ;;  %v3938_v42 = vld [vmem:[#allocation7 + $0x260] sm:$0xff] }
 0x262   :  { %6936 = vmatprep.subr.bf16.mxu0 %v8832_v36  ;;  %7100 = vmatprep.subr.bf16.mxu1 %v8834_v24  ;;  %v3935_v36 = vld [vmem:[#allocation7 + $0x248] sm:$0xff]  ;;  %v8889_v24 = vcombine.low %v3927_v35, %v3931_v37  ;;  %v8896_v32 = vcombine.high %v3934_v41, %v3938_v42  ;;  %v8895_v46 = vcombine.low %v3934_v41, %v3938_v42  ;;  %v3846_v42 = vmax.f32 %v9989_v4, 0.0 }
 0x263   :  { %v8898_v9 = vcombine.high %v3935_v36, %v3939_v43  ;;  %v8897_v51 = vcombine.low %v3935_v36, %v3939_v43 }
 0x264   :  { %6937 = vmatpush1.bf16.msra.mxu0 %v8831_v47  ;;  %v3942_v47 = vld [vmem:[#allocation7 + $0x280] sm:$0xff] }
 0x265   :  { %7101 = vmatpush1.bf16.msra.mxu1 %v8833_v48  ;;  %6938 = vmatprep.subr.bf16.mxu0 %v8840_v49  ;;  %v3946_v48 = vld [vmem:[#allocation7 + $0x2a0] sm:$0xff]  ;;  %v3943_v49 = vld [vmem:[#allocation7 + $0x288] sm:$0xff] }
 0x266   :  { %7102 = vmatprep.subr.bf16.mxu1 %v8842_v50  ;;  %v3947_v50 = vld [vmem:[#allocation7 + $0x2a8] sm:$0xff]  ;;  %v8904_v52 = vcombine.high %v3942_v47, %v3946_v48  ;;  %v8903_v60 = vcombine.low %v3942_v47, %v3946_v48 }
 0x267   :  { %v8906_v54 = vcombine.high %v3943_v49, %v3947_v50  ;;  %v8905_v61 = vcombine.low %v3943_v49, %v3947_v50  ;;  %v3999_v48 = vld [vmem:[#allocation7 + $0x448] sm:$0xff]  ;;  %v10006_v50 = vpack.c.bf16 %v3846_v42, %v3846_v42 }
 0x268   :  { %6939 = vmatpush1.bf16.msra.mxu0 %v8839_v56  ;;  %v3950_v56 = vld [vmem:[#allocation7 + $0x2c0] sm:$0xff]  ;;  %v4003_v49 = vld [vmem:[#allocation7 + $0x468] sm:$0xff] }
 0x269   :  { %7103 = vmatpush1.bf16.msra.mxu1 %v8841_v55  ;;  %6940 = vmatprep.subr.bf16.mxu0 %v8848_v58  ;;  %v3954_v55 = vld [vmem:[#allocation7 + $0x2e0] sm:$0xff]  ;;  %v3951_v58 = vld [vmem:[#allocation7 + $0x2c8] sm:$0xff] }
 0x26a   :  { %7104 = vmatprep.subr.bf16.mxu1 %v8850_v59  ;;  %v3955_v59 = vld [vmem:[#allocation7 + $0x2e8] sm:$0xff]  ;;  %v8912_v62 = vcombine.high %v3950_v56, %v3954_v55  ;;  %v8911_v3 = vcombine.low %v3950_v56, %v3954_v55 }
 0x26b   :  { %v8914_v63 = vcombine.high %v3951_v58, %v3955_v59  ;;  %v8913_v5 = vcombine.low %v3951_v58, %v3955_v59  ;;  %v4007_v56 = vld [vmem:[#allocation7 + $0x488] sm:$0xff]  ;;  %v8961_v59 = vcombine.low %v3999_v48, %v4003_v49 }
 0x26c   :  { %6941 = vmatpush1.bf16.msra.mxu0 %v8847_v0  ;;  %v3958_v0 = vld [vmem:[#allocation7 + $0x300] sm:$0xff]  ;;  %v4011_v55 = vld [vmem:[#allocation7 + $0x4a8] sm:$0xff] }
 0x26d   :  { %7105 = vmatpush1.bf16.msra.mxu1 %v8849_v1  ;;  %6942 = vmatprep.subr.bf16.mxu0 %v8856_v2  ;;  %v3962_v1 = vld [vmem:[#allocation7 + $0x320] sm:$0xff]  ;;  %v3959_v2 = vld [vmem:[#allocation7 + $0x308] sm:$0xff] }
 0x26e   :  { %7106 = vmatprep.subr.bf16.mxu1 %v8858_v39  ;;  %v3963_v39 = vld [vmem:[#allocation7 + $0x328] sm:$0xff]  ;;  %v8920_v6 = vcombine.high %v3958_v0, %v3962_v1  ;;  %v8919_v17 = vcombine.low %v3958_v0, %v3962_v1 }
 0x26f   :  { %v8922_v7 = vcombine.high %v3959_v2, %v3963_v39  ;;  %v8921_v18 = vcombine.low %v3959_v2, %v3963_v39  ;;  %v4015_v0 = vld [vmem:[#allocation7 + $0x4c8] sm:$0xff]  ;;  %v8969_v39 = vcombine.low %v4007_v56, %v4011_v55 }
 0x270   :  { %6943 = vmatpush1.bf16.msra.mxu0 %v8855_v10  ;;  %v3966_v10 = vld [vmem:[#allocation7 + $0x340] sm:$0xff]  ;;  %v4019_v1 = vld [vmem:[#allocation7 + $0x4e8] sm:$0xff] }
 0x271   :  { %7107 = vmatpush1.bf16.msra.mxu1 %v8857_v11  ;;  %6944 = vmatprep.subr.bf16.mxu0 %v8864_v14  ;;  %v3970_v11 = vld [vmem:[#allocation7 + $0x360] sm:$0xff]  ;;  %v3967_v14 = vld [vmem:[#allocation7 + $0x348] sm:$0xff] }
 0x272   :  { %7108 = vmatprep.subr.bf16.mxu1 %v8866_v16  ;;  %v3971_v16 = vld [vmem:[#allocation7 + $0x368] sm:$0xff]  ;;  %v8928_v19 = vcombine.high %v3966_v10, %v3970_v11  ;;  %v8927_v26 = vcombine.low %v3966_v10, %v3970_v11 }
 0x273   :  { %v8930_v20 = vcombine.high %v3967_v14, %v3971_v16  ;;  %v8929_v27 = vcombine.low %v3967_v14, %v3971_v16  ;;  %v4023_v10 = vld [vmem:[#allocation7 + $0x508] sm:$0xff]  ;;  %v8977_v16 = vcombine.low %v4015_v0, %v4019_v1 }
 0x274   :  { %6945 = vmatpush1.bf16.msra.mxu0 %v8863_v21  ;;  %v3974_v21 = vld [vmem:[#allocation7 + $0x380] sm:$0xff]  ;;  %v4027_v11 = vld [vmem:[#allocation7 + $0x528] sm:$0xff] }
 0x275   :  { %7109 = vmatpush1.bf16.msra.mxu1 %v8865_v22  ;;  %6946 = vmatprep.subr.bf16.mxu0 %v8872_v57  ;;  %v3978_v22 = vld [vmem:[#allocation7 + $0x3a0] sm:$0xff]  ;;  %v3975_v57 = vld [vmem:[#allocation7 + $0x388] sm:$0xff] }
 0x276   :  { %7110 = vmatprep.subr.bf16.mxu1 %v8874_v23  ;;  %v3979_v23 = vld [vmem:[#allocation7 + $0x3a8] sm:$0xff]  ;;  %v8936_v12 = vcombine.high %v3974_v21, %v3978_v22  ;;  %v8935_v34 = vcombine.low %v3974_v21, %v3978_v22 }
 0x277   :  { %v8938_v28 = vcombine.high %v3975_v57, %v3979_v23  ;;  %v8937_v15 = vcombine.low %v3975_v57, %v3979_v23  ;;  %v4031_v21 = vld [vmem:[#allocation7 + $0x548] sm:$0xff]  ;;  %v8985_v23 = vcombine.low %v4023_v10, %v4027_v11 }
 0x278   :  { %6947 = vmatpush1.bf16.msra.mxu0 %v8871_v29  ;;  %v3982_v29 = vld [vmem:[#allocation7 + $0x3c0] sm:$0xff]  ;;  %v4035_v22 = vld [vmem:[#allocation7 + $0x568] sm:$0xff] }
 0x279   :  { %7111 = vmatpush1.bf16.msra.mxu1 %v8873_v30  ;;  %6948 = vmatprep.subr.bf16.mxu0 %v8880_v31  ;;  %v3986_v30 = vld [vmem:[#allocation7 + $0x3e0] sm:$0xff]  ;;  %v3983_v31 = vld [vmem:[#allocation7 + $0x3c8] sm:$0xff] }
 0x27a   :  { %7112 = vmatprep.subr.bf16.mxu1 %v8882_v33  ;;  %v3987_v33 = vld [vmem:[#allocation7 + $0x3e8] sm:$0xff]  ;;  %v8944_v35 = vcombine.high %v3982_v29, %v3986_v30  ;;  %v8943_v41 = vcombine.low %v3982_v29, %v3986_v30 }
 0x27b   :  { %v8946_v37 = vcombine.high %v3983_v31, %v3987_v33  ;;  %v8945_v36 = vcombine.low %v3983_v31, %v3987_v33  ;;  %v4039_v29 = vld [vmem:[#allocation7 + $0x588] sm:$0xff]  ;;  %v8993_v33 = vcombine.low %v4031_v21, %v4035_v22 }
 0x27c   :  { %6949 = vmatpush1.bf16.msra.mxu0 %v8879_v25  ;;  %v3990_v25 = vld [vmem:[#allocation7 + $0x400] sm:$0xff]  ;;  %v4043_v30 = vld [vmem:[#allocation7 + $0x5a8] sm:$0xff] }
 0x27d   :  { %7113 = vmatpush1.bf16.msra.mxu1 %v8881_v53  ;;  %6950 = vmatprep.subr.bf16.mxu0 %v8888_v38  ;;  %v3994_v53 = vld [vmem:[#allocation7 + $0x420] sm:$0xff]  ;;  %v3991_v38 = vld [vmem:[#allocation7 + $0x408] sm:$0xff] }
 0x27e   :  { %7114 = vmatprep.subr.bf16.mxu1 %v8890_v40  ;;  %v3995_v40 = vld [vmem:[#allocation7 + $0x428] sm:$0xff]  ;;  %v8952_v43 = vcombine.high %v3990_v25, %v3994_v53  ;;  %v8951_v47 = vcombine.low %v3990_v25, %v3994_v53 }
 0x27f   :  { %v4047_v25 = vld [vmem:[#allocation7 + $0x5c8] sm:$0xff] }
 0x280   :  { %6951 = vmatpush1.bf16.msra.mxu0 %v8887_v44  ;;  %v8954_v44 = vcombine.high %v3991_v38, %v3995_v40  ;;  %v4051_v53 = vld [vmem:[#allocation7 + $0x5e8] sm:$0xff] }
 0x281   :  { %7115 = vmatpush1.bf16.msra.mxu1 %v8889_v24  ;;  %6952 = vmatprep.subr.bf16.mxu0 %v8896_v32  ;;  %v3849_v24 = vmax.f32 %v9995_v13, 0.0  ;;  %v3998_v32 = vld [vmem:[#allocation7 + $0x440] sm:$0xff]  ;;  %v8962_v13 = vcombine.high %v3999_v48, %v4003_v49  ;;  %v9010_v42 = vcombine.high %v4047_v25, %v4051_v53 }
 0x282   :  { %7116 = vmatprep.subr.bf16.mxu1 %v8898_v9  ;;  %v4002_v9 = vld [vmem:[#allocation7 + $0x460] sm:$0xff] }
 0x283   :  { %v8960_v4 = vcombine.high %v3998_v32, %v4002_v9  ;;  %v8959_v58 = vcombine.low %v3998_v32, %v4002_v9  ;;  %v9009_v9 = vcombine.low %v4047_v25, %v4051_v53  ;;  %v4062_v49 = vld [vmem:[#allocation7 + $0x640] sm:$0xff] }
 0x284   :  { %6953 = vmatpush1.bf16.msra.mxu0 %v8895_v46  ;;  %v8953_v46 = vcombine.low %v3991_v38, %v3995_v40  ;;  %v9001_v40 = vcombine.low %v4039_v29, %v4043_v30 }
 0x285   :  { %7117 = vmatpush1.bf16.msra.mxu1 %v8897_v51  ;;  %6954 = vmatprep.subr.bf16.mxu0 %v8904_v52  ;;  %v4006_v51 = vld [vmem:[#allocation7 + $0x480] sm:$0xff] }
 0x286   :  { %7118 = vmatprep.subr.bf16.mxu1 %v8906_v54  ;;  %v4010_v52 = vld [vmem:[#allocation7 + $0x4a0] sm:$0xff]  ;;  %v10008_v54 = vpack.c.bf16 %v3849_v24, %v3849_v24  ;;  %v4059_v24 = vld [vmem:[#allocation7 + $0x628] sm:$0xff] }
 0x287   :  { %v8967_v2 = vcombine.low %v4006_v51, %v4010_v52 }
 0x288   :  { %6955 = vmatpush1.bf16.msra.mxu0 %v8903_v60  ;;  %v8968_v60 = vcombine.high %v4006_v51, %v4010_v52  ;;  %v4067_v51 = vld [vmem:[#allocation7 + $0x668] sm:$0xff] }
 0x289   :  { %7119 = vmatpush1.bf16.msra.mxu1 %v8905_v61  ;;  %6956 = vmatprep.subr.bf16.mxu0 %v8912_v62  ;;  %v8970_v61 = vcombine.high %v4007_v56, %v4011_v55  ;;  %v4014_v62 = vld [vmem:[#allocation7 + $0x4c0] sm:$0xff] }
 0x28a   :  { %7120 = vmatprep.subr.bf16.mxu1 %v8914_v63  ;;  %v4018_v63 = vld [vmem:[#allocation7 + $0x4e0] sm:$0xff] }
 0x28b   :  { %v8975_v14 = vcombine.low %v4014_v62, %v4018_v63 }
 0x28c   :  { %6957 = vmatpush1.bf16.msra.mxu0 %v8911_v3  ;;  %v8976_v3 = vcombine.high %v4014_v62, %v4018_v63 }
 0x28d   :  { %7121 = vmatpush1.bf16.msra.mxu1 %v8913_v5  ;;  %6958 = vmatprep.subr.bf16.mxu0 %v8920_v6  ;;  %v8978_v5 = vcombine.high %v4015_v0, %v4019_v1  ;;  %v4022_v6 = vld [vmem:[#allocation7 + $0x500] sm:$0xff] }
 0x28e   :  { %7122 = vmatprep.subr.bf16.mxu1 %v8922_v7  ;;  %v4026_v7 = vld [vmem:[#allocation7 + $0x520] sm:$0xff] }
 0x28f   :  { %v8983_v57 = vcombine.low %v4022_v6, %v4026_v7 }
 0x290   :  { %6959 = vmatpush1.bf16.msra.mxu0 %v8919_v17  ;;  %v8984_v17 = vcombine.high %v4022_v6, %v4026_v7 }
 0x291   :  { %7123 = vmatpush1.bf16.msra.mxu1 %v8921_v18  ;;  %6960 = vmatprep.subr.bf16.mxu0 %v8928_v19  ;;  %v8986_v18 = vcombine.high %v4023_v10, %v4027_v11  ;;  %v4030_v19 = vld [vmem:[#allocation7 + $0x540] sm:$0xff] }
 0x292   :  { %7124 = vmatprep.subr.bf16.mxu1 %v8930_v20  ;;  %v4034_v20 = vld [vmem:[#allocation7 + $0x560] sm:$0xff] }
 0x293   :  { %v8991_v31 = vcombine.low %v4030_v19, %v4034_v20 }
 0x294   :  { %6961 = vmatpush1.bf16.msra.mxu0 %v8927_v26  ;;  %v8992_v26 = vcombine.high %v4030_v19, %v4034_v20 }
 0x295   :  { %7125 = vmatpush1.bf16.msra.mxu1 %v8929_v27  ;;  %6962 = vmatprep.subr.bf16.mxu0 %v8936_v12  ;;  %v8994_v27 = vcombine.high %v4031_v21, %v4035_v22  ;;  %v4038_v12 = vld [vmem:[#allocation7 + $0x580] sm:$0xff] }
 0x296   :  { %7126 = vmatprep.subr.bf16.mxu1 %v8938_v28  ;;  %v4042_v28 = vld [vmem:[#allocation7 + $0x5a0] sm:$0xff] }
 0x297   :  { %v8999_v38 = vcombine.low %v4038_v12, %v4042_v28 }
 0x298   :  { %6963 = vmatpush1.bf16.msra.mxu0 %v8935_v34  ;;  %v9000_v34 = vcombine.high %v4038_v12, %v4042_v28 }
 0x299   :  { %7127 = vmatpush1.bf16.msra.mxu1 %v8937_v15  ;;  %6964 = vmatprep.subr.bf16.mxu0 %v8944_v35  ;;  %v9002_v15 = vcombine.high %v4039_v29, %v4043_v30  ;;  %v4046_v35 = vld [vmem:[#allocation7 + $0x5c0] sm:$0xff] }
 0x29a   :  { %7128 = vmatprep.subr.bf16.mxu1 %v8946_v37  ;;  %v4050_v37 = vld [vmem:[#allocation7 + $0x5e0] sm:$0xff] }
 0x29b   :  { %v9007_v32 = vcombine.low %v4046_v35, %v4050_v37 }
 0x29c   :  { %6965 = vmatpush1.bf16.msra.mxu0 %v8943_v41  ;;  %v9008_v41 = vcombine.high %v4046_v35, %v4050_v37 }
 0x29d   :  { %7129 = vmatpush1.bf16.msra.mxu1 %v8945_v36  ;;  %6975 = vmatprep.subr.bf16.mxu0 %v8952_v43  ;;  %v4054_v36 = vld [vmem:[#allocation7 + $0x600] sm:$0xff] }
 0x29e   :  { %7139 = vmatprep.subr.bf16.mxu1 %v8954_v44  ;;  %v4058_v43 = vld [vmem:[#allocation7 + $0x620] sm:$0xff]  ;;  %v4055_v44 = vld [vmem:[#allocation7 + $0x608] sm:$0xff] }
 0x29f   :  { %6967 = vmatmul.mubr.bf16.vlgmr.msra.gmra.mrb[8].mxu0 %v10006_v50  ;;  %v9018_v48 = vcombine.high %v4055_v44, %v4059_v24  ;;  %v9015_v52 = vcombine.low %v4054_v36, %v4058_v43 }
 0x2a0   :  { %7131 = vmatmul.mubr.bf16.vlgmr.msra.gmra.mrb[8].mxu1 %v10006_v50  ;;  %6976 = vmatpush1.bf16.msra.mxu0 %v8951_v47  ;;  %v9016_v47 = vcombine.high %v4054_v36, %v4058_v43 }
 0x2a1   :  { %7007 = vmatprep.mubr.bf16.mxu0 %v10008_v54  ;;  %7140 = vmatpush1.bf16.msra.mxu1 %v8953_v46  ;;  %v4066_v46 = vld [vmem:[#allocation7 + $0x660] sm:$0xff] }
 0x2a2   :  { %7171 = vmatprep.mubr.bf16.mxu1 %v10008_v54  ;;  %6977 = vmatprep.subr.bf16.mxu0 %v8960_v4  ;;  %v4063_v4 = vld [vmem:[#allocation7 + $0x648] sm:$0xff]  ;;  %v9024_v56 = vcombine.high %v4062_v49, %v4066_v46  ;;  %v9023_v62 = vcombine.low %v4062_v49, %v4066_v46  ;;  %v3848_v46 = vmax.f32 %v9991_v8, 0.0 }
 0x2a3   :  { %7141 = vmatprep.subr.bf16.mxu1 %v8962_v13  ;;  %v9017_v13 = vcombine.low %v4055_v44, %v4059_v24  ;;  %v9026_v55 = vcombine.high %v4063_v4, %v4067_v51  ;;  %v9025_v63 = vcombine.low %v4063_v4, %v4067_v51 }
 0x2a4   :  { %6978 = vmatpush1.bf16.msra.mxu0 %v8959_v58  ;;  %v4070_v58 = vld [vmem:[#allocation7 + $0x680] sm:$0xff] }
 0x2a5   :  { %7142 = vmatpush1.bf16.msra.mxu1 %v8961_v59  ;;  %6979 = vmatprep.subr.bf16.mxu0 %v8968_v60  ;;  %v4074_v59 = vld [vmem:[#allocation7 + $0x6a0] sm:$0xff]  ;;  %v4071_v60 = vld [vmem:[#allocation7 + $0x688] sm:$0xff] }
 0x2a6   :  { %7143 = vmatprep.subr.bf16.mxu1 %v8970_v61  ;;  %v4075_v61 = vld [vmem:[#allocation7 + $0x6a8] sm:$0xff]  ;;  %v9032_v0 = vcombine.high %v4070_v58, %v4074_v59  ;;  %v9031_v6 = vcombine.low %v4070_v58, %v4074_v59 }
 0x2a7   :  { %v9034_v1 = vcombine.high %v4071_v60, %v4075_v61  ;;  %v9033_v7 = vcombine.low %v4071_v60, %v4075_v61  ;;  %v4131_v58 = vld [vmem:[#allocation7 + $0x868] sm:$0xff]  ;;  %v10015_v60 = vpack.c.bf16 %v3848_v46, %v3848_v46  ;;  %v4182_v46 = vld [vmem:[#allocation7 + $0xa00] sm:$0xff] }
 0x2a8   :  { %6980 = vmatpush1.bf16.msra.mxu0 %v8967_v2  ;;  %v4078_v2 = vld [vmem:[#allocation7 + $0x6c0] sm:$0xff] }
 0x2a9   :  { %7144 = vmatpush1.bf16.msra.mxu1 %v8969_v39  ;;  %6981 = vmatprep.subr.bf16.mxu0 %v8976_v3  ;;  %v4082_v39 = vld [vmem:[#allocation7 + $0x6e0] sm:$0xff]  ;;  %v4079_v3 = vld [vmem:[#allocation7 + $0x6c8] sm:$0xff] }
 0x2aa   :  { %7145 = vmatprep.subr.bf16.mxu1 %v8978_v5  ;;  %v4083_v5 = vld [vmem:[#allocation7 + $0x6e8] sm:$0xff]  ;;  %v9040_v10 = vcombine.high %v4078_v2, %v4082_v39  ;;  %v9039_v19 = vcombine.low %v4078_v2, %v4082_v39 }
 0x2ab   :  { %v9042_v11 = vcombine.high %v4079_v3, %v4083_v5  ;;  %v9041_v20 = vcombine.low %v4079_v3, %v4083_v5  ;;  %v4139_v2 = vld [vmem:[#allocation7 + $0x8a8] sm:$0xff] }
 0x2ac   :  { %6982 = vmatpush1.bf16.msra.mxu0 %v8975_v14  ;;  %v4086_v14 = vld [vmem:[#allocation7 + $0x700] sm:$0xff] }
 0x2ad   :  { %7146 = vmatpush1.bf16.msra.mxu1 %v8977_v16  ;;  %6983 = vmatprep.subr.bf16.mxu0 %v8984_v17  ;;  %v4090_v16 = vld [vmem:[#allocation7 + $0x720] sm:$0xff]  ;;  %v4087_v17 = vld [vmem:[#allocation7 + $0x708] sm:$0xff] }
 0x2ae   :  { %7147 = vmatprep.subr.bf16.mxu1 %v8986_v18  ;;  %v4091_v18 = vld [vmem:[#allocation7 + $0x728] sm:$0xff]  ;;  %v9048_v21 = vcombine.high %v4086_v14, %v4090_v16  ;;  %v9047_v12 = vcombine.low %v4086_v14, %v4090_v16 }
 0x2af   :  { %v9050_v22 = vcombine.high %v4087_v17, %v4091_v18  ;;  %v9049_v28 = vcombine.low %v4087_v17, %v4091_v18  ;;  %v4147_v14 = vld [vmem:[#allocation7 + $0x8e8] sm:$0xff] }
 0x2b0   :  { %6984 = vmatpush1.bf16.msra.mxu0 %v8983_v57  ;;  %v4094_v57 = vld [vmem:[#allocation7 + $0x740] sm:$0xff] }
 0x2b1   :  { %7148 = vmatpush1.bf16.msra.mxu1 %v8985_v23  ;;  %6985 = vmatprep.subr.bf16.mxu0 %v8992_v26  ;;  %v4098_v23 = vld [vmem:[#allocation7 + $0x760] sm:$0xff]  ;;  %v4095_v26 = vld [vmem:[#allocation7 + $0x748] sm:$0xff] }
 0x2b2   :  { %7149 = vmatprep.subr.bf16.mxu1 %v8994_v27  ;;  %v4099_v27 = vld [vmem:[#allocation7 + $0x768] sm:$0xff]  ;;  %v9056_v29 = vcombine.high %v4094_v57, %v4098_v23  ;;  %v9055_v35 = vcombine.low %v4094_v57, %v4098_v23 }
 0x2b3   :  { %v9058_v30 = vcombine.high %v4095_v26, %v4099_v27  ;;  %v9057_v37 = vcombine.low %v4095_v26, %v4099_v27  ;;  %v4155_v57 = vld [vmem:[#allocation7 + $0x928] sm:$0xff] }
 0x2b4   :  { %6986 = vmatpush1.bf16.msra.mxu0 %v8991_v31  ;;  %v4102_v31 = vld [vmem:[#allocation7 + $0x780] sm:$0xff] }
 0x2b5   :  { %7150 = vmatpush1.bf16.msra.mxu1 %v8993_v33  ;;  %6987 = vmatprep.subr.bf16.mxu0 %v9000_v34  ;;  %v4106_v33 = vld [vmem:[#allocation7 + $0x7a0] sm:$0xff]  ;;  %v4103_v34 = vld [vmem:[#allocation7 + $0x788] sm:$0xff] }
 0x2b6   :  { %7151 = vmatprep.subr.bf16.mxu1 %v9002_v15  ;;  %v4107_v15 = vld [vmem:[#allocation7 + $0x7a8] sm:$0xff]  ;;  %v9064_v25 = vcombine.high %v4102_v31, %v4106_v33  ;;  %v9063_v36 = vcombine.low %v4102_v31, %v4106_v33 }
 0x2b7   :  { %v9066_v53 = vcombine.high %v4103_v34, %v4107_v15  ;;  %v9065_v43 = vcombine.low %v4103_v34, %v4107_v15  ;;  %v4163_v31 = vld [vmem:[#allocation7 + $0x968] sm:$0xff] }
 0x2b8   :  { %6988 = vmatpush1.bf16.msra.mxu0 %v8999_v38  ;;  %v4110_v38 = vld [vmem:[#allocation7 + $0x7c0] sm:$0xff] }
 0x2b9   :  { %7152 = vmatpush1.bf16.msra.mxu1 %v9001_v40  ;;  %6989 = vmatprep.subr.bf16.mxu0 %v9008_v41  ;;  %v4114_v40 = vld [vmem:[#allocation7 + $0x7e0] sm:$0xff]  ;;  %v4111_v41 = vld [vmem:[#allocation7 + $0x7c8] sm:$0xff] }
 0x2ba   :  { %7153 = vmatprep.subr.bf16.mxu1 %v9010_v42  ;;  %v4115_v42 = vld [vmem:[#allocation7 + $0x7e8] sm:$0xff]  ;;  %v9072_v44 = vcombine.high %v4110_v38, %v4114_v40  ;;  %v9071_v49 = vcombine.low %v4110_v38, %v4114_v40 }
 0x2bb   :  { %v9074_v24 = vcombine.high %v4111_v41, %v4115_v42  ;;  %v9073_v4 = vcombine.low %v4111_v41, %v4115_v42  ;;  %v4171_v38 = vld [vmem:[#allocation7 + $0x9a8] sm:$0xff] }
 0x2bc   :  { %6990 = vmatpush1.bf16.msra.mxu0 %v9007_v32  ;;  %v4118_v32 = vld [vmem:[#allocation7 + $0x800] sm:$0xff] }
 0x2bd   :  { %7154 = vmatpush1.bf16.msra.mxu1 %v9009_v9  ;;  %6991 = vmatprep.subr.bf16.mxu0 %v9016_v47  ;;  %v4122_v9 = vld [vmem:[#allocation7 + $0x820] sm:$0xff]  ;;  %v4119_v47 = vld [vmem:[#allocation7 + $0x808] sm:$0xff] }
 0x2be   :  { %7155 = vmatprep.subr.bf16.mxu1 %v9018_v48  ;;  %v4123_v48 = vld [vmem:[#allocation7 + $0x828] sm:$0xff]  ;;  %v9080_v51 = vcombine.high %v4118_v32, %v4122_v9  ;;  %v9079_v59 = vcombine.low %v4118_v32, %v4122_v9 }
 0x2bf   :  { %v9081_v61 = vcombine.low %v4119_v47, %v4123_v48  ;;  %v4179_v32 = vld [vmem:[#allocation7 + $0x9e8] sm:$0xff] }
 0x2c0   :  { %6992 = vmatpush1.bf16.msra.mxu0 %v9015_v52  ;;  %v9082_v52 = vcombine.high %v4119_v47, %v4123_v48 }
 0x2c1   :  { %7156 = vmatpush1.bf16.msra.mxu1 %v9017_v13  ;;  %6993 = vmatprep.subr.bf16.mxu0 %v9024_v56  ;;  %v4126_v13 = vld [vmem:[#allocation7 + $0x840] sm:$0xff] }
 0x2c2   :  { %7157 = vmatprep.subr.bf16.mxu1 %v9026_v55  ;;  %v4130_v56 = vld [vmem:[#allocation7 + $0x860] sm:$0xff]  ;;  %v4127_v55 = vld [vmem:[#allocation7 + $0x848] sm:$0xff] }
 0x2c3   :  { %v9090_v8 = vcombine.high %v4127_v55, %v4131_v58  ;;  %v9087_v39 = vcombine.low %v4126_v13, %v4130_v56  ;;  %v9089_v3 = vcombine.low %v4127_v55, %v4131_v58 }
 0x2c4   :  { %6994 = vmatpush1.bf16.msra.mxu0 %v9023_v62  ;;  %v9088_v62 = vcombine.high %v4126_v13, %v4130_v56 }
 0x2c5   :  { %7158 = vmatpush1.bf16.msra.mxu1 %v9025_v63  ;;  %6995 = vmatprep.subr.bf16.mxu0 %v9032_v0  ;;  %v4134_v63 = vld [vmem:[#allocation7 + $0x880] sm:$0xff] }
 0x2c6   :  { %7159 = vmatprep.subr.bf16.mxu1 %v9034_v1  ;;  %v4138_v0 = vld [vmem:[#allocation7 + $0x8a0] sm:$0xff]  ;;  %v4135_v1 = vld [vmem:[#allocation7 + $0x888] sm:$0xff] }
 0x2c7   :  { %v9096_v5 = vcombine.high %v4134_v63, %v4138_v0  ;;  %v9095_v16 = vcombine.low %v4134_v63, %v4138_v0  ;;  %v9097_v17 = vcombine.low %v4135_v1, %v4139_v2 }
 0x2c8   :  { %6996 = vmatpush1.bf16.msra.mxu0 %v9031_v6  ;;  %v9098_v6 = vcombine.high %v4135_v1, %v4139_v2 }
 0x2c9   :  { %7160 = vmatpush1.bf16.msra.mxu1 %v9033_v7  ;;  %6997 = vmatprep.subr.bf16.mxu0 %v9040_v10  ;;  %v4142_v7 = vld [vmem:[#allocation7 + $0x8c0] sm:$0xff] }
 0x2ca   :  { %7161 = vmatprep.subr.bf16.mxu1 %v9042_v11  ;;  %v4146_v10 = vld [vmem:[#allocation7 + $0x8e0] sm:$0xff]  ;;  %v4143_v11 = vld [vmem:[#allocation7 + $0x8c8] sm:$0xff] }
 0x2cb   :  { %v9104_v18 = vcombine.high %v4142_v7, %v4146_v10  ;;  %v9103_v23 = vcombine.low %v4142_v7, %v4146_v10  ;;  %v9105_v26 = vcombine.low %v4143_v11, %v4147_v14 }
 0x2cc   :  { %6998 = vmatpush1.bf16.msra.mxu0 %v9039_v19  ;;  %v9106_v19 = vcombine.high %v4143_v11, %v4147_v14 }
 0x2cd   :  { %7162 = vmatpush1.bf16.msra.mxu1 %v9041_v20  ;;  %6999 = vmatprep.subr.bf16.mxu0 %v9048_v21  ;;  %v4150_v20 = vld [vmem:[#allocation7 + $0x900] sm:$0xff] }
 0x2ce   :  { %7163 = vmatprep.subr.bf16.mxu1 %v9050_v22  ;;  %v4154_v21 = vld [vmem:[#allocation7 + $0x920] sm:$0xff]  ;;  %v4151_v22 = vld [vmem:[#allocation7 + $0x908] sm:$0xff] }
 0x2cf   :  { %v9112_v27 = vcombine.high %v4150_v20, %v4154_v21  ;;  %v9111_v33 = vcombine.low %v4150_v20, %v4154_v21  ;;  %v9113_v34 = vcombine.low %v4151_v22, %v4155_v57 }
 0x2d0   :  { %7000 = vmatpush1.bf16.msra.mxu0 %v9047_v12  ;;  %v9114_v12 = vcombine.high %v4151_v22, %v4155_v57 }
 0x2d1   :  { %7164 = vmatpush1.bf16.msra.mxu1 %v9049_v28  ;;  %7001 = vmatprep.subr.bf16.mxu0 %v9056_v29  ;;  %v4158_v28 = vld [vmem:[#allocation7 + $0x940] sm:$0xff] }
 0x2d2   :  { %7165 = vmatprep.subr.bf16.mxu1 %v9058_v30  ;;  %v4162_v29 = vld [vmem:[#allocation7 + $0x960] sm:$0xff]  ;;  %v4159_v30 = vld [vmem:[#allocation7 + $0x948] sm:$0xff] }
 0x2d3   :  { %v9120_v15 = vcombine.high %v4158_v28, %v4162_v29  ;;  %v9119_v40 = vcombine.low %v4158_v28, %v4162_v29  ;;  %v9121_v41 = vcombine.low %v4159_v30, %v4163_v31 }
 0x2d4   :  { %7002 = vmatpush1.bf16.msra.mxu0 %v9055_v35  ;;  %v9122_v35 = vcombine.high %v4159_v30, %v4163_v31 }
 0x2d5   :  { %7166 = vmatpush1.bf16.msra.mxu1 %v9057_v37  ;;  %7003 = vmatprep.subr.bf16.mxu0 %v9064_v25  ;;  %v4166_v37 = vld [vmem:[#allocation7 + $0x980] sm:$0xff] }
 0x2d6   :  { %7167 = vmatprep.subr.bf16.mxu1 %v9066_v53  ;;  %v4170_v25 = vld [vmem:[#allocation7 + $0x9a0] sm:$0xff]  ;;  %v4167_v53 = vld [vmem:[#allocation7 + $0x988] sm:$0xff] }
 0x2d7   :  { %v9128_v42 = vcombine.high %v4166_v37, %v4170_v25  ;;  %v9127_v9 = vcombine.low %v4166_v37, %v4170_v25  ;;  %v9129_v47 = vcombine.low %v4167_v53, %v4171_v38 }
 0x2d8   :  { %7004 = vmatpush1.bf16.msra.mxu0 %v9063_v36  ;;  %v9130_v36 = vcombine.high %v4167_v53, %v4171_v38 }
 0x2d9   :  { %7168 = vmatpush1.bf16.msra.mxu1 %v9065_v43  ;;  %7005 = vmatprep.subr.bf16.mxu0 %v9072_v44  ;;  %v4174_v43 = vld [vmem:[#allocation7 + $0x9c0] sm:$0xff] }
 0x2da   :  { %7169 = vmatprep.subr.bf16.mxu1 %v9074_v24  ;;  %v4178_v44 = vld [vmem:[#allocation7 + $0x9e0] sm:$0xff]  ;;  %v4175_v24 = vld [vmem:[#allocation7 + $0x9c8] sm:$0xff] }
 0x2db   :  { %v9136_v48 = vcombine.high %v4174_v43, %v4178_v44  ;;  %v9135_v13 = vcombine.low %v4174_v43, %v4178_v44  ;;  %v9137_v56 = vcombine.low %v4175_v24, %v4179_v32 }
 0x2dc   :  { %7006 = vmatpush1.bf16.msra.mxu0 %v9071_v49  ;;  %v9138_v49 = vcombine.high %v4175_v24, %v4179_v32 }
 0x2dd   :  { %7170 = vmatpush1.bf16.msra.mxu1 %v9073_v4  ;;  %7016 = vmatprep.subr.bf16.mxu0 %v9080_v51  ;;  %v4186_v4 = vld [vmem:[#allocation7 + $0xa20] sm:$0xff]  ;;  %v4183_v51 = vld [vmem:[#allocation7 + $0xa08] sm:$0xff] }
 0x2de   :  { %7180 = vmatprep.subr.bf16.mxu1 %v9082_v52  ;;  %v4187_v52 = vld [vmem:[#allocation7 + $0xa28] sm:$0xff]  ;;  %v9144_v55 = vcombine.high %v4182_v46, %v4186_v4  ;;  %v9143_v63 = vcombine.low %v4182_v46, %v4186_v4 }
 0x2df   :  { %7008 = vmatmul.mubr.bf16.vlgmr.msra.gmra.mrb[8].mxu0 %v10015_v60  ;;  %v9146_v58 = vcombine.high %v4183_v51, %v4187_v52  ;;  %v9145_v0 = vcombine.low %v4183_v51, %v4187_v52 }
 0x2e0   :  { %7172 = vmatmul.mubr.bf16.vlgmr.msra.gmra.mrb[8].mxu1 %v10015_v60  ;;  %7017 = vmatpush1.bf16.msra.mxu0 %v9079_v59  ;;  %v4190_v59 = vld [vmem:[#allocation7 + $0xa40] sm:$0xff] }
 0x2e1   :  { %7181 = vmatpush1.bf16.msra.mxu1 %v9081_v61  ;;  %7018 = vmatprep.subr.bf16.mxu0 %v9088_v62  ;;  %v4194_v61 = vld [vmem:[#allocation7 + $0xa60] sm:$0xff]  ;;  %v4191_v62 = vld [vmem:[#allocation7 + $0xa48] sm:$0xff] }
 0x2e2   :  { %7182 = vmatprep.subr.bf16.mxu1 %v9090_v8  ;;  %v4195_v8 = vld [vmem:[#allocation7 + $0xa68] sm:$0xff]  ;;  %v9152_v1 = vcombine.high %v4190_v59, %v4194_v61  ;;  %v9151_v7 = vcombine.low %v4190_v59, %v4194_v61 }
 0x2e3   :  { %v9154_v2 = vcombine.high %v4191_v62, %v4195_v8  ;;  %v9153_v10 = vcombine.low %v4191_v62, %v4195_v8 }
 0x2e4   :  { %7019 = vmatpush1.bf16.msra.mxu0 %v9087_v39  ;;  %v4198_v39 = vld [vmem:[#allocation7 + $0xa80] sm:$0xff] }
 0x2e5   :  { %7183 = vmatpush1.bf16.msra.mxu1 %v9089_v3  ;;  %7020 = vmatprep.subr.bf16.mxu0 %v9096_v5  ;;  %v4202_v3 = vld [vmem:[#allocation7 + $0xaa0] sm:$0xff]  ;;  %v4199_v5 = vld [vmem:[#allocation7 + $0xa88] sm:$0xff] }
 0x2e6   :  { %7184 = vmatprep.subr.bf16.mxu1 %v9098_v6  ;;  %v4203_v6 = vld [vmem:[#allocation7 + $0xaa8] sm:$0xff]  ;;  %v9160_v11 = vcombine.high %v4198_v39, %v4202_v3  ;;  %v9159_v20 = vcombine.low %v4198_v39, %v4202_v3 }
 0x2e7   :  { %v9162_v14 = vcombine.high %v4199_v5, %v4203_v6  ;;  %v9161_v21 = vcombine.low %v4199_v5, %v4203_v6  ;;  %v4254_v6 = vld [vmem:[#allocation7 + $0xc40] sm:$0xff] }
 0x2e8   :  { %7021 = vmatpush1.bf16.msra.mxu0 %v9095_v16  ;;  %v4206_v16 = vld [vmem:[#allocation7 + $0xac0] sm:$0xff] }
 0x2e9   :  { %7185 = vmatpush1.bf16.msra.mxu1 %v9097_v17  ;;  %7022 = vmatprep.subr.bf16.mxu0 %v9104_v18  ;;  %v4210_v17 = vld [vmem:[#allocation7 + $0xae0] sm:$0xff]  ;;  %v4207_v18 = vld [vmem:[#allocation7 + $0xac8] sm:$0xff] }
 0x2ea   :  { %7186 = vmatprep.subr.bf16.mxu1 %v9106_v19  ;;  %v4211_v19 = vld [vmem:[#allocation7 + $0xae8] sm:$0xff]  ;;  %v9168_v22 = vcombine.high %v4206_v16, %v4210_v17  ;;  %v9167_v28 = vcombine.low %v4206_v16, %v4210_v17 }
 0x2eb   :  { %v9170_v57 = vcombine.high %v4207_v18, %v4211_v19  ;;  %v9169_v29 = vcombine.low %v4207_v18, %v4211_v19  ;;  %v4255_v16 = vld [vmem:[#allocation7 + $0xc48] sm:$0xff] }
 0x2ec   :  { %7023 = vmatpush1.bf16.msra.mxu0 %v9103_v23  ;;  %v4214_v23 = vld [vmem:[#allocation7 + $0xb00] sm:$0xff]  ;;  %v4259_v17 = vld [vmem:[#allocation7 + $0xc68] sm:$0xff] }
 0x2ed   :  { %7187 = vmatpush1.bf16.msra.mxu1 %v9105_v26  ;;  %7024 = vmatprep.subr.bf16.mxu0 %v9112_v27  ;;  %v4218_v26 = vld [vmem:[#allocation7 + $0xb20] sm:$0xff]  ;;  %v4215_v27 = vld [vmem:[#allocation7 + $0xb08] sm:$0xff] }
 0x2ee   :  { %7188 = vmatprep.subr.bf16.mxu1 %v9114_v12  ;;  %v4219_v12 = vld [vmem:[#allocation7 + $0xb28] sm:$0xff]  ;;  %v9176_v30 = vcombine.high %v4214_v23, %v4218_v26  ;;  %v9175_v37 = vcombine.low %v4214_v23, %v4218_v26  ;;  %v9218_v26 = vcombine.high %v4255_v16, %v4259_v17 }
 0x2ef   :  { %v9178_v31 = vcombine.high %v4215_v27, %v4219_v12  ;;  %v9177_v25 = vcombine.low %v4215_v27, %v4219_v12  ;;  %v4266_v27 = vld [vmem:[#allocation7 + $0xca0] sm:$0xff]  ;;  %v4263_v12 = vld [vmem:[#allocation7 + $0xc88] sm:$0xff] }
 0x2f0   :  { %7025 = vmatpush1.bf16.msra.mxu0 %v9111_v33  ;;  %v4222_v33 = vld [vmem:[#allocation7 + $0xb40] sm:$0xff] }
 0x2f1   :  { %7189 = vmatpush1.bf16.msra.mxu1 %v9113_v34  ;;  %7026 = vmatprep.subr.bf16.mxu0 %v9120_v15  ;;  %v4226_v34 = vld [vmem:[#allocation7 + $0xb60] sm:$0xff]  ;;  %v4223_v15 = vld [vmem:[#allocation7 + $0xb48] sm:$0xff] }
 0x2f2   :  { %7190 = vmatprep.subr.bf16.mxu1 %v9122_v35  ;;  %v4227_v35 = vld [vmem:[#allocation7 + $0xb68] sm:$0xff]  ;;  %v9184_v53 = vcombine.high %v4222_v33, %v4226_v34  ;;  %v9183_v43 = vcombine.low %v4222_v33, %v4226_v34 }
 0x2f3   :  { %v9186_v38 = vcombine.high %v4223_v15, %v4227_v35  ;;  %v9185_v44 = vcombine.low %v4223_v15, %v4227_v35  ;;  %v4270_v15 = vld [vmem:[#allocation7 + $0xcc0] sm:$0xff] }
 0x2f4   :  { %7027 = vmatpush1.bf16.msra.mxu0 %v9119_v40  ;;  %v4230_v40 = vld [vmem:[#allocation7 + $0xb80] sm:$0xff] }
 0x2f5   :  { %7191 = vmatpush1.bf16.msra.mxu1 %v9121_v41  ;;  %7028 = vmatprep.subr.bf16.mxu0 %v9128_v42  ;;  %v4234_v41 = vld [vmem:[#allocation7 + $0xba0] sm:$0xff]  ;;  %v4231_v42 = vld [vmem:[#allocation7 + $0xb88] sm:$0xff] }
 0x2f6   :  { %7192 = vmatprep.subr.bf16.mxu1 %v9130_v36  ;;  %v4235_v36 = vld [vmem:[#allocation7 + $0xba8] sm:$0xff]  ;;  %v9192_v24 = vcombine.high %v4230_v40, %v4234_v41  ;;  %v9191_v46 = vcombine.low %v4230_v40, %v4234_v41  ;;  %v4274_v35 = vld [vmem:[#allocation7 + $0xce0] sm:$0xff] }
 0x2f7   :  { %v9194_v32 = vcombine.high %v4231_v42, %v4235_v36  ;;  %v9193_v4 = vcombine.low %v4231_v42, %v4235_v36  ;;  %v9232_v40 = vcombine.high %v4270_v15, %v4274_v35  ;;  %v4278_v42 = vld [vmem:[#allocation7 + $0xd00] sm:$0xff] }
 0x2f8   :  { %7029 = vmatpush1.bf16.msra.mxu0 %v9127_v9  ;;  %v4238_v9 = vld [vmem:[#allocation7 + $0xbc0] sm:$0xff] }
 0x2f9   :  { %7193 = vmatpush1.bf16.msra.mxu1 %v9129_v47  ;;  %7030 = vmatprep.subr.bf16.mxu0 %v9136_v48  ;;  %v4242_v47 = vld [vmem:[#allocation7 + $0xbe0] sm:$0xff]  ;;  %v4239_v48 = vld [vmem:[#allocation7 + $0xbc8] sm:$0xff] }
 0x2fa   :  { %7194 = vmatprep.subr.bf16.mxu1 %v9138_v49  ;;  %v4243_v49 = vld [vmem:[#allocation7 + $0xbe8] sm:$0xff]  ;;  %v9200_v51 = vcombine.high %v4238_v9, %v4242_v47  ;;  %v9199_v59 = vcombine.low %v4238_v9, %v4242_v47  ;;  %v4282_v36 = vld [vmem:[#allocation7 + $0xd20] sm:$0xff] }
 0x2fb   :  { %v9202_v52 = vcombine.high %v4239_v48, %v4243_v49  ;;  %v9201_v61 = vcombine.low %v4239_v48, %v4243_v49  ;;  %v9240_v9 = vcombine.high %v4278_v42, %v4282_v36  ;;  %v4286_v48 = vld [vmem:[#allocation7 + $0xd40] sm:$0xff] }
 0x2fc   :  { %7031 = vmatpush1.bf16.msra.mxu0 %v9135_v13  ;;  %v4246_v13 = vld [vmem:[#allocation7 + $0xc00] sm:$0xff] }
 0x2fd   :  { %7195 = vmatpush1.bf16.msra.mxu1 %v9137_v56  ;;  %7032 = vmatprep.subr.bf16.mxu0 %v9144_v55  ;;  %v4250_v56 = vld [vmem:[#allocation7 + $0xc20] sm:$0xff]  ;;  %v4247_v55 = vld [vmem:[#allocation7 + $0xc08] sm:$0xff] }
 0x2fe   :  { %7196 = vmatprep.subr.bf16.mxu1 %v9146_v58  ;;  %v4251_v58 = vld [vmem:[#allocation7 + $0xc28] sm:$0xff]  ;;  %v9208_v62 = vcombine.high %v4246_v13, %v4250_v56  ;;  %v4290_v49 = vld [vmem:[#allocation7 + $0xd60] sm:$0xff] }
 0x2ff   :  { %v9210_v8 = vcombine.high %v4247_v55, %v4251_v58 }
 0x300   :  { %7033 = vmatpush1.bf16.msra.mxu0 %v9143_v63 }
 0x301   :  { %7197 = vmatpush1.bf16.msra.mxu1 %v9145_v0  ;;  %7034 = vmatprep.subr.bf16.mxu0 %v9152_v1 }
 0x302   :  { %7198 = vmatprep.subr.bf16.mxu1 %v9154_v2 }
 0x304   :  { %7035 = vmatpush1.bf16.msra.mxu0 %v9151_v7 }
 0x305   :  { %7199 = vmatpush1.bf16.msra.mxu1 %v9153_v10  ;;  %7036 = vmatprep.subr.bf16.mxu0 %v9160_v11 }
 0x306   :  { %7200 = vmatprep.subr.bf16.mxu1 %v9162_v14  ;;  %v4258_v14 = vld [vmem:[#allocation7 + $0xc60] sm:$0xff] }
 0x307   :  { %v9216_v23 = vcombine.high %v4254_v6, %v4258_v14 }
 0x308   :  { %7037 = vmatpush1.bf16.msra.mxu0 %v9159_v20  ;;  %v9207_v20 = vcombine.low %v4246_v13, %v4250_v56  ;;  %v9248_v13 = vcombine.high %v4286_v48, %v4290_v49 }
 0x309   :  { %7201 = vmatpush1.bf16.msra.mxu1 %v9161_v21  ;;  %7038 = vmatprep.subr.bf16.mxu0 %v9168_v22  ;;  %v9209_v21 = vcombine.low %v4247_v55, %v4251_v58  ;;  %v4294_v55 = vld [vmem:[#allocation7 + $0xd80] sm:$0xff] }
 0x30a   :  { %7202 = vmatprep.subr.bf16.mxu1 %v9170_v57  ;;  %v4262_v57 = vld [vmem:[#allocation7 + $0xc80] sm:$0xff] }
 0x30b   :  { %v9224_v33 = vcombine.high %v4262_v57, %v4266_v27  ;;  %v4298_v58 = vld [vmem:[#allocation7 + $0xda0] sm:$0xff] }
 0x30c   :  { %7039 = vmatpush1.bf16.msra.mxu0 %v9167_v28  ;;  %v4267_v28 = vld [vmem:[#allocation7 + $0xca8] sm:$0xff] }
 0x30d   :  { %7203 = vmatpush1.bf16.msra.mxu1 %v9169_v29  ;;  %7040 = vmatprep.subr.bf16.mxu0 %v9176_v30  ;;  %v9215_v30 = vcombine.low %v4254_v6, %v4258_v14  ;;  %v9226_v34 = vcombine.high %v4263_v12, %v4267_v28  ;;  %v9255_v6 = vcombine.low %v4294_v55, %v4298_v58  ;;  %v4310_v14 = vld [vmem:[#allocation7 + $0xe00] sm:$0xff] }
 0x30e   :  { %7204 = vmatprep.subr.bf16.mxu1 %v9178_v31  ;;  %v9217_v31 = vcombine.low %v4255_v16, %v4259_v17  ;;  %v4314_v16 = vld [vmem:[#allocation7 + $0xe20] sm:$0xff]  ;;  %v4311_v17 = vld [vmem:[#allocation7 + $0xe08] sm:$0xff] }
 0x310   :  { %7041 = vmatpush1.bf16.msra.mxu0 %v9175_v37  ;;  %v4271_v37 = vld [vmem:[#allocation7 + $0xcc8] sm:$0xff] }
 0x311   :  { %7205 = vmatpush1.bf16.msra.mxu1 %v9177_v25  ;;  %7042 = vmatprep.subr.bf16.mxu0 %v9184_v53  ;;  %v4275_v25 = vld [vmem:[#allocation7 + $0xce8] sm:$0xff]  ;;  %v9223_v53 = vcombine.low %v4262_v57, %v4266_v27  ;;  %v9272_v57 = vcombine.high %v4310_v14, %v4314_v16  ;;  %v4322_v27 = vld [vmem:[#allocation7 + $0xe60] sm:$0xff] }
 0x312   :  { %7206 = vmatprep.subr.bf16.mxu1 %v9186_v38  ;;  %v9225_v38 = vcombine.low %v4263_v12, %v4267_v28  ;;  %v9234_v41 = vcombine.high %v4271_v37, %v4275_v25  ;;  %v4319_v12 = vld [vmem:[#allocation7 + $0xe48] sm:$0xff] }
 0x313   :  { %v4323_v28 = vld [vmem:[#allocation7 + $0xe68] sm:$0xff] }
 0x314   :  { %7043 = vmatpush1.bf16.msra.mxu0 %v9183_v43  ;;  %v4279_v43 = vld [vmem:[#allocation7 + $0xd08] sm:$0xff] }
 0x315   :  { %7207 = vmatpush1.bf16.msra.mxu1 %v9185_v44  ;;  %7044 = vmatprep.subr.bf16.mxu0 %v9192_v24  ;;  %v4283_v44 = vld [vmem:[#allocation7 + $0xd28] sm:$0xff]  ;;  %v9231_v24 = vcombine.low %v4270_v15, %v4274_v35  ;;  %v4326_v15 = vld [vmem:[#allocation7 + $0xe80] sm:$0xff] }
 0x316   :  { %7208 = vmatprep.subr.bf16.mxu1 %v9194_v32  ;;  %v9233_v32 = vcombine.low %v4271_v37, %v4275_v25  ;;  %v9242_v47 = vcombine.high %v4279_v43, %v4283_v44  ;;  %v4330_v35 = vld [vmem:[#allocation7 + $0xea0] sm:$0xff]  ;;  %v4327_v37 = vld [vmem:[#allocation7 + $0xe88] sm:$0xff] }
 0x317   :  { %v4331_v25 = vld [vmem:[#allocation7 + $0xea8] sm:$0xff] }
 0x318   :  { %7045 = vmatpush1.bf16.msra.mxu0 %v9191_v46  ;;  %v4287_v46 = vld [vmem:[#allocation7 + $0xd48] sm:$0xff] }
 0x319   :  { %7209 = vmatpush1.bf16.msra.mxu1 %v9193_v4  ;;  %7046 = vmatprep.subr.bf16.mxu0 %v9200_v51  ;;  %v4291_v4 = vld [vmem:[#allocation7 + $0xd68] sm:$0xff]  ;;  %v9239_v51 = vcombine.low %v4278_v42, %v4282_v36  ;;  %v4334_v42 = vld [vmem:[#allocation7 + $0xec0] sm:$0xff] }
 0x31a   :  { %7210 = vmatprep.subr.bf16.mxu1 %v9202_v52  ;;  %v9241_v52 = vcombine.low %v4279_v43, %v4283_v44  ;;  %v9250_v56 = vcombine.high %v4287_v46, %v4291_v4  ;;  %v4338_v36 = vld [vmem:[#allocation7 + $0xee0] sm:$0xff]  ;;  %v4335_v43 = vld [vmem:[#allocation7 + $0xec8] sm:$0xff] }
 0x31b   :  { %v4339_v44 = vld [vmem:[#allocation7 + $0xee8] sm:$0xff] }
 0x31c   :  { %7047 = vmatpush1.bf16.msra.mxu0 %v9199_v59  ;;  %v4295_v59 = vld [vmem:[#allocation7 + $0xd88] sm:$0xff] }
 0x31d   :  { %7211 = vmatpush1.bf16.msra.mxu1 %v9201_v61  ;;  %7057 = vmatprep.subr.bf16.mxu0 %v9208_v62  ;;  %v4299_v61 = vld [vmem:[#allocation7 + $0xda8] sm:$0xff]  ;;  %v9247_v62 = vcombine.low %v4286_v48, %v4290_v49  ;;  %v4342_v48 = vld [vmem:[#allocation7 + $0xf00] sm:$0xff] }
 0x31e   :  { %7221 = vmatprep.subr.bf16.mxu1 %v9210_v8  ;;  %v9249_v8 = vcombine.low %v4287_v46, %v4291_v4  ;;  %v4346_v49 = vld [vmem:[#allocation7 + $0xf20] sm:$0xff]  ;;  %v4343_v46 = vld [vmem:[#allocation7 + $0xf08] sm:$0xff] }
 0x31f   :  { %v4347_v4 = vld [vmem:[#allocation7 + $0xf28] sm:$0xff] }
 0x332   :  { %v3675_v63 = vpop.f32.mrb[4].mxu0  ;;  %v10019_v1 = vpop.f32.mrb[4].mxu1 }
 0x333   :  { %v3850_v0 = vmax.f32 %v3675_v63, 0.0  ;;  %v3677_v2 = vpop.f32.mrb[5].mxu0  ;;  %v3841_v3 = vpop.f32.mrb[5].mxu1  ;;  %v9256_v63 = vcombine.high %v4294_v55, %v4298_v58  ;;  %v4350_v55 = vld [vmem:[#allocation7 + $0xf40] sm:$0xff] }
 0x334   :  { %v3851_v39 = vmax.f32 %v3677_v2, 0.0  ;;  %v3679_v5 = vpop.f32.mrb[6].mxu0  ;;  %v3853_v7 = vmax.f32 %v3841_v3, 0.0  ;;  %v3843_v10 = vpop.f32.mrb[6].mxu1  ;;  %v4302_v2 = vld [vmem:[#allocation7 + $0xdc0] sm:$0xff]  ;;  %v4303_v3 = vld [vmem:[#allocation7 + $0xdc8] sm:$0xff] }
 0x335   :  { %v3680_v11 = vpop.f32.mrb[7].mxu0  ;;  %v3844_v19 = vpop.f32.mrb[7].mxu1  ;;  %v10023_v22 = vpack.c.bf16 %v3850_v0, %v3850_v0  ;;  %v9258_v0 = vcombine.high %v4295_v59, %v4299_v61  ;;  %v4307_v5 = vld [vmem:[#allocation7 + $0xde8] sm:$0xff]  ;;  %v4354_v58 = vld [vmem:[#allocation7 + $0xf60] sm:$0xff] }
 0x336   :  { %v10021_v18 = vpack.c.bf16 %v3851_v39, %v3851_v39  ;;  %v10027_v29 = vpack.c.bf16 %v3853_v7, %v3853_v7  ;;  %v4306_v39 = vld [vmem:[#allocation7 + $0xde0] sm:$0xff]  ;;  %v9257_v7 = vcombine.low %v4295_v59, %v4299_v61  ;;  %v9266_v11 = vcombine.high %v4303_v3, %v4307_v5  ;;  %v4315_v19 = vld [vmem:[#allocation7 + $0xe28] sm:$0xff] }
 0x337   :  { %v9264_v10 = vcombine.high %v4302_v2, %v4306_v39  ;;  %v4351_v59 = vld [vmem:[#allocation7 + $0xf48] sm:$0xff] }
 0x338   :  { %7048 = vmatprep.mubr.bf16.mxu0 %v10021_v18  ;;  %7212 = vmatprep.mubr.bf16.mxu1 %v10021_v18  ;;  %v4355_v61 = vld [vmem:[#allocation7 + $0xf68] sm:$0xff] }
 0x339   :  { %7049 = vmatmul.mubr.bf16.vlgmr.msra.gmra.mrb[8].mxu0 %v10023_v22  ;;  %7213 = vmatmul.mubr.bf16.vlgmr.msra.gmra.mrb[8].mxu1 %v10023_v22 }
 0x33a   :  { %7058 = vmatpush1.bf16.msra.mxu0 %v9207_v20  ;;  %7222 = vmatpush1.bf16.msra.mxu1 %v9209_v21  ;;  %v9263_v20 = vcombine.low %v4302_v2, %v4306_v39  ;;  %v9265_v21 = vcombine.low %v4303_v3, %v4307_v5  ;;  %v4358_v2 = vld [vmem:[#allocation7 + $0xf80] sm:$0xff]  ;;  %v4359_v3 = vld [vmem:[#allocation7 + $0xf88] sm:$0xff] }
 0x33b   :  { %7089 = vmatprep.mubr.bf16.mxu0 %v10027_v29  ;;  %7253 = vmatprep.mubr.bf16.mxu1 %v10027_v29  ;;  %v4362_v39 = vld [vmem:[#allocation7 + $0xfa0] sm:$0xff]  ;;  %v4363_v5 = vld [vmem:[#allocation7 + $0xfa8] sm:$0xff] }
 0x33c   :  { %7059 = vmatprep.subr.bf16.mxu0 %v9216_v23  ;;  %7223 = vmatprep.subr.bf16.mxu1 %v9218_v26  ;;  %v9274_v23 = vcombine.high %v4311_v17, %v4315_v19  ;;  %v4318_v26 = vld [vmem:[#allocation7 + $0xe40] sm:$0xff] }
 0x33e   :  { %7060 = vmatpush1.bf16.msra.mxu0 %v9215_v30  ;;  %7224 = vmatpush1.bf16.msra.mxu1 %v9217_v31  ;;  %v9271_v30 = vcombine.low %v4310_v14, %v4314_v16  ;;  %v9273_v31 = vcombine.low %v4311_v17, %v4315_v19  ;;  %v4366_v14 = vld [vmem:[#allocation7 + $0xfc0] sm:$0xff]  ;;  %v4367_v17 = vld [vmem:[#allocation7 + $0xfc8] sm:$0xff] }
 0x33f   :  { %7061 = vmatprep.subr.bf16.mxu0 %v9224_v33  ;;  %7225 = vmatprep.subr.bf16.mxu1 %v9226_v34  ;;  %v9280_v33 = vcombine.high %v4318_v26, %v4322_v27  ;;  %v9282_v34 = vcombine.high %v4319_v12, %v4323_v28  ;;  %v4370_v16 = vld [vmem:[#allocation7 + $0xfe0] sm:$0xff]  ;;  %v4371_v19 = vld [vmem:[#allocation7 + $0xfe8] sm:$0xff] }
 0x342   :  { %7062 = vmatpush1.bf16.msra.mxu0 %v9223_v53  ;;  %7226 = vmatpush1.bf16.msra.mxu1 %v9225_v38  ;;  %v9279_v53 = vcombine.low %v4318_v26, %v4322_v27  ;;  %v9281_v38 = vcombine.low %v4319_v12, %v4323_v28  ;;  %v3864_v26 = vld [vmem:[#allocation7 + $0x10] sm:$0xff]  ;;  %v3865_v12 = vld [vmem:[#allocation7 + $0x18] sm:$0xff] }
 0x343   :  { %7063 = vmatprep.subr.bf16.mxu0 %v9232_v40  ;;  %7227 = vmatprep.subr.bf16.mxu1 %v9234_v41  ;;  %v9288_v40 = vcombine.high %v4326_v15, %v4330_v35  ;;  %v9290_v41 = vcombine.high %v4327_v37, %v4331_v25  ;;  %v3868_v27 = vld [vmem:[#allocation7 + $0x30] sm:$0xff]  ;;  %v3869_v28 = vld [vmem:[#allocation7 + $0x38] sm:$0xff] }
 0x346   :  { %7064 = vmatpush1.bf16.msra.mxu0 %v9231_v24  ;;  %7228 = vmatpush1.bf16.msra.mxu1 %v9233_v32  ;;  %v9287_v24 = vcombine.low %v4326_v15, %v4330_v35  ;;  %v9289_v32 = vcombine.low %v4327_v37, %v4331_v25  ;;  %v8830_v15 = vcombine.high %v3865_v12, %v3869_v28  ;;  %v3872_v35 = vld [vmem:[#allocation7 + $0x50] sm:$0xff]  ;;  %v3873_v25 = vld [vmem:[#allocation7 + $0x58] sm:$0xff] }
 0x347   :  { %7065 = vmatprep.subr.bf16.mxu0 %v9240_v9  ;;  %7229 = vmatprep.subr.bf16.mxu1 %v9242_v47  ;;  %v9296_v9 = vcombine.high %v4334_v42, %v4338_v36  ;;  %v9298_v47 = vcombine.high %v4335_v43, %v4339_v44  ;;  %v3876_v37 = vld [vmem:[#allocation7 + $0x70] sm:$0xff] }
 0x34a   :  { %7066 = vmatpush1.bf16.msra.mxu0 %v9239_v51  ;;  %7230 = vmatpush1.bf16.msra.mxu1 %v9241_v52  ;;  %v9295_v51 = vcombine.low %v4334_v42, %v4338_v36  ;;  %v9297_v52 = vcombine.low %v4335_v43, %v4339_v44  ;;  %v8836_v42 = vcombine.high %v3872_v35, %v3876_v37  ;;  %v3880_v43 = vld [vmem:[#allocation7 + $0x90] sm:$0xff]  ;;  %v3881_v44 = vld [vmem:[#allocation7 + $0x98] sm:$0xff] }
 0x34b   :  { %7067 = vmatprep.subr.bf16.mxu0 %v9248_v13  ;;  %7231 = vmatprep.subr.bf16.mxu1 %v9250_v56  ;;  %v9304_v13 = vcombine.high %v4342_v48, %v4346_v49  ;;  %v9306_v56 = vcombine.high %v4343_v46, %v4347_v4 }
 0x34e   :  { %7068 = vmatpush1.bf16.msra.mxu0 %v9247_v62  ;;  %7232 = vmatpush1.bf16.msra.mxu1 %v9249_v8  ;;  %v9303_v62 = vcombine.low %v4342_v48, %v4346_v49  ;;  %v9305_v8 = vcombine.low %v4343_v46, %v4347_v4  ;;  %v3888_v49 = vld [vmem:[#allocation7 + $0xd0] sm:$0xff]  ;;  %v3889_v4 = vld [vmem:[#allocation7 + $0xd8] sm:$0xff] }
 0x34f   :  { %7069 = vmatprep.subr.bf16.mxu0 %v9256_v63  ;;  %7233 = vmatprep.subr.bf16.mxu1 %v9258_v0  ;;  %v9312_v63 = vcombine.high %v4350_v55, %v4354_v58  ;;  %v9314_v0 = vcombine.high %v4351_v59, %v4355_v61  ;;  %v3892_v46 = vld [vmem:[#allocation7 + $0xf0] sm:$0xff] }
 0x352   :  { %7070 = vmatpush1.bf16.msra.mxu0 %v9255_v6  ;;  %7234 = vmatpush1.bf16.msra.mxu1 %v9257_v7  ;;  %v9311_v6 = vcombine.low %v4350_v55, %v4354_v58  ;;  %v9313_v7 = vcombine.low %v4351_v59, %v4355_v61  ;;  %v3896_v58 = vld [vmem:[#allocation7 + $0x110] sm:$0xff]  ;;  %v3901_v61 = vld [vmem:[#allocation7 + $0x138] sm:$0xff] }
 0x353   :  { %7071 = vmatprep.subr.bf16.mxu0 %v9264_v10  ;;  %7235 = vmatprep.subr.bf16.mxu1 %v9266_v11  ;;  %v9320_v10 = vcombine.high %v4358_v2, %v4362_v39  ;;  %v9322_v11 = vcombine.high %v4359_v3, %v4363_v5  ;;  %v3900_v59 = vld [vmem:[#allocation7 + $0x130] sm:$0xff] }
 0x356   :  { %7072 = vmatpush1.bf16.msra.mxu0 %v9263_v20  ;;  %7236 = vmatpush1.bf16.msra.mxu1 %v9265_v21  ;;  %v9319_v20 = vcombine.low %v4358_v2, %v4362_v39  ;;  %v9321_v21 = vcombine.low %v4359_v3, %v4363_v5  ;;  %v3904_v2 = vld [vmem:[#allocation7 + $0x150] sm:$0xff]  ;;  %v3905_v3 = vld [vmem:[#allocation7 + $0x158] sm:$0xff] }
 0x357   :  { %7073 = vmatprep.subr.bf16.mxu0 %v9272_v57  ;;  %7237 = vmatprep.subr.bf16.mxu1 %v9274_v23  ;;  %v9328_v57 = vcombine.high %v4366_v14, %v4370_v16  ;;  %v9330_v23 = vcombine.high %v4367_v17, %v4371_v19  ;;  %v3908_v39 = vld [vmem:[#allocation7 + $0x170] sm:$0xff]  ;;  %v3909_v5 = vld [vmem:[#allocation7 + $0x178] sm:$0xff] }
 0x35a   :  { %7074 = vmatpush1.bf16.msra.mxu0 %v9271_v30  ;;  %7238 = vmatpush1.bf16.msra.mxu1 %v9273_v31  ;;  %v9327_v30 = vcombine.low %v4366_v14, %v4370_v16  ;;  %v9329_v31 = vcombine.low %v4367_v17, %v4371_v19  ;;  %v3912_v14 = vld [vmem:[#allocation7 + $0x190] sm:$0xff]  ;;  %v3913_v17 = vld [vmem:[#allocation7 + $0x198] sm:$0xff] }
 0x35b   :  { %7075 = vmatprep.subr.bf16.mxu0 %v9280_v33  ;;  %7239 = vmatprep.subr.bf16.mxu1 %v9282_v34  ;;  %v3852_v33 = vmax.f32 %v10019_v1, 0.0  ;;  %v8828_v34 = vcombine.high %v3864_v26, %v3868_v27  ;;  %v3884_v1 = vld [vmem:[#allocation7 + $0xb0] sm:$0xff]  ;;  %v3917_v19 = vld [vmem:[#allocation7 + $0x1b8] sm:$0xff] }
 0x35c   :  { %v3916_v16 = vld [vmem:[#allocation7 + $0x1b0] sm:$0xff] }
 0x35e   :  { %7076 = vmatpush1.bf16.msra.mxu0 %v9279_v53  ;;  %7240 = vmatpush1.bf16.msra.mxu1 %v9281_v38  ;;  %v3877_v53 = vld [vmem:[#allocation7 + $0x78] sm:$0xff]  ;;  %v8827_v38 = vcombine.low %v3864_v26, %v3868_v27  ;;  %v3920_v26 = vld [vmem:[#allocation7 + $0x1d0] sm:$0xff] }
 0x35f   :  { %7077 = vmatprep.subr.bf16.mxu0 %v9288_v40  ;;  %7241 = vmatprep.subr.bf16.mxu1 %v9290_v41  ;;  %v10034_v40 = vpack.c.bf16 %v3852_v33, %v3852_v33  ;;  %v8829_v41 = vcombine.low %v3865_v12, %v3869_v28  ;;  %v8838_v36 = vcombine.high %v3873_v25, %v3877_v53  ;;  %v3924_v27 = vld [vmem:[#allocation7 + $0x1f0] sm:$0xff]  ;;  %v3921_v12 = vld [vmem:[#allocation7 + $0x1d8] sm:$0xff] }
 0x360   :  { %v3925_v28 = vld [vmem:[#allocation7 + $0x1f8] sm:$0xff]  ;;  %v8884_v33 = vcombine.high %v3920_v26, %v3924_v27 }
 0x362   :  { %7078 = vmatpush1.bf16.msra.mxu0 %v9287_v24  ;;  %7242 = vmatpush1.bf16.msra.mxu1 %v9289_v32  ;;  %v3885_v24 = vld [vmem:[#allocation7 + $0xb8] sm:$0xff]  ;;  %v8835_v32 = vcombine.low %v3872_v35, %v3876_v37  ;;  %v3932_v35 = vld [vmem:[#allocation7 + $0x230] sm:$0xff] }
 0x363   :  { %7079 = vmatprep.subr.bf16.mxu0 %v9296_v9  ;;  %7243 = vmatprep.subr.bf16.mxu1 %v9298_v47  ;;  %v8837_v9 = vcombine.low %v3873_v25, %v3877_v53  ;;  %v8844_v47 = vcombine.high %v3880_v43, %v3884_v1  ;;  %v8846_v48 = vcombine.high %v3881_v44, %v3885_v24  ;;  %v3929_v37 = vld [vmem:[#allocation7 + $0x218] sm:$0xff] }
 0x364   :  { %v3933_v25 = vld [vmem:[#allocation7 + $0x238] sm:$0xff]  ;;  %v8883_v53 = vcombine.low %v3920_v26, %v3924_v27  ;;  %v3980_v26 = vld [vmem:[#allocation7 + $0x3b0] sm:$0xff] }
 0x365   :  { %v3977_v27 = vld [vmem:[#allocation7 + $0x398] sm:$0xff] }
 0x366   :  { %7080 = vmatpush1.bf16.msra.mxu0 %v9295_v51  ;;  %7244 = vmatpush1.bf16.msra.mxu1 %v9297_v52  ;;  %v3893_v51 = vld [vmem:[#allocation7 + $0xf8] sm:$0xff]  ;;  %v8843_v52 = vcombine.low %v3880_v43, %v3884_v1  ;;  %v3940_v43 = vld [vmem:[#allocation7 + $0x270] sm:$0xff] }
 0x367   :  { %7081 = vmatprep.subr.bf16.mxu0 %v9304_v13  ;;  %7245 = vmatprep.subr.bf16.mxu1 %v9306_v56  ;;  %v8845_v13 = vcombine.low %v3881_v44, %v3885_v24  ;;  %v8852_v56 = vcombine.high %v3888_v49, %v3892_v46  ;;  %v8854_v55 = vcombine.high %v3889_v4, %v3893_v51  ;;  %v3937_v1 = vld [vmem:[#allocation7 + $0x258] sm:$0xff] }
 0x368   :  { %v3941_v44 = vld [vmem:[#allocation7 + $0x278] sm:$0xff] }
 0x36a   :  { %7082 = vmatpush1.bf16.msra.mxu0 %v9303_v62  ;;  %7246 = vmatpush1.bf16.msra.mxu1 %v9305_v8  ;;  %v8851_v62 = vcombine.low %v3888_v49, %v3892_v46  ;;  %v8853_v8 = vcombine.low %v3889_v4, %v3893_v51  ;;  %v3948_v49 = vld [vmem:[#allocation7 + $0x2b0] sm:$0xff]  ;;  %v3945_v46 = vld [vmem:[#allocation7 + $0x298] sm:$0xff] }
 0x36b   :  { %7083 = vmatprep.subr.bf16.mxu0 %v9312_v63  ;;  %7247 = vmatprep.subr.bf16.mxu1 %v9314_v0  ;;  %v8860_v63 = vcombine.high %v3896_v58, %v3900_v59  ;;  %v3949_v4 = vld [vmem:[#allocation7 + $0x2b8] sm:$0xff] }
 0x36e   :  { %7084 = vmatpush1.bf16.msra.mxu0 %v9311_v6  ;;  %7248 = vmatpush1.bf16.msra.mxu1 %v9313_v7  ;;  %v8859_v6 = vcombine.low %v3896_v58, %v3900_v59  ;;  %v3956_v58 = vld [vmem:[#allocation7 + $0x2f0] sm:$0xff]  ;;  %v3953_v59 = vld [vmem:[#allocation7 + $0x2d8] sm:$0xff] }
 0x36f   :  { %7085 = vmatprep.subr.bf16.mxu0 %v9320_v10  ;;  %7249 = vmatprep.subr.bf16.mxu1 %v9322_v11  ;;  %v8868_v10 = vcombine.high %v3904_v2, %v3908_v39  ;;  %v8870_v11 = vcombine.high %v3905_v3, %v3909_v5 }
 0x372   :  { %7086 = vmatpush1.bf16.msra.mxu0 %v9319_v20  ;;  %7250 = vmatpush1.bf16.msra.mxu1 %v9321_v21  ;;  %v8867_v20 = vcombine.low %v3904_v2, %v3908_v39  ;;  %v8869_v21 = vcombine.low %v3905_v3, %v3909_v5  ;;  %v3964_v2 = vld [vmem:[#allocation7 + $0x330] sm:$0xff]  ;;  %v3961_v39 = vld [vmem:[#allocation7 + $0x318] sm:$0xff] }
 0x373   :  { %7087 = vmatprep.subr.bf16.mxu0 %v9328_v57  ;;  %7251 = vmatprep.subr.bf16.mxu1 %v9330_v23  ;;  %v8876_v57 = vcombine.high %v3912_v14, %v3916_v16  ;;  %v8878_v23 = vcombine.high %v3913_v17, %v3917_v19  ;;  %v3965_v3 = vld [vmem:[#allocation7 + $0x338] sm:$0xff] }
 0x376   :  { %7088 = vmatpush1.bf16.msra.mxu0 %v9327_v30  ;;  %7252 = vmatpush1.bf16.msra.mxu1 %v9329_v31  ;;  %v8875_v30 = vcombine.low %v3912_v14, %v3916_v16  ;;  %v8877_v31 = vcombine.low %v3913_v17, %v3917_v19  ;;  %v3972_v14 = vld [vmem:[#allocation7 + $0x370] sm:$0xff]  ;;  %v3969_v16 = vld [vmem:[#allocation7 + $0x358] sm:$0xff] }
 0x377   :  { %7262 = vmatprep.subr.bf16.mxu0 %v8828_v34  ;;  %7426 = vmatprep.subr.bf16.mxu1 %v8830_v15  ;;  %v8886_v34 = vcombine.high %v3921_v12, %v3925_v28  ;;  %v3928_v15 = vld [vmem:[#allocation7 + $0x210] sm:$0xff]  ;;  %v3973_v17 = vld [vmem:[#allocation7 + $0x378] sm:$0xff] }
 0x378   :  { %v8891_v24 = vcombine.low %v3928_v15, %v3932_v35 }
 0x379   :  { %7090 = vmatmul.mubr.bf16.vlgmr.msra.gmra.mrb[8].mxu0 %v10034_v40  ;;  %7254 = vmatmul.mubr.bf16.vlgmr.msra.gmra.mrb[8].mxu1 %v10034_v40 }
 0x37a   :  { %7263 = vmatpush1.bf16.msra.mxu0 %v8827_v38  ;;  %7294 = vmatprep.mubr.bf16.mxu0 %v9998_v45  ;;  %v8885_v38 = vcombine.low %v3921_v12, %v3925_v28  ;;  %v3981_v12 = vld [vmem:[#allocation7 + $0x3b8] sm:$0xff] }
 0x37b   :  { %7427 = vmatpush1.bf16.msra.mxu1 %v8829_v41  ;;  %7458 = vmatprep.mubr.bf16.mxu1 %v9998_v45  ;;  %v3897_v45 = vld [vmem:[#allocation7 + $0x118] sm:$0xff]  ;;  %v8892_v41 = vcombine.high %v3928_v15, %v3932_v35  ;;  %v3988_v15 = vld [vmem:[#allocation7 + $0x3f0] sm:$0xff] }
 0x37c   :  { %7264 = vmatprep.subr.bf16.mxu0 %v8836_v42  ;;  %7428 = vmatprep.subr.bf16.mxu1 %v8838_v36  ;;  %v8862_v0 = vcombine.high %v3897_v45, %v3901_v61  ;;  %v8861_v7 = vcombine.low %v3897_v45, %v3901_v61  ;;  %v8894_v42 = vcombine.high %v3929_v37, %v3933_v25  ;;  %v3936_v36 = vld [vmem:[#allocation7 + $0x250] sm:$0xff]  ;;  %v3957_v45 = vld [vmem:[#allocation7 + $0x2f8] sm:$0xff] }
 0x37d   :  { %v8899_v51 = vcombine.low %v3936_v36, %v3940_v43  ;;  %v3985_v35 = vld [vmem:[#allocation7 + $0x3d8] sm:$0xff] }
 0x37e   :  { %7265 = vmatpush1.bf16.msra.mxu0 %v8835_v32  ;;  %v8893_v32 = vcombine.low %v3929_v37, %v3933_v25  ;;  %v3989_v37 = vld [vmem:[#allocation7 + $0x3f8] sm:$0xff] }
 0x37f   :  { %7429 = vmatpush1.bf16.msra.mxu1 %v8837_v9  ;;  %7266 = vmatprep.subr.bf16.mxu0 %v8844_v47  ;;  %v8900_v9 = vcombine.high %v3936_v36, %v3940_v43  ;;  %v8902_v47 = vcombine.high %v3937_v1, %v3941_v44  ;;  %v3996_v36 = vld [vmem:[#allocation7 + $0x430] sm:$0xff]  ;;  %v3993_v43 = vld [vmem:[#allocation7 + $0x418] sm:$0xff] }
 0x380   :  { %7430 = vmatprep.subr.bf16.mxu1 %v8846_v48  ;;  %v3944_v48 = vld [vmem:[#allocation7 + $0x290] sm:$0xff] }
 0x381   :  { %v8907_v61 = vcombine.low %v3944_v48, %v3948_v49 }
 0x382   :  { %7267 = vmatpush1.bf16.msra.mxu0 %v8843_v52  ;;  %v8901_v52 = vcombine.low %v3937_v1, %v3941_v44  ;;  %v3997_v1 = vld [vmem:[#allocation7 + $0x438] sm:$0xff] }
 0x383   :  { %7431 = vmatpush1.bf16.msra.mxu1 %v8845_v13  ;;  %7268 = vmatprep.subr.bf16.mxu0 %v8852_v56  ;;  %v8908_v13 = vcombine.high %v3944_v48, %v3948_v49  ;;  %v8910_v56 = vcombine.high %v3945_v46, %v3949_v4  ;;  %v4004_v48 = vld [vmem:[#allocation7 + $0x470] sm:$0xff] }
 0x384   :  { %7432 = vmatprep.subr.bf16.mxu1 %v8854_v55  ;;  %v3952_v55 = vld [vmem:[#allocation7 + $0x2d0] sm:$0xff] }
 0x385   :  { %v8915_v5 = vcombine.low %v3952_v55, %v3956_v58 }
 0x386   :  { %7269 = vmatpush1.bf16.msra.mxu0 %v8851_v62  ;;  %v8909_v62 = vcombine.low %v3945_v46, %v3949_v4  ;;  %v4001_v46 = vld [vmem:[#allocation7 + $0x458] sm:$0xff] }
 0x387   :  { %7433 = vmatpush1.bf16.msra.mxu1 %v8853_v8  ;;  %7270 = vmatprep.subr.bf16.mxu0 %v8860_v63  ;;  %v8916_v8 = vcombine.high %v3952_v55, %v3956_v58  ;;  %v8918_v63 = vcombine.high %v3953_v59, %v3957_v45  ;;  %v4005_v4 = vld [vmem:[#allocation7 + $0x478] sm:$0xff] }
 0x388   :  { %7434 = vmatprep.subr.bf16.mxu1 %v8862_v0  ;;  %v3960_v0 = vld [vmem:[#allocation7 + $0x310] sm:$0xff]  ;;  %v8966_v55 = vcombine.high %v4001_v46, %v4005_v4  ;;  %v4009_v58 = vld [vmem:[#allocation7 + $0x498] sm:$0xff] }
 0x389   :  { %v8923_v19 = vcombine.low %v3960_v0, %v3964_v2 }
 0x38a   :  { %7271 = vmatpush1.bf16.msra.mxu0 %v8859_v6  ;;  %v8917_v6 = vcombine.low %v3953_v59, %v3957_v45  ;;  %v4013_v59 = vld [vmem:[#allocation7 + $0x4b8] sm:$0xff] }
 0x38b   :  { %7435 = vmatpush1.bf16.msra.mxu1 %v8861_v7  ;;  %7272 = vmatprep.subr.bf16.mxu0 %v8868_v10  ;;  %v8924_v7 = vcombine.high %v3960_v0, %v3964_v2  ;;  %v8926_v10 = vcombine.high %v3961_v39, %v3965_v3  ;;  %v4020_v0 = vld [vmem:[#allocation7 + $0x4f0] sm:$0xff]  ;;  %v4017_v2 = vld [vmem:[#allocation7 + $0x4d8] sm:$0xff] }
 0x38c   :  { %7436 = vmatprep.subr.bf16.mxu1 %v8870_v11  ;;  %v3968_v11 = vld [vmem:[#allocation7 + $0x350] sm:$0xff] }
 0x38d   :  { %v8931_v28 = vcombine.low %v3968_v11, %v3972_v14 }
 0x38e   :  { %7273 = vmatpush1.bf16.msra.mxu0 %v8867_v20  ;;  %v8925_v20 = vcombine.low %v3961_v39, %v3965_v3  ;;  %v4021_v39 = vld [vmem:[#allocation7 + $0x4f8] sm:$0xff] }
 0x38f   :  { %7437 = vmatpush1.bf16.msra.mxu1 %v8869_v21  ;;  %7274 = vmatprep.subr.bf16.mxu0 %v8876_v57  ;;  %v8932_v21 = vcombine.high %v3968_v11, %v3972_v14  ;;  %v8934_v57 = vcombine.high %v3969_v16, %v3973_v17  ;;  %v4025_v11 = vld [vmem:[#allocation7 + $0x518] sm:$0xff] }
 0x390   :  { %7438 = vmatprep.subr.bf16.mxu1 %v8878_v23  ;;  %v3976_v23 = vld [vmem:[#allocation7 + $0x390] sm:$0xff]  ;;  %v4029_v14 = vld [vmem:[#allocation7 + $0x538] sm:$0xff] }
 0x391   :  { %v8939_v25 = vcombine.low %v3976_v23, %v3980_v26 }
 0x392   :  { %7275 = vmatpush1.bf16.msra.mxu0 %v8875_v30  ;;  %v8933_v30 = vcombine.low %v3969_v16, %v3973_v17  ;;  %v8981_v16 = vcombine.low %v4017_v2, %v4021_v39 }
 0x393   :  { %7439 = vmatpush1.bf16.msra.mxu1 %v8877_v31  ;;  %7276 = vmatprep.subr.bf16.mxu0 %v8884_v33  ;;  %v8940_v31 = vcombine.high %v3976_v23, %v3980_v26  ;;  %v8942_v33 = vcombine.high %v3977_v27, %v3981_v12  ;;  %v4037_v23 = vld [vmem:[#allocation7 + $0x578] sm:$0xff] }
 0x394   :  { %7440 = vmatprep.subr.bf16.mxu1 %v8886_v34  ;;  %v3984_v34 = vld [vmem:[#allocation7 + $0x3d0] sm:$0xff] }
 0x395   :  { %v8947_v44 = vcombine.low %v3984_v34, %v3988_v15 }
 0x396   :  { %7277 = vmatpush1.bf16.msra.mxu0 %v8883_v53  ;;  %v8941_v53 = vcombine.low %v3977_v27, %v3981_v12  ;;  %v8989_v27 = vcombine.low %v4025_v11, %v4029_v14 }
 0x397   :  { %7441 = vmatpush1.bf16.msra.mxu1 %v8885_v38  ;;  %7278 = vmatprep.subr.bf16.mxu0 %v8892_v41  ;;  %v8948_v38 = vcombine.high %v3984_v34, %v3988_v15  ;;  %v8950_v41 = vcombine.high %v3985_v35, %v3989_v37  ;;  %v4045_v34 = vld [vmem:[#allocation7 + $0x5b8] sm:$0xff] }
 0x398   :  { %7442 = vmatprep.subr.bf16.mxu1 %v8894_v42  ;;  %v3992_v42 = vld [vmem:[#allocation7 + $0x410] sm:$0xff] }
 0x399   :  { %v8955_v49 = vcombine.low %v3992_v42, %v3996_v36 }
 0x39a   :  { %7279 = vmatpush1.bf16.msra.mxu0 %v8891_v24  ;;  %v8949_v24 = vcombine.low %v3985_v35, %v3989_v37 }
 0x39b   :  { %7443 = vmatpush1.bf16.msra.mxu1 %v8893_v32  ;;  %7280 = vmatprep.subr.bf16.mxu0 %v8900_v9  ;;  %v8956_v32 = vcombine.high %v3992_v42, %v3996_v36  ;;  %v8958_v9 = vcombine.high %v3993_v43, %v3997_v1  ;;  %v4053_v42 = vld [vmem:[#allocation7 + $0x5f8] sm:$0xff] }
 0x39c   :  { %7444 = vmatprep.subr.bf16.mxu1 %v8902_v47  ;;  %v4000_v47 = vld [vmem:[#allocation7 + $0x450] sm:$0xff] }
 0x39d   :  { %v8963_v45 = vcombine.low %v4000_v47, %v4004_v48 }
 0x39e   :  { %7281 = vmatpush1.bf16.msra.mxu0 %v8899_v51  ;;  %v8957_v51 = vcombine.low %v3993_v43, %v3997_v1 }
 0x39f   :  { %7445 = vmatpush1.bf16.msra.mxu1 %v8901_v52  ;;  %7282 = vmatprep.subr.bf16.mxu0 %v8908_v13  ;;  %v8964_v52 = vcombine.high %v4000_v47, %v4004_v48  ;;  %v4008_v13 = vld [vmem:[#allocation7 + $0x490] sm:$0xff]  ;;  %v4061_v47 = vld [vmem:[#allocation7 + $0x638] sm:$0xff] }
 0x3a0   :  { %7446 = vmatprep.subr.bf16.mxu1 %v8910_v56  ;;  %v4012_v56 = vld [vmem:[#allocation7 + $0x4b0] sm:$0xff] }
 0x3a1   :  { %v8971_v3 = vcombine.low %v4008_v13, %v4012_v56 }
 0x3a2   :  { %7283 = vmatpush1.bf16.msra.mxu0 %v8907_v61  ;;  %v8965_v61 = vcombine.low %v4001_v46, %v4005_v4 }
 0x3a3   :  { %7447 = vmatpush1.bf16.msra.mxu1 %v8909_v62  ;;  %7284 = vmatprep.subr.bf16.mxu0 %v8916_v8  ;;  %v8972_v62 = vcombine.high %v4008_v13, %v4012_v56  ;;  %v8974_v8 = vcombine.high %v4009_v58, %v4013_v59  ;;  %v4065_v13 = vld [vmem:[#allocation7 + $0x658] sm:$0xff] }
 0x3a4   :  { %7448 = vmatprep.subr.bf16.mxu1 %v8918_v63  ;;  %v4016_v63 = vld [vmem:[#allocation7 + $0x4d0] sm:$0xff]  ;;  %v4069_v56 = vld [vmem:[#allocation7 + $0x678] sm:$0xff] }
 0x3a6   :  { %7285 = vmatpush1.bf16.msra.mxu0 %v8915_v5  ;;  %v8980_v5 = vcombine.high %v4016_v63, %v4020_v0 }
 0x3a7   :  { %7449 = vmatpush1.bf16.msra.mxu1 %v8917_v6  ;;  %7286 = vmatprep.subr.bf16.mxu0 %v8924_v7  ;;  %v8982_v6 = vcombine.high %v4017_v2, %v4021_v39  ;;  %v4024_v7 = vld [vmem:[#allocation7 + $0x510] sm:$0xff]  ;;  %v9029_v2 = vcombine.low %v4065_v13, %v4069_v56 }
 0x3a8   :  { %7450 = vmatprep.subr.bf16.mxu1 %v8926_v10  ;;  %v4028_v10 = vld [vmem:[#allocation7 + $0x530] sm:$0xff] }
 0x3a9   :  { %v8988_v17 = vcombine.high %v4024_v7, %v4028_v10  ;;  %v8987_v26 = vcombine.low %v4024_v7, %v4028_v10  ;;  %v4085_v7 = vld [vmem:[#allocation7 + $0x6f8] sm:$0xff] }
 0x3aa   :  { %7287 = vmatpush1.bf16.msra.mxu0 %v8923_v19  ;;  %v8990_v19 = vcombine.high %v4025_v11, %v4029_v14 }
 0x3ab   :  { %7451 = vmatpush1.bf16.msra.mxu1 %v8925_v20  ;;  %7288 = vmatprep.subr.bf16.mxu0 %v8932_v21  ;;  %v4032_v20 = vld [vmem:[#allocation7 + $0x550] sm:$0xff] }
 0x3ac   :  { %7452 = vmatprep.subr.bf16.mxu1 %v8934_v57  ;;  %v4036_v21 = vld [vmem:[#allocation7 + $0x570] sm:$0xff]  ;;  %v4033_v57 = vld [vmem:[#allocation7 + $0x558] sm:$0xff] }
 0x3ad   :  { %v8996_v12 = vcombine.high %v4032_v20, %v4036_v21  ;;  %v8995_v15 = vcombine.low %v4032_v20, %v4036_v21  ;;  %v8997_v35 = vcombine.low %v4033_v57, %v4037_v23  ;;  %v4093_v20 = vld [vmem:[#allocation7 + $0x738] sm:$0xff] }
 0x3ae   :  { %7289 = vmatpush1.bf16.msra.mxu0 %v8931_v28  ;;  %v8998_v28 = vcombine.high %v4033_v57, %v4037_v23 }
 0x3af   :  { %7453 = vmatpush1.bf16.msra.mxu1 %v8933_v30  ;;  %7290 = vmatprep.subr.bf16.mxu0 %v8940_v31  ;;  %v4040_v30 = vld [vmem:[#allocation7 + $0x590] sm:$0xff] }
 0x3b0   :  { %7454 = vmatprep.subr.bf16.mxu1 %v8942_v33  ;;  %v4044_v31 = vld [vmem:[#allocation7 + $0x5b0] sm:$0xff]  ;;  %v4041_v33 = vld [vmem:[#allocation7 + $0x598] sm:$0xff] }
 0x3b1   :  { %v9004_v37 = vcombine.high %v4040_v30, %v4044_v31  ;;  %v9003_v36 = vcombine.low %v4040_v30, %v4044_v31  ;;  %v9005_v43 = vcombine.low %v4041_v33, %v4045_v34  ;;  %v4101_v30 = vld [vmem:[#allocation7 + $0x778] sm:$0xff] }
 0x3b2   :  { %7291 = vmatpush1.bf16.msra.mxu0 %v8939_v25  ;;  %v9006_v25 = vcombine.high %v4041_v33, %v4045_v34 }
 0x3b3   :  { %7455 = vmatpush1.bf16.msra.mxu1 %v8941_v53  ;;  %7292 = vmatprep.subr.bf16.mxu0 %v8948_v38  ;;  %v4048_v53 = vld [vmem:[#allocation7 + $0x5d0] sm:$0xff] }
 0x3b4   :  { %7456 = vmatprep.subr.bf16.mxu1 %v8950_v41  ;;  %v4052_v38 = vld [vmem:[#allocation7 + $0x5f0] sm:$0xff]  ;;  %v4049_v41 = vld [vmem:[#allocation7 + $0x5d8] sm:$0xff] }
 0x3b5   :  { %v9012_v1 = vcombine.high %v4048_v53, %v4052_v38  ;;  %v9011_v48 = vcombine.low %v4048_v53, %v4052_v38  ;;  %v4109_v53 = vld [vmem:[#allocation7 + $0x7b8] sm:$0xff] }
 0x3b6   :  { %7293 = vmatpush1.bf16.msra.mxu0 %v8947_v44  ;;  %v9014_v44 = vcombine.high %v4049_v41, %v4053_v42 }
 0x3b7   :  { %7457 = vmatpush1.bf16.msra.mxu1 %v8949_v24  ;;  %7303 = vmatprep.subr.bf16.mxu0 %v8956_v32  ;;  %v4056_v24 = vld [vmem:[#allocation7 + $0x610] sm:$0xff] }
 0x3b8   :  { %7467 = vmatprep.subr.bf16.mxu1 %v8958_v9  ;;  %v4060_v32 = vld [vmem:[#allocation7 + $0x630] sm:$0xff]  ;;  %v4057_v9 = vld [vmem:[#allocation7 + $0x618] sm:$0xff] }
 0x3b9   :  { %7295 = vmatmul.mubr.bf16.vlgmr.msra.gmra.mrb[12].mxu0 %v10006_v50  ;;  %v9020_v46 = vcombine.high %v4056_v24, %v4060_v32  ;;  %v9022_v4 = vcombine.high %v4057_v9, %v4061_v47 }
 0x3ba   :  { %7459 = vmatmul.mubr.bf16.vlgmr.msra.gmra.mrb[12].mxu1 %v10006_v50  ;;  %7304 = vmatpush1.bf16.msra.mxu0 %v8955_v49  ;;  %v8973_v50 = vcombine.low %v4009_v58, %v4013_v59  ;;  %v9013_v49 = vcombine.low %v4049_v41, %v4053_v42  ;;  %v9021_v58 = vcombine.low %v4057_v9, %v4061_v47 }
 0x3bb   :  { %7335 = vmatprep.mubr.bf16.mxu0 %v10008_v54  ;;  %7468 = vmatpush1.bf16.msra.mxu1 %v8957_v51  ;;  %v4064_v51 = vld [vmem:[#allocation7 + $0x650] sm:$0xff] }
 0x3bc   :  { %7499 = vmatprep.mubr.bf16.mxu1 %v10008_v54  ;;  %7305 = vmatprep.subr.bf16.mxu0 %v8964_v52  ;;  %v8979_v54 = vcombine.low %v4016_v63, %v4020_v0  ;;  %v4068_v52 = vld [vmem:[#allocation7 + $0x670] sm:$0xff]  ;;  %v4077_v63 = vld [vmem:[#allocation7 + $0x6b8] sm:$0xff] }
 0x3bd   :  { %7469 = vmatprep.subr.bf16.mxu1 %v8966_v55  ;;  %v9019_v55 = vcombine.low %v4056_v24, %v4060_v32  ;;  %v9028_v59 = vcombine.high %v4064_v51, %v4068_v52  ;;  %v9027_v0 = vcombine.low %v4064_v51, %v4068_v52  ;;  %v4117_v24 = vld [vmem:[#allocation7 + $0x7f8] sm:$0xff] }
 0x3be   :  { %7306 = vmatpush1.bf16.msra.mxu0 %v8963_v45  ;;  %v9030_v45 = vcombine.high %v4065_v13, %v4069_v56  ;;  %v4125_v51 = vld [vmem:[#allocation7 + $0x838] sm:$0xff] }
 0x3bf   :  { %7470 = vmatpush1.bf16.msra.mxu1 %v8965_v61  ;;  %7307 = vmatprep.subr.bf16.mxu0 %v8972_v62  ;;  %v4072_v61 = vld [vmem:[#allocation7 + $0x690] sm:$0xff] }
 0x3c0   :  { %7471 = vmatprep.subr.bf16.mxu1 %v8974_v8  ;;  %v4076_v62 = vld [vmem:[#allocation7 + $0x6b0] sm:$0xff]  ;;  %v4073_v8 = vld [vmem:[#allocation7 + $0x698] sm:$0xff] }
 0x3c1   :  { %v9036_v39 = vcombine.high %v4072_v61, %v4076_v62  ;;  %v9035_v10 = vcombine.low %v4072_v61, %v4076_v62  ;;  %v9037_v11 = vcombine.low %v4073_v8, %v4077_v63  ;;  %v4129_v61 = vld [vmem:[#allocation7 + $0x858] sm:$0xff] }
 0x3c2   :  { %7308 = vmatpush1.bf16.msra.mxu0 %v8971_v3  ;;  %v9038_v3 = vcombine.high %v4073_v8, %v4077_v63  ;;  %v4133_v62 = vld [vmem:[#allocation7 + $0x878] sm:$0xff] }
 0x3c3   :  { %7472 = vmatpush1.bf16.msra.mxu1 %v8973_v50  ;;  %7309 = vmatprep.subr.bf16.mxu0 %v8980_v5  ;;  %v4080_v50 = vld [vmem:[#allocation7 + $0x6d0] sm:$0xff] }
 0x3c4   :  { %7473 = vmatprep.subr.bf16.mxu1 %v8982_v6  ;;  %v4084_v5 = vld [vmem:[#allocation7 + $0x6f0] sm:$0xff]  ;;  %v4081_v6 = vld [vmem:[#allocation7 + $0x6d8] sm:$0xff] }
 0x3c5   :  { %v9044_v14 = vcombine.high %v4080_v50, %v4084_v5  ;;  %v9043_v21 = vcombine.low %v4080_v50, %v4084_v5  ;;  %v9045_v57 = vcombine.low %v4081_v6, %v4085_v7  ;;  %v4141_v50 = vld [vmem:[#allocation7 + $0x8b8] sm:$0xff] }
 0x3c6   :  { %7310 = vmatpush1.bf16.msra.mxu0 %v8979_v54  ;;  %v9046_v54 = vcombine.high %v4081_v6, %v4085_v7  ;;  %v9093_v6 = vcombine.low %v4129_v61, %v4133_v62 }
 0x3c7   :  { %7474 = vmatpush1.bf16.msra.mxu1 %v8981_v16  ;;  %7311 = vmatprep.subr.bf16.mxu0 %v8988_v17  ;;  %v4088_v16 = vld [vmem:[#allocation7 + $0x710] sm:$0xff] }
 0x3c8   :  { %7475 = vmatprep.subr.bf16.mxu1 %v8990_v19  ;;  %v4092_v17 = vld [vmem:[#allocation7 + $0x730] sm:$0xff]  ;;  %v4089_v19 = vld [vmem:[#allocation7 + $0x718] sm:$0xff] }
 0x3c9   :  { %v9052_v23 = vcombine.high %v4088_v16, %v4092_v17  ;;  %v9051_v31 = vcombine.low %v4088_v16, %v4092_v17  ;;  %v9053_v33 = vcombine.low %v4089_v19, %v4093_v20  ;;  %v4149_v16 = vld [vmem:[#allocation7 + $0x8f8] sm:$0xff] }
 0x3ca   :  { %7312 = vmatpush1.bf16.msra.mxu0 %v8987_v26  ;;  %v9054_v26 = vcombine.high %v4089_v19, %v4093_v20 }
 0x3cb   :  { %7476 = vmatpush1.bf16.msra.mxu1 %v8989_v27  ;;  %7313 = vmatprep.subr.bf16.mxu0 %v8996_v12  ;;  %v4096_v27 = vld [vmem:[#allocation7 + $0x750] sm:$0xff] }
 0x3cc   :  { %7477 = vmatprep.subr.bf16.mxu1 %v8998_v28  ;;  %v4100_v12 = vld [vmem:[#allocation7 + $0x770] sm:$0xff]  ;;  %v4097_v28 = vld [vmem:[#allocation7 + $0x758] sm:$0xff] }
 0x3cd   :  { %v9060_v34 = vcombine.high %v4096_v27, %v4100_v12  ;;  %v9059_v38 = vcombine.low %v4096_v27, %v4100_v12  ;;  %v9061_v41 = vcombine.low %v4097_v28, %v4101_v30 }
 0x3ce   :  { %7314 = vmatpush1.bf16.msra.mxu0 %v8995_v15  ;;  %v9062_v15 = vcombine.high %v4097_v28, %v4101_v30  ;;  %v4160_v30 = vld [vmem:[#allocation7 + $0x950] sm:$0xff] }
 0x3cf   :  { %7478 = vmatpush1.bf16.msra.mxu1 %v8997_v35  ;;  %7315 = vmatprep.subr.bf16.mxu0 %v9004_v37  ;;  %v4104_v35 = vld [vmem:[#allocation7 + $0x790] sm:$0xff] }
 0x3d0   :  { %7479 = vmatprep.subr.bf16.mxu1 %v9006_v25  ;;  %v4108_v37 = vld [vmem:[#allocation7 + $0x7b0] sm:$0xff]  ;;  %v4105_v25 = vld [vmem:[#allocation7 + $0x798] sm:$0xff] }
 0x3d1   :  { %v9068_v42 = vcombine.high %v4104_v35, %v4108_v37  ;;  %v9067_v32 = vcombine.low %v4104_v35, %v4108_v37  ;;  %v9069_v9 = vcombine.low %v4105_v25, %v4109_v53 }
 0x3d2   :  { %7316 = vmatpush1.bf16.msra.mxu0 %v9003_v36  ;;  %v9070_v36 = vcombine.high %v4105_v25, %v4109_v53  ;;  %v4168_v53 = vld [vmem:[#allocation7 + $0x990] sm:$0xff] }
 0x3d3   :  { %7480 = vmatpush1.bf16.msra.mxu1 %v9005_v43  ;;  %7317 = vmatprep.subr.bf16.mxu0 %v9012_v1  ;;  %v4112_v43 = vld [vmem:[#allocation7 + $0x7d0] sm:$0xff] }
 0x3d4   :  { %7481 = vmatprep.subr.bf16.mxu1 %v9014_v44  ;;  %v4116_v1 = vld [vmem:[#allocation7 + $0x7f0] sm:$0xff]  ;;  %v4113_v44 = vld [vmem:[#allocation7 + $0x7d8] sm:$0xff] }
 0x3d5   :  { %v9076_v47 = vcombine.high %v4112_v43, %v4116_v1  ;;  %v9075_v52 = vcombine.low %v4112_v43, %v4116_v1  ;;  %v9077_v13 = vcombine.low %v4113_v44, %v4117_v24 }
 0x3d6   :  { %7318 = vmatpush1.bf16.msra.mxu0 %v9011_v48  ;;  %v9078_v48 = vcombine.high %v4113_v44, %v4117_v24  ;;  %v4176_v24 = vld [vmem:[#allocation7 + $0x9d0] sm:$0xff] }
 0x3d7   :  { %7482 = vmatpush1.bf16.msra.mxu1 %v9013_v49  ;;  %7319 = vmatprep.subr.bf16.mxu0 %v9020_v46  ;;  %v4120_v49 = vld [vmem:[#allocation7 + $0x810] sm:$0xff] }
 0x3d8   :  { %7483 = vmatprep.subr.bf16.mxu1 %v9022_v4  ;;  %v4124_v46 = vld [vmem:[#allocation7 + $0x830] sm:$0xff]  ;;  %v4121_v4 = vld [vmem:[#allocation7 + $0x818] sm:$0xff] }
 0x3d9   :  { %v9084_v56 = vcombine.high %v4120_v49, %v4124_v46  ;;  %v9085_v8 = vcombine.low %v4121_v4, %v4125_v51 }
 0x3da   :  { %7320 = vmatpush1.bf16.msra.mxu0 %v9019_v55  ;;  %v9086_v55 = vcombine.high %v4121_v4, %v4125_v51  ;;  %v4184_v51 = vld [vmem:[#allocation7 + $0xa10] sm:$0xff] }
 0x3db   :  { %7484 = vmatpush1.bf16.msra.mxu1 %v9021_v58  ;;  %7321 = vmatprep.subr.bf16.mxu0 %v9028_v59  ;;  %v4128_v58 = vld [vmem:[#allocation7 + $0x850] sm:$0xff] }
 0x3dc   :  { %7485 = vmatprep.subr.bf16.mxu1 %v9030_v45  ;;  %v4132_v59 = vld [vmem:[#allocation7 + $0x870] sm:$0xff]  ;;  %v9083_v45 = vcombine.low %v4120_v49, %v4124_v46 }
 0x3dd   :  { %v9092_v63 = vcombine.high %v4128_v58, %v4132_v59  ;;  %v9091_v5 = vcombine.low %v4128_v58, %v4132_v59 }
 0x3de   :  { %7322 = vmatpush1.bf16.msra.mxu0 %v9027_v0  ;;  %v4136_v0 = vld [vmem:[#allocation7 + $0x890] sm:$0xff] }
 0x3df   :  { %7486 = vmatpush1.bf16.msra.mxu1 %v9029_v2  ;;  %7323 = vmatprep.subr.bf16.mxu0 %v9036_v39  ;;  %v4140_v2 = vld [vmem:[#allocation7 + $0x8b0] sm:$0xff]  ;;  %v9094_v39 = vcombine.high %v4129_v61, %v4133_v62 }
 0x3e0   :  { %7487 = vmatprep.subr.bf16.mxu1 %v9038_v3  ;;  %v4137_v3 = vld [vmem:[#allocation7 + $0x898] sm:$0xff]  ;;  %v9100_v7 = vcombine.high %v4136_v0, %v4140_v2  ;;  %v9099_v17 = vcombine.low %v4136_v0, %v4140_v2  ;;  %v4192_v61 = vld [vmem:[#allocation7 + $0xa50] sm:$0xff] }
 0x3e1   :  { %v4196_v62 = vld [vmem:[#allocation7 + $0xa70] sm:$0xff] }
 0x3e2   :  { %7324 = vmatpush1.bf16.msra.mxu0 %v9035_v10  ;;  %v9102_v10 = vcombine.high %v4137_v3, %v4141_v50 }
 0x3e3   :  { %7488 = vmatpush1.bf16.msra.mxu1 %v9037_v11  ;;  %7325 = vmatprep.subr.bf16.mxu0 %v9044_v14  ;;  %v4144_v11 = vld [vmem:[#allocation7 + $0x8d0] sm:$0xff] }
 0x3e4   :  { %7489 = vmatprep.subr.bf16.mxu1 %v9046_v54  ;;  %v4148_v14 = vld [vmem:[#allocation7 + $0x8f0] sm:$0xff]  ;;  %v4145_v54 = vld [vmem:[#allocation7 + $0x8d8] sm:$0xff] }
 0x3e5   :  { %v9108_v19 = vcombine.high %v4144_v11, %v4148_v14  ;;  %v9110_v20 = vcombine.high %v4145_v54, %v4149_v16  ;;  %v9109_v27 = vcombine.low %v4145_v54, %v4149_v16  ;;  %v4208_v16 = vld [vmem:[#allocation7 + $0xad0] sm:$0xff] }
 0x3e6   :  { %7326 = vmatpush1.bf16.msra.mxu0 %v9043_v21  ;;  %v4152_v21 = vld [vmem:[#allocation7 + $0x910] sm:$0xff] }
 0x3e7   :  { %7490 = vmatpush1.bf16.msra.mxu1 %v9045_v57  ;;  %7327 = vmatprep.subr.bf16.mxu0 %v9052_v23  ;;  %v4156_v57 = vld [vmem:[#allocation7 + $0x930] sm:$0xff]  ;;  %v4153_v23 = vld [vmem:[#allocation7 + $0x918] sm:$0xff] }
 0x3e8   :  { %7491 = vmatprep.subr.bf16.mxu1 %v9054_v26  ;;  %v4157_v26 = vld [vmem:[#allocation7 + $0x938] sm:$0xff]  ;;  %v9116_v12 = vcombine.high %v4152_v21, %v4156_v57 }
 0x3e9   :  { %v9118_v28 = vcombine.high %v4153_v23, %v4157_v26  ;;  %v9117_v35 = vcombine.low %v4153_v23, %v4157_v26  ;;  %v4216_v26 = vld [vmem:[#allocation7 + $0xb10] sm:$0xff] }
 0x3ea   :  { %7328 = vmatpush1.bf16.msra.mxu0 %v9051_v31  ;;  %v4164_v31 = vld [vmem:[#allocation7 + $0x970] sm:$0xff] }
 0x3eb   :  { %7492 = vmatpush1.bf16.msra.mxu1 %v9053_v33  ;;  %7329 = vmatprep.subr.bf16.mxu0 %v9060_v34  ;;  %v4161_v33 = vld [vmem:[#allocation7 + $0x958] sm:$0xff]  ;;  %v9124_v37 = vcombine.high %v4160_v30, %v4164_v31 }
 0x3ec   :  { %7493 = vmatprep.subr.bf16.mxu1 %v9062_v15  ;;  %v4165_v34 = vld [vmem:[#allocation7 + $0x978] sm:$0xff]  ;;  %v9115_v15 = vcombine.low %v4152_v21, %v4156_v57 }
 0x3ed   :  { %v9126_v25 = vcombine.high %v4161_v33, %v4165_v34  ;;  %v9125_v43 = vcombine.low %v4161_v33, %v4165_v34  ;;  %v4224_v34 = vld [vmem:[#allocation7 + $0xb50] sm:$0xff] }
 0x3ee   :  { %7330 = vmatpush1.bf16.msra.mxu0 %v9059_v38  ;;  %v4172_v38 = vld [vmem:[#allocation7 + $0x9b0] sm:$0xff] }
 0x3ef   :  { %7494 = vmatpush1.bf16.msra.mxu1 %v9061_v41  ;;  %7331 = vmatprep.subr.bf16.mxu0 %v9068_v42  ;;  %v4169_v41 = vld [vmem:[#allocation7 + $0x998] sm:$0xff]  ;;  %v9132_v1 = vcombine.high %v4168_v53, %v4172_v38 }
 0x3f0   :  { %7495 = vmatprep.subr.bf16.mxu1 %v9070_v36  ;;  %v4173_v42 = vld [vmem:[#allocation7 + $0x9b8] sm:$0xff]  ;;  %v9123_v36 = vcombine.low %v4160_v30, %v4164_v31 }
 0x3f1   :  { %v9134_v44 = vcombine.high %v4169_v41, %v4173_v42  ;;  %v9133_v49 = vcombine.low %v4169_v41, %v4173_v42  ;;  %v4232_v42 = vld [vmem:[#allocation7 + $0xb90] sm:$0xff] }
 0x3f2   :  { %7332 = vmatpush1.bf16.msra.mxu0 %v9067_v32  ;;  %v4180_v32 = vld [vmem:[#allocation7 + $0x9f0] sm:$0xff] }
 0x3f3   :  { %7496 = vmatpush1.bf16.msra.mxu1 %v9069_v9  ;;  %7333 = vmatprep.subr.bf16.mxu0 %v9076_v47  ;;  %v4177_v9 = vld [vmem:[#allocation7 + $0x9d8] sm:$0xff]  ;;  %v9140_v46 = vcombine.high %v4176_v24, %v4180_v32 }
 0x3f4   :  { %7497 = vmatprep.subr.bf16.mxu1 %v9078_v48  ;;  %v4181_v47 = vld [vmem:[#allocation7 + $0x9f8] sm:$0xff]  ;;  %v9131_v48 = vcombine.low %v4168_v53, %v4172_v38 }
 0x3f5   :  { %v9142_v4 = vcombine.high %v4177_v9, %v4181_v47  ;;  %v9141_v58 = vcombine.low %v4177_v9, %v4181_v47  ;;  %v4240_v47 = vld [vmem:[#allocation7 + $0xbd0] sm:$0xff] }
 0x3f6   :  { %7334 = vmatpush1.bf16.msra.mxu0 %v9075_v52  ;;  %v4188_v52 = vld [vmem:[#allocation7 + $0xa30] sm:$0xff] }
 0x3f7   :  { %7498 = vmatpush1.bf16.msra.mxu1 %v9077_v13  ;;  %7344 = vmatprep.subr.bf16.mxu0 %v9084_v56  ;;  %v4185_v13 = vld [vmem:[#allocation7 + $0xa18] sm:$0xff]  ;;  %v9148_v59 = vcombine.high %v4184_v51, %v4188_v52  ;;  %v9147_v0 = vcombine.low %v4184_v51, %v4188_v52 }
 0x3f8   :  { %7508 = vmatprep.subr.bf16.mxu1 %v9086_v55  ;;  %v4189_v56 = vld [vmem:[#allocation7 + $0xa38] sm:$0xff]  ;;  %v9139_v55 = vcombine.low %v4176_v24, %v4180_v32 }
 0x3f9   :  { %7336 = vmatmul.mubr.bf16.vlgmr.msra.gmra.mrb[12].mxu0 %v10015_v60  ;;  %v9149_v2 = vcombine.low %v4185_v13, %v4189_v56 }
 0x3fa   :  { %7500 = vmatmul.mubr.bf16.vlgmr.msra.gmra.mrb[12].mxu1 %v10015_v60  ;;  %7345 = vmatpush1.bf16.msra.mxu0 %v9083_v45  ;;  %v9101_v60 = vcombine.low %v4137_v3, %v4141_v50  ;;  %v9150_v45 = vcombine.high %v4185_v13, %v4189_v56  ;;  %v4200_v50 = vld [vmem:[#allocation7 + $0xa90] sm:$0xff] }
 0x3fb   :  { %7376 = vmatprep.mubr.bf16.mxu0 %v10021_v18  ;;  %7509 = vmatpush1.bf16.msra.mxu1 %v9085_v8  ;;  %v4193_v8 = vld [vmem:[#allocation7 + $0xa58] sm:$0xff]  ;;  %v4248_v56 = vld [vmem:[#allocation7 + $0xc10] sm:$0xff] }
 0x3fc   :  { %7540 = vmatprep.mubr.bf16.mxu1 %v10021_v18  ;;  %7346 = vmatprep.subr.bf16.mxu0 %v9092_v63  ;;  %v9107_v18 = vcombine.low %v4144_v11, %v4148_v14  ;;  %v4197_v63 = vld [vmem:[#allocation7 + $0xa78] sm:$0xff] }
 0x3fd   :  { %7510 = vmatprep.subr.bf16.mxu1 %v9094_v39  ;;  %v9156_v39 = vcombine.high %v4192_v61, %v4196_v62  ;;  %v9158_v3 = vcombine.high %v4193_v8, %v4197_v63  ;;  %v9157_v11 = vcombine.low %v4193_v8, %v4197_v63  ;;  %v4256_v63 = vld [vmem:[#allocation7 + $0xc50] sm:$0xff] }
 0x3fe   :  { %7347 = vmatpush1.bf16.msra.mxu0 %v9091_v5  ;;  %v4204_v5 = vld [vmem:[#allocation7 + $0xab0] sm:$0xff] }
 0x3ff   :  { %7511 = vmatpush1.bf16.msra.mxu1 %v9093_v6  ;;  %7348 = vmatprep.subr.bf16.mxu0 %v9100_v7  ;;  %v4201_v6 = vld [vmem:[#allocation7 + $0xa98] sm:$0xff]  ;;  %v9164_v14 = vcombine.high %v4200_v50, %v4204_v5 }
 0x400   :  { %7512 = vmatprep.subr.bf16.mxu1 %v9102_v10  ;;  %v4205_v7 = vld [vmem:[#allocation7 + $0xab8] sm:$0xff]  ;;  %v9155_v10 = vcombine.low %v4192_v61, %v4196_v62 }
 0x401   :  { %v9166_v54 = vcombine.high %v4201_v6, %v4205_v7  ;;  %v9165_v21 = vcombine.low %v4201_v6, %v4205_v7  ;;  %v4264_v6 = vld [vmem:[#allocation7 + $0xc90] sm:$0xff] }
 0x402   :  { %7349 = vmatpush1.bf16.msra.mxu0 %v9099_v17  ;;  %v4212_v17 = vld [vmem:[#allocation7 + $0xaf0] sm:$0xff] }
 0x403   :  { %7513 = vmatpush1.bf16.msra.mxu1 %v9101_v60  ;;  %7350 = vmatprep.subr.bf16.mxu0 %v9108_v19  ;;  %v4209_v60 = vld [vmem:[#allocation7 + $0xad8] sm:$0xff]  ;;  %v9172_v57 = vcombine.high %v4208_v16, %v4212_v17  ;;  %v4268_v7 = vld [vmem:[#allocation7 + $0xcb0] sm:$0xff] }
 0x404   :  { %7514 = vmatprep.subr.bf16.mxu1 %v9110_v20  ;;  %v4213_v19 = vld [vmem:[#allocation7 + $0xaf8] sm:$0xff]  ;;  %v9163_v20 = vcombine.low %v4200_v50, %v4204_v5 }
 0x405   :  { %v9174_v23 = vcombine.high %v4209_v60, %v4213_v19  ;;  %v9173_v30 = vcombine.low %v4209_v60, %v4213_v19  ;;  %v4272_v19 = vld [vmem:[#allocation7 + $0xcd0] sm:$0xff] }
 0x406   :  { %7351 = vmatpush1.bf16.msra.mxu0 %v9107_v18  ;;  %v4220_v18 = vld [vmem:[#allocation7 + $0xb30] sm:$0xff] }
 0x407   :  { %7515 = vmatpush1.bf16.msra.mxu1 %v9109_v27  ;;  %7352 = vmatprep.subr.bf16.mxu0 %v9116_v12  ;;  %v4217_v27 = vld [vmem:[#allocation7 + $0xb18] sm:$0xff]  ;;  %v9180_v31 = vcombine.high %v4216_v26, %v4220_v18 }
 0x408   :  { %7516 = vmatprep.subr.bf16.mxu1 %v9118_v28  ;;  %v4221_v12 = vld [vmem:[#allocation7 + $0xb38] sm:$0xff]  ;;  %v9171_v28 = vcombine.low %v4208_v16, %v4212_v17  ;;  %v9228_v17 = vcombine.high %v4264_v6, %v4268_v7 }
 0x409   :  { %v9182_v33 = vcombine.high %v4217_v27, %v4221_v12  ;;  %v9181_v53 = vcombine.low %v4217_v27, %v4221_v12  ;;  %v4280_v27 = vld [vmem:[#allocation7 + $0xd10] sm:$0xff] }
 0x40a   :  { %7353 = vmatpush1.bf16.msra.mxu0 %v9115_v15  ;;  %v4228_v15 = vld [vmem:[#allocation7 + $0xb70] sm:$0xff] }
 0x40b   :  { %7517 = vmatpush1.bf16.msra.mxu1 %v9117_v35  ;;  %7354 = vmatprep.subr.bf16.mxu0 %v9124_v37  ;;  %v4225_v35 = vld [vmem:[#allocation7 + $0xb58] sm:$0xff]  ;;  %v9188_v38 = vcombine.high %v4224_v34, %v4228_v15  ;;  %v4284_v12 = vld [vmem:[#allocation7 + $0xd30] sm:$0xff] }
 0x40c   :  { %7518 = vmatprep.subr.bf16.mxu1 %v9126_v25  ;;  %v4229_v37 = vld [vmem:[#allocation7 + $0xb78] sm:$0xff]  ;;  %v9179_v25 = vcombine.low %v4216_v26, %v4220_v18 }
 0x40d   :  { %v9190_v41 = vcombine.high %v4225_v35, %v4229_v37  ;;  %v9189_v24 = vcombine.low %v4225_v35, %v4229_v37  ;;  %v4292_v35 = vld [vmem:[#allocation7 + $0xd70] sm:$0xff]  ;;  %v4289_v37 = vld [vmem:[#allocation7 + $0xd58] sm:$0xff] }
 0x40e   :  { %7355 = vmatpush1.bf16.msra.mxu0 %v9123_v36  ;;  %v4236_v36 = vld [vmem:[#allocation7 + $0xbb0] sm:$0xff] }
 0x40f   :  { %7519 = vmatpush1.bf16.msra.mxu1 %v9125_v43  ;;  %7356 = vmatprep.subr.bf16.mxu0 %v9132_v1  ;;  %v4233_v43 = vld [vmem:[#allocation7 + $0xb98] sm:$0xff]  ;;  %v9196_v32 = vcombine.high %v4232_v42, %v4236_v36 }
 0x410   :  { %7520 = vmatprep.subr.bf16.mxu1 %v9134_v44  ;;  %v4237_v1 = vld [vmem:[#allocation7 + $0xbb8] sm:$0xff]  ;;  %v9187_v44 = vcombine.low %v4224_v34, %v4228_v15  ;;  %v4288_v15 = vld [vmem:[#allocation7 + $0xd50] sm:$0xff] }
 0x411   :  { %v9198_v9 = vcombine.high %v4233_v43, %v4237_v1  ;;  %v9197_v51 = vcombine.low %v4233_v43, %v4237_v1  ;;  %v4300_v43 = vld [vmem:[#allocation7 + $0xdb0] sm:$0xff]  ;;  %v4297_v1 = vld [vmem:[#allocation7 + $0xd98] sm:$0xff] }
 0x412   :  { %7357 = vmatpush1.bf16.msra.mxu0 %v9131_v48  ;;  %v4244_v48 = vld [vmem:[#allocation7 + $0xbf0] sm:$0xff] }
 0x413   :  { %7521 = vmatpush1.bf16.msra.mxu1 %v9133_v49  ;;  %7358 = vmatprep.subr.bf16.mxu0 %v9140_v46  ;;  %v4241_v49 = vld [vmem:[#allocation7 + $0xbd8] sm:$0xff]  ;;  %v9204_v52 = vcombine.high %v4240_v47, %v4244_v48 }
 0x414   :  { %7522 = vmatprep.subr.bf16.mxu1 %v9142_v4  ;;  %v4245_v46 = vld [vmem:[#allocation7 + $0xbf8] sm:$0xff]  ;;  %v9195_v4 = vcombine.low %v4232_v42, %v4236_v36  ;;  %v4296_v36 = vld [vmem:[#allocation7 + $0xd90] sm:$0xff] }
 0x415   :  { %v9206_v13 = vcombine.high %v4241_v49, %v4245_v46  ;;  %v9205_v61 = vcombine.low %v4241_v49, %v4245_v46  ;;  %v4304_v46 = vld [vmem:[#allocation7 + $0xdd0] sm:$0xff] }
 0x416   :  { %7359 = vmatpush1.bf16.msra.mxu0 %v9139_v55  ;;  %v4252_v55 = vld [vmem:[#allocation7 + $0xc30] sm:$0xff] }
 0x417   :  { %7523 = vmatpush1.bf16.msra.mxu1 %v9141_v58  ;;  %7360 = vmatprep.subr.bf16.mxu0 %v9148_v59  ;;  %v4249_v58 = vld [vmem:[#allocation7 + $0xc18] sm:$0xff]  ;;  %v9212_v62 = vcombine.high %v4248_v56, %v4252_v55 }
 0x418   :  { %7524 = vmatprep.subr.bf16.mxu1 %v9150_v45  ;;  %v4253_v59 = vld [vmem:[#allocation7 + $0xc38] sm:$0xff]  ;;  %v9203_v45 = vcombine.low %v4240_v47, %v4244_v48 }
 0x419   :  { %v9214_v8 = vcombine.high %v4249_v58, %v4253_v59  ;;  %v9213_v50 = vcombine.low %v4249_v58, %v4253_v59  ;;  %v9259_v59 = vcombine.low %v4296_v36, %v4300_v43 }
 0x41a   :  { %7361 = vmatpush1.bf16.msra.mxu0 %v9147_v0  ;;  %v4260_v0 = vld [vmem:[#allocation7 + $0xc70] sm:$0xff] }
 0x41b   :  { %7525 = vmatpush1.bf16.msra.mxu1 %v9149_v2  ;;  %7362 = vmatprep.subr.bf16.mxu0 %v9156_v39  ;;  %v9211_v2 = vcombine.low %v4248_v56, %v4252_v55  ;;  %v4257_v39 = vld [vmem:[#allocation7 + $0xc58] sm:$0xff]  ;;  %v9220_v5 = vcombine.high %v4256_v63, %v4260_v0 }
 0x41c   :  { %7526 = vmatprep.subr.bf16.mxu1 %v9158_v3  ;;  %v4261_v3 = vld [vmem:[#allocation7 + $0xc78] sm:$0xff] }
 0x41d   :  { %v9221_v16 = vcombine.low %v4257_v39, %v4261_v3  ;;  %v4309_v56 = vld [vmem:[#allocation7 + $0xdf8] sm:$0xff] }
 0x41e   :  { %7363 = vmatpush1.bf16.msra.mxu0 %v9155_v10  ;;  %v9222_v10 = vcombine.high %v4257_v39, %v4261_v3  ;;  %v4313_v39 = vld [vmem:[#allocation7 + $0xe18] sm:$0xff] }
 0x41f   :  { %7527 = vmatpush1.bf16.msra.mxu1 %v9157_v11  ;;  %7364 = vmatprep.subr.bf16.mxu0 %v9164_v14  ;;  %v4265_v11 = vld [vmem:[#allocation7 + $0xc98] sm:$0xff] }
 0x420   :  { %7528 = vmatprep.subr.bf16.mxu1 %v9166_v54  ;;  %v4269_v14 = vld [vmem:[#allocation7 + $0xcb8] sm:$0xff]  ;;  %v9219_v54 = vcombine.low %v4256_v63, %v4260_v0  ;;  %v4312_v0 = vld [vmem:[#allocation7 + $0xe10] sm:$0xff] }
 0x421   :  { %v9230_v60 = vcombine.high %v4265_v11, %v4269_v14  ;;  %v4317_v3 = vld [vmem:[#allocation7 + $0xe38] sm:$0xff] }
 0x422   :  { %7365 = vmatpush1.bf16.msra.mxu0 %v9163_v20  ;;  %v4276_v20 = vld [vmem:[#allocation7 + $0xcf0] sm:$0xff] }
 0x423   :  { %7529 = vmatpush1.bf16.msra.mxu1 %v9165_v21  ;;  %7366 = vmatprep.subr.bf16.mxu0 %v9172_v57  ;;  %v4273_v21 = vld [vmem:[#allocation7 + $0xcd8] sm:$0xff]  ;;  %v9236_v26 = vcombine.high %v4272_v19, %v4276_v20 }
 0x424   :  { %7530 = vmatprep.subr.bf16.mxu1 %v9174_v23  ;;  %v4277_v57 = vld [vmem:[#allocation7 + $0xcf8] sm:$0xff]  ;;  %v9227_v23 = vcombine.low %v4264_v6, %v4268_v7  ;;  %v9278_v7 = vcombine.high %v4313_v39, %v4317_v3 }
 0x425   :  { %v9238_v18 = vcombine.high %v4273_v21, %v4277_v57 }
 0x426   :  { %7367 = vmatpush1.bf16.msra.mxu0 %v9171_v28  ;;  %v4281_v28 = vld [vmem:[#allocation7 + $0xd18] sm:$0xff] }
 0x427   :  { %7531 = vmatpush1.bf16.msra.mxu1 %v9173_v30  ;;  %7368 = vmatprep.subr.bf16.mxu0 %v9180_v31  ;;  %v4285_v30 = vld [vmem:[#allocation7 + $0xd38] sm:$0xff]  ;;  %v9237_v31 = vcombine.low %v4273_v21, %v4277_v57  ;;  %v4332_v21 = vld [vmem:[#allocation7 + $0xeb0] sm:$0xff] }
 0x428   :  { %7532 = vmatprep.subr.bf16.mxu1 %v9182_v33  ;;  %v9244_v33 = vcombine.high %v4280_v27, %v4284_v12  ;;  %v9246_v34 = vcombine.high %v4281_v28, %v4285_v30  ;;  %v4329_v57 = vld [vmem:[#allocation7 + $0xe98] sm:$0xff] }
 0x42a   :  { %7369 = vmatpush1.bf16.msra.mxu0 %v9179_v25  ;;  %v4293_v25 = vld [vmem:[#allocation7 + $0xd78] sm:$0xff] }
 0x42b   :  { %7533 = vmatpush1.bf16.msra.mxu1 %v9181_v53  ;;  %7370 = vmatprep.subr.bf16.mxu0 %v9188_v38  ;;  %v9243_v53 = vcombine.low %v4280_v27, %v4284_v12  ;;  %v9245_v38 = vcombine.low %v4281_v28, %v4285_v30  ;;  %v9254_v42 = vcombine.high %v4289_v37, %v4293_v25  ;;  %v4336_v12 = vld [vmem:[#allocation7 + $0xed0] sm:$0xff]  ;;  %v4337_v30 = vld [vmem:[#allocation7 + $0xed8] sm:$0xff] }
 0x42c   :  { %7534 = vmatprep.subr.bf16.mxu1 %v9190_v41  ;;  %v9252_v41 = vcombine.high %v4288_v15, %v4292_v35  ;;  %v4340_v28 = vld [vmem:[#allocation7 + $0xef0] sm:$0xff] }
 0x42e   :  { %7371 = vmatpush1.bf16.msra.mxu0 %v9187_v44  ;;  %v4301_v44 = vld [vmem:[#allocation7 + $0xdb8] sm:$0xff] }
 0x42f   :  { %7535 = vmatpush1.bf16.msra.mxu1 %v9189_v24  ;;  %7372 = vmatprep.subr.bf16.mxu0 %v9196_v32  ;;  %v9251_v24 = vcombine.low %v4288_v15, %v4292_v35  ;;  %v9253_v32 = vcombine.low %v4289_v37, %v4293_v25  ;;  %v9262_v49 = vcombine.high %v4297_v1, %v4301_v44  ;;  %v4344_v35 = vld [vmem:[#allocation7 + $0xf10] sm:$0xff]  ;;  %v4345_v25 = vld [vmem:[#allocation7 + $0xf18] sm:$0xff] }
 0x430   :  { %7536 = vmatprep.subr.bf16.mxu1 %v9198_v9  ;;  %v9260_v9 = vcombine.high %v4296_v36, %v4300_v43  ;;  %v4348_v37 = vld [vmem:[#allocation7 + $0xf30] sm:$0xff] }
 0x431   :  { %v4352_v43 = vld [vmem:[#allocation7 + $0xf50] sm:$0xff] }
 0x432   :  { %7373 = vmatpush1.bf16.msra.mxu0 %v9195_v4  ;;  %v4308_v4 = vld [vmem:[#allocation7 + $0xdf0] sm:$0xff] }
 0x433   :  { %7537 = vmatpush1.bf16.msra.mxu1 %v9197_v51  ;;  %7374 = vmatprep.subr.bf16.mxu0 %v9204_v52 }
 0x434   :  { %7538 = vmatprep.subr.bf16.mxu1 %v9206_v13  ;;  %v4305_v13 = vld [vmem:[#allocation7 + $0xdd8] sm:$0xff] }
 0x435   :  { %v9270_v63 = vcombine.high %v4305_v13, %v4309_v56 }
 0x436   :  { %7375 = vmatpush1.bf16.msra.mxu0 %v9203_v45 }
 0x437   :  { %7539 = vmatpush1.bf16.msra.mxu1 %v9205_v61  ;;  %7385 = vmatprep.subr.bf16.mxu0 %v9212_v62  ;;  %v9261_v62 = vcombine.low %v4297_v1, %v4301_v44  ;;  %v4356_v1 = vld [vmem:[#allocation7 + $0xf70] sm:$0xff]  ;;  %v4353_v44 = vld [vmem:[#allocation7 + $0xf58] sm:$0xff] }
 0x438   :  { %7549 = vmatprep.subr.bf16.mxu1 %v9214_v8  ;;  %v9268_v8 = vcombine.high %v4304_v46, %v4308_v4 }
 0x439   :  { %7377 = vmatmul.mubr.bf16.vlgmr.msra.gmra.mrb[12].mxu0 %v10023_v22 }
 0x43a   :  { %7541 = vmatmul.mubr.bf16.vlgmr.msra.gmra.mrb[12].mxu1 %v10023_v22  ;;  %7386 = vmatpush1.bf16.msra.mxu0 %v9211_v2  ;;  %v9229_v22 = vcombine.low %v4265_v11, %v4269_v14  ;;  %v4316_v2 = vld [vmem:[#allocation7 + $0xe30] sm:$0xff]  ;;  %v4321_v14 = vld [vmem:[#allocation7 + $0xe58] sm:$0xff] }
 0x43b   :  { %7417 = vmatprep.mubr.bf16.mxu0 %v10027_v29  ;;  %7550 = vmatpush1.bf16.msra.mxu1 %v9213_v50  ;;  %v9267_v50 = vcombine.low %v4304_v46, %v4308_v4  ;;  %v9276_v6 = vcombine.high %v4312_v0, %v4316_v2  ;;  %v4324_v11 = vld [vmem:[#allocation7 + $0xe70] sm:$0xff] }
 0x43c   :  { %7581 = vmatprep.mubr.bf16.mxu1 %v10027_v29  ;;  %7387 = vmatprep.subr.bf16.mxu0 %v9220_v5  ;;  %v9235_v29 = vcombine.low %v4272_v19, %v4276_v20  ;;  %v9269_v5 = vcombine.low %v4305_v13, %v4309_v56  ;;  %v4328_v20 = vld [vmem:[#allocation7 + $0xe90] sm:$0xff]  ;;  %v4361_v56 = vld [vmem:[#allocation7 + $0xf98] sm:$0xff] }
 0x43d   :  { %7551 = vmatprep.subr.bf16.mxu1 %v9222_v10  ;;  %v4320_v10 = vld [vmem:[#allocation7 + $0xe50] sm:$0xff] }
 0x43e   :  { %7388 = vmatpush1.bf16.msra.mxu0 %v9219_v54  ;;  %v4325_v54 = vld [vmem:[#allocation7 + $0xe78] sm:$0xff]  ;;  %v4360_v4 = vld [vmem:[#allocation7 + $0xf90] sm:$0xff] }
 0x43f   :  { %7552 = vmatpush1.bf16.msra.mxu1 %v9221_v16  ;;  %7389 = vmatprep.subr.bf16.mxu0 %v9228_v17  ;;  %v9275_v16 = vcombine.low %v4312_v0, %v4316_v2  ;;  %v9277_v17 = vcombine.low %v4313_v39, %v4317_v3  ;;  %v9286_v19 = vcombine.high %v4321_v14, %v4325_v54  ;;  %v4364_v13 = vld [vmem:[#allocation7 + $0xfb0] sm:$0xff]  ;;  %v4373_v0 = vld [vmem:[#allocation7 + $0xff8] sm:$0xff] }
 0x440   :  { %7553 = vmatprep.subr.bf16.mxu1 %v9230_v60  ;;  %v9284_v60 = vcombine.high %v4320_v10, %v4324_v11  ;;  %v9323_v2 = vcombine.low %v4360_v4, %v4364_v13 }
 0x442   :  { %7390 = vmatpush1.bf16.msra.mxu0 %v9227_v23  ;;  %v4333_v23 = vld [vmem:[#allocation7 + $0xeb8] sm:$0xff] }
 0x443   :  { %7554 = vmatpush1.bf16.msra.mxu1 %v9229_v22  ;;  %7391 = vmatprep.subr.bf16.mxu0 %v9236_v26  ;;  %v9283_v22 = vcombine.low %v4320_v10, %v4324_v11  ;;  %v9285_v26 = vcombine.low %v4321_v14, %v4325_v54  ;;  %v9294_v27 = vcombine.high %v4329_v57, %v4333_v23  ;;  %v9603_v10 = vld [vmem:[#allocation8 + $0xc0] sm:$0xff]  }
 0x444   :  { %7555 = vmatprep.subr.bf16.mxu1 %v9238_v18  ;;  %v9292_v18 = vcombine.high %v4328_v20, %v4332_v21  ;;  %v9604_v54 = vld [vmem:[#allocation8] sm:$0xff]  }
 0x446   :  { %7392 = vmatpush1.bf16.msra.mxu0 %v9235_v29  ;;  %v4341_v29 = vld [vmem:[#allocation7 + $0xef8] sm:$0xff] }
 0x447   :  { %7556 = vmatpush1.bf16.msra.mxu1 %v9237_v31  ;;  %7393 = vmatprep.subr.bf16.mxu0 %v9244_v33  ;;  %v9291_v31 = vcombine.low %v4328_v20, %v4332_v21  ;;  %v9293_v33 = vcombine.low %v4329_v57, %v4333_v23  ;;  %v9302_v15 = vcombine.high %v4337_v30, %v4341_v29  ;;  %v9608_v21 = vld [vmem:[#allocation8 + $0x8] sm:$0xff]   ;;  %v9611_v57 = vld [vmem:[#allocation8 + $0xd0] sm:$0xff]  }
 0x448   :  { %7557 = vmatprep.subr.bf16.mxu1 %v9246_v34  ;;  %v9300_v34 = vcombine.high %v4336_v12, %v4340_v28  ;;  %v9612_v23 = vld [vmem:[#allocation8 + $0x10] sm:$0xff]  }
 0x44a   :  { %7394 = vmatpush1.bf16.msra.mxu0 %v9243_v53  ;;  %v4349_v53 = vld [vmem:[#allocation7 + $0xf38] sm:$0xff] }
 0x44b   :  { %7558 = vmatpush1.bf16.msra.mxu1 %v9245_v38  ;;  %7395 = vmatprep.subr.bf16.mxu0 %v9252_v41  ;;  %v9299_v38 = vcombine.low %v4336_v12, %v4340_v28  ;;  %v9301_v41 = vcombine.low %v4337_v30, %v4341_v29  ;;  %v9310_v36 = vcombine.high %v4345_v25, %v4349_v53  ;;  %v9618_v12 = vld [vmem:[#allocation8 + $0x60] sm:$0xff]  }
 0x44c   :  { %v10052_v47 = vpop.f32.mrb[8].mxu0  ;;  %v10054_v48 = vpop.f32.mrb[8].mxu1  ;;  %7559 = vmatprep.subr.bf16.mxu1 %v9254_v42  ;;  %v9308_v42 = vcombine.high %v4344_v35, %v4348_v37  ;;  %v9619_v28 = vld [vmem:[#allocation8 + $0xe0] sm:$0xff]  }
 0x44d   :  { %v10056_v51 = vpop.f32.mrb[9].mxu0  ;;  %v10058_v52 = vpop.f32.mrb[9].mxu1  ;;  %v9620_v30 = vld [vmem:[#allocation8 + $0x20] sm:$0xff]  }
 0x44e   :  { %v7095_v55 = vpop.f32.mrb[10].mxu0  ;;  %v7259_v58 = vpop.f32.mrb[10].mxu1  ;;  %7396 = vmatpush1.bf16.msra.mxu0 %v9251_v24  ;;  %v4357_v24 = vld [vmem:[#allocation7 + $0xf78] sm:$0xff]  ;;  %v7591_v11 = vmax.f32 %v10056_v51, 0.0  ;;  %v7593_v14 = vmax.f32 %v10058_v52, 0.0  ;;  %v9609_v51 = vld [vmem:[#allocation8 + $0x88] sm:$0xff]  }
 0x44f   :  { %7560 = vmatpush1.bf16.msra.mxu1 %v9253_v32  ;;  %v7096_v45 = vpop.f32.mrb[11].mxu0  ;;  %v7260_v61 = vpop.f32.mrb[11].mxu1  ;;  %7397 = vmatprep.subr.bf16.mxu0 %v9260_v9  ;;  %v9307_v32 = vcombine.low %v4344_v35, %v4348_v37  ;;  %v9309_v9 = vcombine.low %v4345_v25, %v4349_v53  ;;  %v9318_v46 = vcombine.high %v4353_v44, %v4357_v24  ;;  %v4365_v55 = vld [vmem:[#allocation7 + $0xfb8] sm:$0xff]  ;;  %v9610_v52 = vld [vmem:[#allocation8 + $0x50] sm:$0xff]   ;;  %v9621_v29 = vld [vmem:[#allocation8 + $0xa0] sm:$0xff]  }
 0x450   :  { %7561 = vmatprep.subr.bf16.mxu1 %v9262_v49  ;;  %v9316_v49 = vcombine.high %v4352_v43, %v4356_v1  ;;  %v9315_v58 = vcombine.low %v4352_v43, %v4356_v1  ;;  %v9324_v45 = vcombine.high %v4360_v4, %v4364_v13  ;;  %v9326_v61 = vcombine.high %v4361_v56, %v4365_v55  ;;  %v9626_v35 = vld [vmem:[#allocation8 + $0x70] sm:$0xff]   ;;  %v9633_v43 = vld [vmem:[#allocation8 + $0xb8] sm:$0xff]   ;;  %v9634_v1 = vld [vmem:[#allocation8 + $0x140] sm:$0xff]  }
 0x451   :  { %v9325_v39 = vcombine.low %v4361_v56, %v4365_v55  ;;  %v7601_v20 = vpack.c.bf16 %v7593_v14, %v7593_v14  ;;  %v9627_v37 = vld [vmem:[#allocation8 + $0xf0] sm:$0xff]   ;;  %v9639_v13 = vld [vmem:[#allocation8 + $0x1c8] sm:$0xff]  }
 0x452   :  { %7398 = vmatpush1.bf16.msra.mxu0 %v9259_v59  ;;  %v9317_v59 = vcombine.low %v4353_v44, %v4357_v24  ;;  %v9628_v25 = vld [vmem:[#allocation8 + $0x30] sm:$0xff]   ;;  %v7592_v44 = vmax.f32 %v10054_v48, 0.0  ;;  %v9635_v24 = vld [vmem:[#allocation8 + $0x1c0] sm:$0xff]   ;;  %v9641_v56 = vld [vmem:[#allocation8 + $0x188] sm:$0xff]  }
 0x453   :  { %7562 = vmatpush1.bf16.msra.mxu1 %v9261_v62  ;;  %7399 = vmatprep.subr.bf16.mxu0 %v9268_v8  ;;  %v4368_v62 = vld [vmem:[#allocation7 + $0xfd0] sm:$0xff] }
 0x454   :  { %7563 = vmatprep.subr.bf16.mxu1 %v9270_v63  ;;  %v4372_v8 = vld [vmem:[#allocation7 + $0xff0] sm:$0xff]  ;;  %v4369_v63 = vld [vmem:[#allocation7 + $0xfd8] sm:$0xff]  ;;  %v7600_v4 = vpack.c.bf16 %v7592_v44, %v7592_v44 }
 0x455   :  { %v9332_v3 = vcombine.high %v4368_v62, %v4372_v8  ;;  %v9629_v53 = vld [vmem:[#allocation8 + $0xb0] sm:$0xff]  }
 0x456   :  { %7400 = vmatpush1.bf16.msra.mxu0 %v9267_v50  ;;  %v9334_v50 = vcombine.high %v4369_v63, %v4373_v0  ;;  %v9642_v48 = vld [vmem:[#allocation8 + $0x150] sm:$0xff]  }
 0x457   :  { %7564 = vmatpush1.bf16.msra.mxu1 %v9269_v5  ;;  %7401 = vmatprep.subr.bf16.mxu0 %v9276_v6  ;;  %v9331_v5 = vcombine.low %v4368_v62, %v4372_v8  ;;  %v9333_v6 = vcombine.low %v4369_v63, %v4373_v0  ;;  %v9643_v55 = vld [vmem:[#allocation8 + $0x1d0] sm:$0xff]   ;;  %v9648_v62 = vld [vmem:[#allocation8 + $0x118] sm:$0xff]   ;;  %v9650_v63 = vld [vmem:[#allocation8 + $0x160] sm:$0xff]  }
 0x458   :  { %7565 = vmatprep.subr.bf16.mxu1 %v9278_v7  ;;  %v9602_v7 = vld [vmem:[#allocation8 + $0x40] sm:$0xff]   ;;  %v9649_v8 = vld [vmem:[#allocation8 + $0x198] sm:$0xff]   ;;  %v9661_v14 = vld [vmem:[#allocation8 + $0x1b0] sm:$0xff]  }
 0x459   :  { %v9651_v0 = vld [vmem:[#allocation8 + $0x1e0] sm:$0xff]  }
 0x45a   :  { %7402 = vmatpush1.bf16.msra.mxu0 %v9275_v16  ;;  %v9605_v16 = vld [vmem:[#allocation8 + $0x80] sm:$0xff]  }
 0x45b   :  { %7566 = vmatpush1.bf16.msra.mxu1 %v9277_v17  ;;  %7403 = vmatprep.subr.bf16.mxu0 %v9284_v60  ;;  %v9606_v17 = vld [vmem:[#allocation8 + $0x48] sm:$0xff]   ;;  %v7599_v60 = vpack.c.bf16 %v7591_v11, %v7591_v11  ;;  %v9660_v11 = vld [vmem:[#allocation8 + $0x130] sm:$0xff]  }
 0x45c   :  { %7567 = vmatprep.subr.bf16.mxu1 %v9286_v19  ;;  %v9607_v19 = vld [vmem:[#allocation8 + $0xc8] sm:$0xff]  }
 0x45e   :  { %7404 = vmatpush1.bf16.msra.mxu0 %v9283_v22  ;;  %v9613_v22 = vld [vmem:[#allocation8 + $0x90] sm:$0xff]  }
 0x45f   :  { %7568 = vmatpush1.bf16.msra.mxu1 %v9285_v26  ;;  %7405 = vmatprep.subr.bf16.mxu0 %v9292_v18  ;;  %v9614_v26 = vld [vmem:[#allocation8 + $0x58] sm:$0xff]  }
 0x460   :  { %7569 = vmatprep.subr.bf16.mxu1 %v9294_v27  ;;  %v9615_v18 = vld [vmem:[#allocation8 + $0xd8] sm:$0xff]  }
 0x461   :  { %v9617_v27 = vld [vmem:[#allocation8 + $0x98] sm:$0xff]  }
 0x462   :  { %7406 = vmatpush1.bf16.msra.mxu0 %v9291_v31  ;;  %v9622_v31 = vld [vmem:[#allocation8 + $0x68] sm:$0xff]  }
 0x463   :  { %7570 = vmatpush1.bf16.msra.mxu1 %v9293_v33  ;;  %7407 = vmatprep.subr.bf16.mxu0 %v9300_v34  ;;  %v9623_v33 = vld [vmem:[#allocation8 + $0xe8] sm:$0xff]  }
 0x464   :  { %7571 = vmatprep.subr.bf16.mxu1 %v9302_v15  ;;  %v9624_v34 = vld [vmem:[#allocation8 + $0x28] sm:$0xff]  }
 0x465   :  { %v9625_v15 = vld [vmem:[#allocation8 + $0xa8] sm:$0xff]  }
 0x466   :  { %7408 = vmatpush1.bf16.msra.mxu0 %v9299_v38  ;;  %v9630_v38 = vld [vmem:[#allocation8 + $0x78] sm:$0xff]  }
 0x467   :  { %7572 = vmatpush1.bf16.msra.mxu1 %v9301_v41  ;;  %7409 = vmatprep.subr.bf16.mxu0 %v9308_v42  ;;  %v9631_v41 = vld [vmem:[#allocation8 + $0xf8] sm:$0xff]  }
 0x468   :  { %7573 = vmatprep.subr.bf16.mxu1 %v9310_v36  ;;  %v9632_v42 = vld [vmem:[#allocation8 + $0x38] sm:$0xff]   ;;  %v7590_v36 = vmax.f32 %v10052_v47, 0.0  ;;  %v9640_v47 = vld [vmem:[#allocation8 + $0x108] sm:$0xff]  }
 0x46a   :  { %7410 = vmatpush1.bf16.msra.mxu0 %v9307_v32  ;;  %v9636_v32 = vld [vmem:[#allocation8 + $0x100] sm:$0xff]  }
 0x46b   :  { %7574 = vmatpush1.bf16.msra.mxu1 %v9309_v9  ;;  %7411 = vmatprep.subr.bf16.mxu0 %v9316_v49  ;;  %v7598_v9 = vpack.c.bf16 %v7590_v36, %v7590_v36  ;;  %v9637_v49 = vld [vmem:[#allocation8 + $0x180] sm:$0xff]  }
 0x46c   :  { %7575 = vmatprep.subr.bf16.mxu1 %v9318_v46  ;;  %v9638_v46 = vld [vmem:[#allocation8 + $0x148] sm:$0xff]  }
 0x46e   :  { %7412 = vmatpush1.bf16.msra.mxu0 %v9315_v58  ;;  %v9644_v58 = vld [vmem:[#allocation8 + $0x110] sm:$0xff]  }
 0x46f   :  { %7576 = vmatpush1.bf16.msra.mxu1 %v9317_v59  ;;  %7413 = vmatprep.subr.bf16.mxu0 %v9324_v45  ;;  %v9645_v59 = vld [vmem:[#allocation8 + $0x190] sm:$0xff]   ;;  %v9646_v45 = vld [vmem:[#allocation8 + $0x158] sm:$0xff]  }
 0x470   :  { %7577 = vmatprep.subr.bf16.mxu1 %v9326_v61  ;;  %v9647_v61 = vld [vmem:[#allocation8 + $0x1d8] sm:$0xff]  }
 0x472   :  { %7414 = vmatpush1.bf16.msra.mxu0 %v9323_v2  ;;  %v9652_v2 = vld [vmem:[#allocation8 + $0x120] sm:$0xff]  }
 0x473   :  { %7578 = vmatpush1.bf16.msra.mxu1 %v9325_v39  ;;  %7415 = vmatprep.subr.bf16.mxu0 %v9332_v3  ;;  %v9653_v39 = vld [vmem:[#allocation8 + $0x1a0] sm:$0xff]   ;;  %v9654_v3 = vld [vmem:[#allocation8 + $0x168] sm:$0xff]  }
 0x474   :  { %7579 = vmatprep.subr.bf16.mxu1 %v9334_v50  ;;  %v9655_v50 = vld [vmem:[#allocation8 + $0x1e8] sm:$0xff]  }
 0x476   :  { %7416 = vmatpush1.bf16.msra.mxu0 %v9331_v5  ;;  %v9656_v5 = vld [vmem:[#allocation8 + $0x128] sm:$0xff]  }
 0x477   :  { %7580 = vmatpush1.bf16.msra.mxu1 %v9333_v6  ;;  %9400 = vmatprep.subr.bf16.mxu0 %v9602_v7  ;;  %v9657_v6 = vld [vmem:[#allocation8 + $0x1a8] sm:$0xff]   ;;  %v9658_v7 = vld [vmem:[#allocation8 + $0x170] sm:$0xff]  }
 0x478   :  { %9422 = vmatprep.subr.bf16.mxu1 %v9603_v10  ;;  %v9659_v10 = vld [vmem:[#allocation8 + $0x1f0] sm:$0xff]  }
 0x479   :  { %7418 = vmatmul.mubr.bf16.vlgmr.msra.gmra.mrb[12].mxu0 %v10034_v40 }
 0x47a   :  { %7582 = vmatmul.mubr.bf16.vlgmr.msra.gmra.mrb[12].mxu1 %v10034_v40  ;;  %9401 = vmatpush3.bf16.msra.mxu0 %v9604_v54  ;;  %v9616_v40 = vld [vmem:[#allocation8 + $0x18] sm:$0xff]  }
 0x47b   :  { %8157 = vmatprep.mubr.bf16.mxu0 %v7599_v60  ;;  %9423 = vmatpush3.bf16.msra.mxu1 %v9605_v16  ;;  %v9662_v54 = vld [vmem:[#allocation8 + $0x178] sm:$0xff]  }
 0x47c   :  { %8197 = vmatprep.mubr.bf16.mxu1 %v7601_v20  ;;  %9402 = vmatprep.subr.bf16.mxu0 %v9606_v17  ;;  %v9663_v16 = vld [vmem:[#allocation8 + $0x1f8] sm:$0xff]  }
 0x47d   :  { %9424 = vmatprep.subr.bf16.mxu1 %v9607_v19  ;;  %v9664_v17 = vld [vmem:[#allocation8 + $0x138] sm:$0xff]  }
 0x47e   :  { %9403 = vmatpush3.bf16.msra.mxu0 %v9608_v21  ;;  %v9665_v60 = vld [vmem:[#allocation8 + $0x1b8] sm:$0xff]  }
 0x47f   :  { %9425 = vmatpush3.bf16.msra.mxu1 %v9609_v51  ;;  %9404 = vmatprep.subr.bf16.mxu0 %v9610_v52 }
 0x480   :  { %9426 = vmatprep.subr.bf16.mxu1 %v9611_v57 }
 0x482   :  { %9405 = vmatpush3.bf16.msra.mxu0 %v9612_v23 }
 0x483   :  { %9427 = vmatpush3.bf16.msra.mxu1 %v9613_v22  ;;  %9406 = vmatprep.subr.bf16.mxu0 %v9614_v26 }
 0x484   :  { %9428 = vmatprep.subr.bf16.mxu1 %v9615_v18 }
 0x486   :  { %9407 = vmatpush3.bf16.msra.mxu0 %v9616_v40 }
 0x487   :  { %9429 = vmatpush3.bf16.msra.mxu1 %v9617_v27  ;;  %9408 = vmatprep.subr.bf16.mxu0 %v9618_v12 }
 0x488   :  { %9430 = vmatprep.subr.bf16.mxu1 %v9619_v28 }
 0x48a   :  { %9409 = vmatpush3.bf16.msra.mxu0 %v9620_v30 }
 0x48b   :  { %9431 = vmatpush3.bf16.msra.mxu1 %v9621_v29  ;;  %9410 = vmatprep.subr.bf16.mxu0 %v9622_v31 }
 0x48c   :  { %9432 = vmatprep.subr.bf16.mxu1 %v9623_v33 }
 0x48e   :  { %9411 = vmatpush3.bf16.msra.mxu0 %v9624_v34  ;;  %v9335_v34 = vld [vmem:[#allocation10] ss:$0 sm:$0xff] }
 0x48f   :  { %9433 = vmatpush3.bf16.msra.mxu1 %v9625_v15  ;;  %9412 = vmatprep.subr.bf16.mxu0 %v9626_v35 }
 0x490   :  { %9434 = vmatprep.subr.bf16.mxu1 %v9627_v37 }
 0x492   :  { %9413 = vmatpush3.bf16.msra.mxu0 %v9628_v25 }
 0x493   :  { %9435 = vmatpush3.bf16.msra.mxu1 %v9629_v53  ;;  %9414 = vmatprep.subr.bf16.mxu0 %v9630_v38 }
 0x494   :  { %9436 = vmatprep.subr.bf16.mxu1 %v9631_v41 }
 0x496   :  { %9415 = vmatpush3.bf16.msra.mxu0 %v9632_v42 }
 0x497   :  { %9437 = vmatpush3.bf16.msra.mxu1 %v9633_v43  ;;  %9444 = vmatprep.subr.bf16.mxu0 %v9634_v1 }
 0x498   :  { %9466 = vmatprep.subr.bf16.mxu1 %v9635_v24 }
 0x499   :  { %8158 = vmatmul.mubr.bf16.vlgmr.msra.gmra.mrb[16].mxu0 %v7598_v9 }
 0x49a   :  { %8198 = vmatmul.mubr.bf16.vlgmr.msra.gmra.mrb[16].mxu1 %v7600_v4  ;;  %9445 = vmatpush3.bf16.msra.mxu0 %v9636_v32 }
 0x49b   :  { %9467 = vmatpush3.bf16.msra.mxu1 %v9637_v49  ;;  %9446 = vmatprep.subr.bf16.mxu0 %v9638_v46 }
 0x49c   :  { %9468 = vmatprep.subr.bf16.mxu1 %v9639_v13 }
 0x49e   :  { %9447 = vmatpush3.bf16.msra.mxu0 %v9640_v47 }
 0x49f   :  { %9469 = vmatpush3.bf16.msra.mxu1 %v9641_v56  ;;  %9448 = vmatprep.subr.bf16.mxu0 %v9642_v48 }
 0x4a0   :  { %9470 = vmatprep.subr.bf16.mxu1 %v9643_v55 }
 0x4a2   :  { %9449 = vmatpush3.bf16.msra.mxu0 %v9644_v58 }
 0x4a3   :  { %9471 = vmatpush3.bf16.msra.mxu1 %v9645_v59  ;;  %9450 = vmatprep.subr.bf16.mxu0 %v9646_v45 }
 0x4a4   :  { %9472 = vmatprep.subr.bf16.mxu1 %v9647_v61 }
 0x4a6   :  { %9451 = vmatpush3.bf16.msra.mxu0 %v9648_v62 }
 0x4a7   :  { %9473 = vmatpush3.bf16.msra.mxu1 %v9649_v8  ;;  %9452 = vmatprep.subr.bf16.mxu0 %v9650_v63 }
 0x4a8   :  { %9474 = vmatprep.subr.bf16.mxu1 %v9651_v0 }
 0x4aa   :  { %9453 = vmatpush3.bf16.msra.mxu0 %v9652_v2 }
 0x4ab   :  { %9475 = vmatpush3.bf16.msra.mxu1 %v9653_v39  ;;  %9454 = vmatprep.subr.bf16.mxu0 %v9654_v3 }
 0x4ac   :  { %9476 = vmatprep.subr.bf16.mxu1 %v9655_v50 }
 0x4ae   :  { %9455 = vmatpush3.bf16.msra.mxu0 %v9656_v5 }
 0x4af   :  { %9477 = vmatpush3.bf16.msra.mxu1 %v9657_v6  ;;  %9456 = vmatprep.subr.bf16.mxu0 %v9658_v7 }
 0x4b0   :  { %9478 = vmatprep.subr.bf16.mxu1 %v9659_v10 }
 0x4b2   :  { %9457 = vmatpush3.bf16.msra.mxu0 %v9660_v11 }
 0x4b3   :  { %9479 = vmatpush3.bf16.msra.mxu1 %v9661_v14  ;;  %9458 = vmatprep.subr.bf16.mxu0 %v9662_v54 }
 0x4b4   :  { %9480 = vmatprep.subr.bf16.mxu1 %v9663_v16 }
 0x4b6   :  { %9459 = vmatpush3.bf16.msra.mxu0 %v9664_v17 }
 0x4b7   :  { %9481 = vmatpush3.bf16.msra.mxu1 %v9665_v60 }
 0x54c   :  { %v7419_v19 = vpop.f32.mrb[12].mxu0 }
 0x54d   :  { %v7594_v20 = vmax.f32 %v7419_v19, 0.0  ;;  %v7583_v21 = vpop.f32.mrb[12].mxu1  ;;  %v7421_v51 = vpop.f32.mrb[13].mxu0 }
 0x54e   :  { %v7596_v52 = vmax.f32 %v7583_v21, 0.0  ;;  %v7595_v57 = vmax.f32 %v7421_v51, 0.0  ;;  %v7585_v23 = vpop.f32.mrb[13].mxu1  ;;  %v7423_v22 = vpop.f32.mrb[14].mxu0 }
 0x54f   :  { %v7597_v26 = vmax.f32 %v7585_v23, 0.0  ;;  %v7587_v18 = vpop.f32.mrb[14].mxu1  ;;  %v7424_v40 = vpop.f32.mrb[15].mxu0  ;;  %v7602_v28 = vpack.c.bf16 %v7594_v20, %v7594_v20 }
 0x550   :  { %v7603_v27 = vpack.c.bf16 %v7595_v57, %v7595_v57  ;;  %v7588_v12 = vpop.f32.mrb[15].mxu1  ;;  %v7604_v29 = vpack.c.bf16 %v7596_v52, %v7596_v52 }
 0x551   :  { %v7605_v30 = vpack.c.bf16 %v7597_v26, %v7597_v26 }
 0x552   :  { %8237 = vmatprep.mubr.bf16.mxu0 %v7603_v27 }
 0x553   :  { %8277 = vmatprep.mubr.bf16.mxu1 %v7605_v30  ;;  %8238 = vmatmul.mubr.bf16.vlgmr.msra.gmra.mrb[20].mxu0 %v7602_v28 }
 0x554   :  { %8278 = vmatmul.mubr.bf16.vlgmr.msra.gmra.mrb[20].mxu1 %v7604_v29 }
 0x56c   :  { %v9416_v31 = vpop.f32.mrb[16].mxu0 }
 0x56d   :  { %v9438_v33 = vpop.f32.mrb[16].mxu1  ;;  %v9417_v15 = vpop.f32.mrb[17].mxu0 }
 0x56e   :  { %v9418_v35 = vadd.f32 %v9417_v15, %v9416_v31  ;;  %v9439_v37 = vpop.f32.mrb[17].mxu1  ;;  %v9419_v25 = vpop.f32.mrb[18].mxu0 }
 0x56f   :  { %v9440_v53 = vadd.f32 %v9439_v37, %v9438_v33  ;;  %v9441_v38 = vpop.f32.mrb[18].mxu1  ;;  %v9420_v41 = vpop.f32.mrb[19].mxu0 }
 0x570   :  { %v8160_v42 = vadd.f32 %v9418_v35, %v9335_v34  ;;  %v9442_v36 = vpop.f32.mrb[19].mxu1 }
 0x572   :  { %v8200_v43 = vadd.f32 %v9440_v53, %v8160_v42 }
 0x626   :  { %v9460_v1 = vpop.f32.mrb[20].mxu0 }
 0x627   :  { %v9482_v44 = vpop.f32.mrb[20].mxu1  ;;  %v9461_v24 = vpop.f32.mrb[21].mxu0 }
 0x628   :  { %v9462_v32 = vadd.f32 %v9461_v24, %v9460_v1  ;;  %v9483_v9 = vpop.f32.mrb[21].mxu1  ;;  %v9463_v49 = vpop.f32.mrb[22].mxu0 }
 0x629   :  { %v9484_v46 = vadd.f32 %v9483_v9, %v9482_v44  ;;  %v9485_v4 = vpop.f32.mrb[22].mxu1  ;;  %v9464_v13 = vpop.f32.mrb[23].mxu0 }
 0x62a   :  { %v8240_v47 = vadd.f32 %v9462_v32, %v8200_v43  ;;  %v9486_v56 = vpop.f32.mrb[23].mxu1 }
 0x62c   :  { %v8280_v48 = vadd.f32 %v9484_v46, %v8240_v47 }
 0x62e   :  { %8285 = vst [vmem:[#allocation11] sm:$0xff] %v8280_v48 }
 0x62f   :  { %9787 = shalt.err (!%p9784_p2)
}
 0x630   :  { %s9788_s8 = scalar_lea.hbm %s10083_s5, 128 }
 0x631   :  { %p9789_p3 = scmp.ne.s32.totalorder %s10083_s5, %s9788_s8  ;;  %p9792_p4 = scmp.lt.u32.totalorder %s9788_s8, %s10083_s5 }
 0x633   :  { %p9794_p5 = pnand %p9792_p4, %p9789_p3 }
 0x635   :  { %9797 = shalt.err (!%p9794_p5)
}
 0x636   :  { %8295 = dma.vmem_to_hbm [thread:$0]  %s8293_s23, 128, %s10083_s5, [#allocation4]  }
 0x637   :  { %9804 = dma.done.wait [#allocation4], 128  }
 0x638   :  { %9805 = vsyncadd [#allocation4], 4294967168 }
 0x639   :  { %8299 = vsyncpa [#allocation3], 1 }
 0x63a   :  { %8300 = vsyncpa [#allocation6], 1 }
 0x63b   :  { %8301 = vsyncpa [#allocation9], 1 }
 0x63c   :  { %8302 = vsyncpa [#allocation4], 1 }

</bundles_post_ra>
